<compile_context>
chip_gen: v6e
topology: v6e:2x2x1
jax: 0.10.0
libtpu: 0.0.40
codegen_flags: <defaults>
</compile_context>

<pallas_src>
import jax
import jax.numpy as jnp
from jax import lax
from jax.experimental import pallas as pl
from jax.experimental.pallas import tpu as pltpu


def _residual_block_kernel(x_ref, w1_ref, s1_ref, t1_ref,
                           w2_ref, s2_ref, t2_ref, out_ref, pad_ref):
    """One image per grid step.

    x_ref   : (1, H, W, C)   unpadded NHWC input block
    w*_ref  : (9*C, C)       conv weights with taps flattened (kh, kw, ci) -> row
    s*_ref  : (1, C)         folded BN scale
    t*_ref  : (1, C)         folded BN shift (includes conv bias)
    out_ref : (1, C, H*W)    lane-dense output block (natively NCHW, flattened)
    pad_ref : (H+2, W+2, C)  VMEM scratch reused for padded x, then padded h
    """
    _, H, W, C = x_ref.shape
    HW = H * W

    # Zero only the 1-pixel border of the scratch; the interior is always
    # overwritten below.  Done every step so correctness does not depend on
    # which core ran program_id == 0 (safe under "parallel" megacore sharding).
    pad_ref[0:1, :, :] = jnp.zeros((1, W + 2, C), jnp.float32)
    pad_ref[H + 1:H + 2, :, :] = jnp.zeros((1, W + 2, C), jnp.float32)
    pad_ref[:, 0:1, :] = jnp.zeros((H + 2, 1, C), jnp.float32)
    pad_ref[:, W + 1:W + 2, :] = jnp.zeros((H + 2, 1, C), jnp.float32)

    def conv3x3(w_ref):
        # im2col: concatenate the 9 shifted tap views along the channel axis
        # and do a single (HW, 9C) x (9C, C) MXU matmul.
        taps = [pad_ref[kh:kh + H, kw:kw + W, :].reshape(HW, C)
                for kh in range(3) for kw in range(3)]
        patches = jnp.concatenate(taps, axis=1)                    # (HW, 9C)
        return jnp.dot(patches, w_ref[...],
                       preferred_element_type=jnp.float32)         # (HW, C)

    # ---- conv1 + BN1 (eval, folded) + ReLU ; padding done in-kernel
    pad_ref[1:H + 1, 1:W + 1, :] = x_ref[0]
    h = jnp.maximum(conv3x3(w1_ref) * s1_ref[...] + t1_ref[...], 0.0)

    # ---- conv2 + BN2 (eval, folded) + residual ; scratch border is still zero
    pad_ref[1:H + 1, 1:W + 1, :] = h.reshape(H, W, C)
    y = conv3x3(w2_ref) * s2_ref[...] + t2_ref[...]
    y = y + x_ref[0].reshape(HW, C)

    # Lane-dense store: (HW, C) -> (C, HW) so the output minor dim is HW = 256
    # (unmasked full-width stores) and the result is already NCHW-ordered.
    out_ref[0] = jnp.transpose(y, (1, 0))


def residual_block_pallas(x_nchw, w1_hwio, b1, g1, be1, m1, v1,
                          w2_hwio, b2, g2, be2, m2, v2, eps=1e-5):
    """Forward pass of ResidualBlock (eval-mode BN), NCHW in -> NCHW out."""
    N, C, H, W = x_nchw.shape

    # NCHW -> NHWC so channels sit on the lane axis inside the kernel.
    x_nhwc = jnp.transpose(x_nchw, (0, 2, 3, 1))

    # Fold conv bias + eval-mode BatchNorm into per-channel scale/shift.
    s1 = g1 / jnp.sqrt(v1 + eps)
    t1 = (b1 - m1) * s1 + be1
    s2 = g2 / jnp.sqrt(v2 + eps)
    t2 = (b2 - m2) * s2 + be2

    # Flatten taps: (3, 3, Cin, Cout) -> (9*Cin, Cout); row order (kh, kw, ci)
    # matches the in-kernel tap concatenation order.
    w1f = w1_hwio.reshape(9 * C, C)
    w2f = w2_hwio.reshape(9 * C, C)

    flops = 2 * (2 * H * W * (9 * C) * C) * N          # two convs
    bytes_accessed = 4 * (2 * N * H * W * C + 2 * 9 * C * C + 4 * C)

    out = pl.pallas_call(
        _residual_block_kernel,
        out_shape=jax.ShapeDtypeStruct((N, C, H * W), jnp.float32),
        grid_spec=pltpu.PrefetchScalarGridSpec(
            num_scalar_prefetch=0,
            grid=(N,),
            in_specs=[
                pl.BlockSpec((1, H, W, C), lambda n: (n, 0, 0, 0)),
                pl.BlockSpec((9 * C, C), lambda n: (0, 0)),
                pl.BlockSpec((1, C), lambda n: (0, 0)),
                pl.BlockSpec((1, C), lambda n: (0, 0)),
                pl.BlockSpec((9 * C, C), lambda n: (0, 0)),
                pl.BlockSpec((1, C), lambda n: (0, 0)),
                pl.BlockSpec((1, C), lambda n: (0, 0)),
            ],
            out_specs=pl.BlockSpec((1, C, H * W), lambda n: (n, 0, 0)),
            scratch_shapes=[pltpu.VMEM((H + 2, W + 2, C), jnp.float32)],
        ),
        compiler_params=pltpu.CompilerParams(
            dimension_semantics=("parallel",)),
        cost_estimate=pl.CostEstimate(
            flops=flops, transcendentals=0, bytes_accessed=bytes_accessed),
    )(x_nhwc, w1f, s1.reshape(1, C), t1.reshape(1, C),
      w2f, s2.reshape(1, C), t2.reshape(1, C))

    # Row-major (N, C, H*W) is bit-identical to (N, C, H, W): free reshape.
    return out.reshape(N, C, H, W)


# ---------------- pure-JAX reference (for correctness check) ----------------
def _conv3x3_ref(x_nhwc, w_hwio, b):
    y = lax.conv_general_dilated(
        x_nhwc, w_hwio, window_strides=(1, 1), padding="SAME",
        dimension_numbers=("NHWC", "HWIO", "NHWC"))
    return y + b[None, None, None, :]


def _bn_eval_ref(y, gamma, beta, mean, var, eps=1e-5):
    return (y - mean) * (gamma / jnp.sqrt(var + eps)) + beta


def residual_block_ref_nchw(x_nchw, params, eps=1e-5):
    (w1, b1, g1, be1, m1, v1, w2, b2, g2, be2, m2, v2) = params
    x_nhwc = jnp.transpose(x_nchw, (0, 2, 3, 1))
    h = jnp.maximum(
        _bn_eval_ref(_conv3x3_ref(x_nhwc, w1, b1), g1, be1, m1, v1, eps), 0.0)
    h = _bn_eval_ref(_conv3x3_ref(h, w2, b2), g2, be2, m2, v2, eps)
    return jnp.transpose(h + x_nhwc, (0, 3, 1, 2))


if __name__ == "__main__":
    N, C, H, W = 2, 4, 16, 16          # matches nn.Conv2d(num=4, ...) block
    eps = 1e-5
    key = jax.random.PRNGKey(0)
    ks = jax.random.split(key, 11)

    # deterministic synthetic parameters (HWIO conv weights)
    w1 = jax.random.normal(ks[0], (3, 3, C, C), jnp.float32) * 0.1
    b1 = jax.random.normal(ks[1], (C,), jnp.float32) * 0.1
    w2 = jax.random.normal(ks[2], (3, 3, C, C), jnp.float32) * 0.1
    b2 = jax.random.normal(ks[3], (C,), jnp.float32) * 0.1
    g1 = 1.0 + 0.1 * jax.random.normal(ks[4], (C,), jnp.float32)
    be1 = 0.1 * jax.random.normal(ks[5], (C,), jnp.float32)
    m1 = 0.1 * jax.random.normal(ks[6], (C,), jnp.float32)
    v1 = 1.0 + 0.1 * jnp.abs(jax.random.normal(ks[7], (C,), jnp.float32))
    g2 = 1.0 + 0.1 * jax.random.normal(ks[8], (C,), jnp.float32)
    be2 = 0.1 * jax.random.normal(ks[9], (C,), jnp.float32)
    m2 = jnp.zeros((C,), jnp.float32)
    v2 = jnp.ones((C,), jnp.float32)

    # PyTorch-layout NCHW input
    x_nchw = jax.random.normal(ks[10], (N, C, H, W), jnp.float32)

    out = residual_block_pallas(x_nchw, w1, b1, g1, be1, m1, v1,
                                w2, b2, g2, be2, m2, v2, eps=eps)
    out = jax.block_until_ready(out)

    ref = residual_block_ref_nchw(
        x_nchw, (w1, b1, g1, be1, m1, v1, w2, b2, g2, be2, m2, v2), eps=eps)
    ref = jax.block_until_ready(ref)

    max_err = float(jnp.max(jnp.abs(out - ref)))
    assert jnp.allclose(out, ref, atol=1e-4, rtol=1e-4), (
        "mismatch: max abs err = %e" % max_err)
    print("KERNEL_OK")
</pallas_src>

<mosaic_0001>
module attributes {stable_mosaic.version = 11 : i64} {
  func.func @_residual_block_kernel(%arg0: i32, %arg1: memref<1x16x16x4xf32, #tpu.memory_space<vmem>>, %arg2: memref<36x4xf32, #tpu.memory_space<vmem>>, %arg3: memref<1x4xf32, #tpu.memory_space<vmem>>, %arg4: memref<1x4xf32, #tpu.memory_space<vmem>>, %arg5: memref<36x4xf32, #tpu.memory_space<vmem>>, %arg6: memref<1x4xf32, #tpu.memory_space<vmem>>, %arg7: memref<1x4xf32, #tpu.memory_space<vmem>>, %arg8: memref<1x4x256xf32, #tpu.memory_space<vmem>>, %arg9: memref<18x18x4xf32, #tpu.memory_space<vmem>>) attributes {dimension_semantics = [#tpu.dimension_semantics<parallel>], iteration_bounds = array<i64: 2>, scalar_prefetch = 0 : i64, scratch_operands = 1 : i64, tpu.core_type = #tpu.core_type<tc>, window_params = [{transform_indices = @transform_0, window_bounds = array<i64: 1, 16, 16, 4>}, {pipeline_mode = #tpu.pipeline_mode<synchronous>, transform_indices = @transform_1, window_bounds = array<i64: 36, 4>}, {pipeline_mode = #tpu.pipeline_mode<synchronous>, transform_indices = @transform_2, window_bounds = array<i64: 1, 4>}, {pipeline_mode = #tpu.pipeline_mode<synchronous>, transform_indices = @transform_3, window_bounds = array<i64: 1, 4>}, {pipeline_mode = #tpu.pipeline_mode<synchronous>, transform_indices = @transform_4, window_bounds = array<i64: 36, 4>}, {pipeline_mode = #tpu.pipeline_mode<synchronous>, transform_indices = @transform_5, window_bounds = array<i64: 1, 4>}, {pipeline_mode = #tpu.pipeline_mode<synchronous>, transform_indices = @transform_6, window_bounds = array<i64: 1, 4>}, {transform_indices = @transform_7, window_bounds = array<i64: 1, 4, 256>}]} {
    %cst = arith.constant 0.000000e+00 : f32
    %0 = vector.broadcast %cst : f32 to vector<1x18x4xf32>
    %c0 = arith.constant 0 : index
    %c0_0 = arith.constant 0 : index
    %c0_1 = arith.constant 0 : index
    %1 = vector.load %arg9[%c0, %c0_0, %c0_1] : memref<18x18x4xf32, #tpu.memory_space<vmem>>, vector<1x18x4xf32>
    tpu.vector_store %arg9[%c0, %c0_0, %c0_1], %0 {strides = array<i32>} : memref<18x18x4xf32, #tpu.memory_space<vmem>>, vector<1x18x4xf32>,
    %cst_2 = arith.constant 0.000000e+00 : f32
    %2 = vector.broadcast %cst_2 : f32 to vector<1x18x4xf32>
    %c17 = arith.constant 17 : index
    %c0_3 = arith.constant 0 : index
    %c0_4 = arith.constant 0 : index
    %3 = vector.load %arg9[%c17, %c0_3, %c0_4] : memref<18x18x4xf32, #tpu.memory_space<vmem>>, vector<1x18x4xf32>
    tpu.vector_store %arg9[%c17, %c0_3, %c0_4], %2 {strides = array<i32>} : memref<18x18x4xf32, #tpu.memory_space<vmem>>, vector<1x18x4xf32>,
    %cst_5 = arith.constant 0.000000e+00 : f32
    %4 = vector.broadcast %cst_5 : f32 to vector<18x1x4xf32>
    %c0_6 = arith.constant 0 : index
    %c0_7 = arith.constant 0 : index
    %c0_8 = arith.constant 0 : index
    %5 = vector.load %arg9[%c0_6, %c0_7, %c0_8] : memref<18x18x4xf32, #tpu.memory_space<vmem>>, vector<18x1x4xf32>
    tpu.vector_store %arg9[%c0_6, %c0_7, %c0_8], %4 {strides = array<i32>} : memref<18x18x4xf32, #tpu.memory_space<vmem>>, vector<18x1x4xf32>,
    %cst_9 = arith.constant 0.000000e+00 : f32
    %6 = vector.broadcast %cst_9 : f32 to vector<18x1x4xf32>
    %c0_10 = arith.constant 0 : index
    %c17_11 = arith.constant 17 : index
    %c0_12 = arith.constant 0 : index
    %7 = vector.load %arg9[%c0_10, %c17_11, %c0_12] : memref<18x18x4xf32, #tpu.memory_space<vmem>>, vector<18x1x4xf32>
    tpu.vector_store %arg9[%c0_10, %c17_11, %c0_12], %6 {strides = array<i32>} : memref<18x18x4xf32, #tpu.memory_space<vmem>>, vector<18x1x4xf32>,
    %c0_13 = arith.constant 0 : index
    %c0_14 = arith.constant 0 : index
    %c0_15 = arith.constant 0 : index
    %c0_16 = arith.constant 0 : index
    %8 = vector.load %arg1[%c0_13, %c0_14, %c0_15, %c0_16] : memref<1x16x16x4xf32, #tpu.memory_space<vmem>>, vector<1x16x16x4xf32>
    %9 = vector.shape_cast %8 : vector<1x16x16x4xf32> to vector<16x16x4xf32>
    %c1 = arith.constant 1 : index
    %c1_17 = arith.constant 1 : index
    %c0_18 = arith.constant 0 : index
    %10 = vector.load %arg9[%c1, %c1_17, %c0_18] : memref<18x18x4xf32, #tpu.memory_space<vmem>>, vector<16x16x4xf32>
    tpu.vector_store %arg9[%c1, %c1_17, %c0_18], %9 {strides = array<i32>} : memref<18x18x4xf32, #tpu.memory_space<vmem>>, vector<16x16x4xf32>,
    %c0_19 = arith.constant 0 : index
    %c0_20 = arith.constant 0 : index
    %c0_21 = arith.constant 0 : index
    %11 = vector.load %arg9[%c0_19, %c0_20, %c0_21] : memref<18x18x4xf32, #tpu.memory_space<vmem>>, vector<16x16x4xf32>
    %12 = vector.shape_cast %11 : vector<16x16x4xf32> to vector<256x4xf32>
    %c0_22 = arith.constant 0 : index
    %c1_23 = arith.constant 1 : index
    %c0_24 = arith.constant 0 : index
    %13 = vector.load %arg9[%c0_22, %c1_23, %c0_24] : memref<18x18x4xf32, #tpu.memory_space<vmem>>, vector<16x16x4xf32>
    %14 = vector.shape_cast %13 : vector<16x16x4xf32> to vector<256x4xf32>
    %c0_25 = arith.constant 0 : index
    %c2 = arith.constant 2 : index
    %c0_26 = arith.constant 0 : index
    %15 = vector.load %arg9[%c0_25, %c2, %c0_26] : memref<18x18x4xf32, #tpu.memory_space<vmem>>, vector<16x16x4xf32>
    %16 = vector.shape_cast %15 : vector<16x16x4xf32> to vector<256x4xf32>
    %c1_27 = arith.constant 1 : index
    %c0_28 = arith.constant 0 : index
    %c0_29 = arith.constant 0 : index
    %17 = vector.load %arg9[%c1_27, %c0_28, %c0_29] : memref<18x18x4xf32, #tpu.memory_space<vmem>>, vector<16x16x4xf32>
    %18 = vector.shape_cast %17 : vector<16x16x4xf32> to vector<256x4xf32>
    %c1_30 = arith.constant 1 : index
    %c1_31 = arith.constant 1 : index
    %c0_32 = arith.constant 0 : index
    %19 = vector.load %arg9[%c1_30, %c1_31, %c0_32] : memref<18x18x4xf32, #tpu.memory_space<vmem>>, vector<16x16x4xf32>
    %20 = vector.shape_cast %19 : vector<16x16x4xf32> to vector<256x4xf32>
    %c1_33 = arith.constant 1 : index
    %c2_34 = arith.constant 2 : index
    %c0_35 = arith.constant 0 : index
    %21 = vector.load %arg9[%c1_33, %c2_34, %c0_35] : memref<18x18x4xf32, #tpu.memory_space<vmem>>, vector<16x16x4xf32>
    %22 = vector.shape_cast %21 : vector<16x16x4xf32> to vector<256x4xf32>
    %c2_36 = arith.constant 2 : index
    %c0_37 = arith.constant 0 : index
    %c0_38 = arith.constant 0 : index
    %23 = vector.load %arg9[%c2_36, %c0_37, %c0_38] : memref<18x18x4xf32, #tpu.memory_space<vmem>>, vector<16x16x4xf32>
    %24 = vector.shape_cast %23 : vector<16x16x4xf32> to vector<256x4xf32>
    %c2_39 = arith.constant 2 : index
    %c1_40 = arith.constant 1 : index
    %c0_41 = arith.constant 0 : index
    %25 = vector.load %arg9[%c2_39, %c1_40, %c0_41] : memref<18x18x4xf32, #tpu.memory_space<vmem>>, vector<16x16x4xf32>
    %26 = vector.shape_cast %25 : vector<16x16x4xf32> to vector<256x4xf32>
    %c2_42 = arith.constant 2 : index
    %c2_43 = arith.constant 2 : index
    %c0_44 = arith.constant 0 : index
    %27 = vector.load %arg9[%c2_42, %c2_43, %c0_44] : memref<18x18x4xf32, #tpu.memory_space<vmem>>, vector<16x16x4xf32>
    %28 = vector.shape_cast %27 : vector<16x16x4xf32> to vector<256x4xf32>
    %29 = tpu.concatenate %12, %14, %16, %18, %20, %22, %24, %26, %28 in 1 : vector<256x4xf32>, vector<256x4xf32>, vector<256x4xf32>, vector<256x4xf32>, vector<256x4xf32>, vector<256x4xf32>, vector<256x4xf32>, vector<256x4xf32>, vector<256x4xf32> -> vector<256x36xf32>
    %c0_45 = arith.constant 0 : index
    %c0_46 = arith.constant 0 : index
    %30 = vector.load %arg2[%c0_45, %c0_46] : memref<36x4xf32, #tpu.memory_space<vmem>>, vector<36x4xf32>
    %cst_47 = arith.constant dense<0.000000e+00> : vector<256x4xf32>
    %31 = tpu.matmul %29, %30, %cst_47 {dimension_numbers = #tpu.dot_dimension_numbers<[1], [0], [0], [1], [0, 0, 1, 1], [], []>} : vector<256x36xf32>, vector<36x4xf32>, vector<256x4xf32> -> vector<256x4xf32>
    %c0_48 = arith.constant 0 : index
    %c0_49 = arith.constant 0 : index
    %32 = vector.load %arg3[%c0_48, %c0_49] : memref<1x4xf32, #tpu.memory_space<vmem>>, vector<1x4xf32>
    %33 = vector.broadcast %32 : vector<1x4xf32> to vector<256x4xf32>
    %34 = arith.mulf %31, %33 : vector<256x4xf32>
    %c0_50 = arith.constant 0 : index
    %c0_51 = arith.constant 0 : index
    %35 = vector.load %arg4[%c0_50, %c0_51] : memref<1x4xf32, #tpu.memory_space<vmem>>, vector<1x4xf32>
    %36 = vector.broadcast %35 : vector<1x4xf32> to vector<256x4xf32>
    %37 = arith.addf %34, %36 : vector<256x4xf32>
    %cst_52 = arith.constant 0.000000e+00 : f32
    %38 = vector.broadcast %cst_52 : f32 to vector<256x4xf32>
    %39 = arith.maximumf %37, %38 : vector<256x4xf32>
    %40 = vector.shape_cast %39 : vector<256x4xf32> to vector<16x16x4xf32>
    %c1_53 = arith.constant 1 : index
    %c1_54 = arith.constant 1 : index
    %c0_55 = arith.constant 0 : index
    %41 = vector.load %arg9[%c1_53, %c1_54, %c0_55] : memref<18x18x4xf32, #tpu.memory_space<vmem>>, vector<16x16x4xf32>
    tpu.vector_store %arg9[%c1_53, %c1_54, %c0_55], %40 {strides = array<i32>} : memref<18x18x4xf32, #tpu.memory_space<vmem>>, vector<16x16x4xf32>,
    %c0_56 = arith.constant 0 : index
    %c0_57 = arith.constant 0 : index
    %c0_58 = arith.constant 0 : index
    %42 = vector.load %arg9[%c0_56, %c0_57, %c0_58] : memref<18x18x4xf32, #tpu.memory_space<vmem>>, vector<16x16x4xf32>
    %43 = vector.shape_cast %42 : vector<16x16x4xf32> to vector<256x4xf32>
    %c0_59 = arith.constant 0 : index
    %c1_60 = arith.constant 1 : index
    %c0_61 = arith.constant 0 : index
    %44 = vector.load %arg9[%c0_59, %c1_60, %c0_61] : memref<18x18x4xf32, #tpu.memory_space<vmem>>, vector<16x16x4xf32>
    %45 = vector.shape_cast %44 : vector<16x16x4xf32> to vector<256x4xf32>
    %c0_62 = arith.constant 0 : index
    %c2_63 = arith.constant 2 : index
    %c0_64 = arith.constant 0 : index
    %46 = vector.load %arg9[%c0_62, %c2_63, %c0_64] : memref<18x18x4xf32, #tpu.memory_space<vmem>>, vector<16x16x4xf32>
    %47 = vector.shape_cast %46 : vector<16x16x4xf32> to vector<256x4xf32>
    %c1_65 = arith.constant 1 : index
    %c0_66 = arith.constant 0 : index
    %c0_67 = arith.constant 0 : index
    %48 = vector.load %arg9[%c1_65, %c0_66, %c0_67] : memref<18x18x4xf32, #tpu.memory_space<vmem>>, vector<16x16x4xf32>
    %49 = vector.shape_cast %48 : vector<16x16x4xf32> to vector<256x4xf32>
    %c1_68 = arith.constant 1 : index
    %c1_69 = arith.constant 1 : index
    %c0_70 = arith.constant 0 : index
    %50 = vector.load %arg9[%c1_68, %c1_69, %c0_70] : memref<18x18x4xf32, #tpu.memory_space<vmem>>, vector<16x16x4xf32>
    %51 = vector.shape_cast %50 : vector<16x16x4xf32> to vector<256x4xf32>
    %c1_71 = arith.constant 1 : index
    %c2_72 = arith.constant 2 : index
    %c0_73 = arith.constant 0 : index
    %52 = vector.load %arg9[%c1_71, %c2_72, %c0_73] : memref<18x18x4xf32, #tpu.memory_space<vmem>>, vector<16x16x4xf32>
    %53 = vector.shape_cast %52 : vector<16x16x4xf32> to vector<256x4xf32>
    %c2_74 = arith.constant 2 : index
    %c0_75 = arith.constant 0 : index
    %c0_76 = arith.constant 0 : index
    %54 = vector.load %arg9[%c2_74, %c0_75, %c0_76] : memref<18x18x4xf32, #tpu.memory_space<vmem>>, vector<16x16x4xf32>
    %55 = vector.shape_cast %54 : vector<16x16x4xf32> to vector<256x4xf32>
    %c2_77 = arith.constant 2 : index
    %c1_78 = arith.constant 1 : index
    %c0_79 = arith.constant 0 : index
    %56 = vector.load %arg9[%c2_77, %c1_78, %c0_79] : memref<18x18x4xf32, #tpu.memory_space<vmem>>, vector<16x16x4xf32>
    %57 = vector.shape_cast %56 : vector<16x16x4xf32> to vector<256x4xf32>
    %c2_80 = arith.constant 2 : index
    %c2_81 = arith.constant 2 : index
    %c0_82 = arith.constant 0 : index
    %58 = vector.load %arg9[%c2_80, %c2_81, %c0_82] : memref<18x18x4xf32, #tpu.memory_space<vmem>>, vector<16x16x4xf32>
    %59 = vector.shape_cast %58 : vector<16x16x4xf32> to vector<256x4xf32>
    %60 = tpu.concatenate %43, %45, %47, %49, %51, %53, %55, %57, %59 in 1 : vector<256x4xf32>, vector<256x4xf32>, vector<256x4xf32>, vector<256x4xf32>, vector<256x4xf32>, vector<256x4xf32>, vector<256x4xf32>, vector<256x4xf32>, vector<256x4xf32> -> vector<256x36xf32>
    %c0_83 = arith.constant 0 : index
    %c0_84 = arith.constant 0 : index
    %61 = vector.load %arg5[%c0_83, %c0_84] : memref<36x4xf32, #tpu.memory_space<vmem>>, vector<36x4xf32>
    %cst_85 = arith.constant dense<0.000000e+00> : vector<256x4xf32>
    %62 = tpu.matmul %60, %61, %cst_85 {dimension_numbers = #tpu.dot_dimension_numbers<[1], [0], [0], [1], [0, 0, 1, 1], [], []>} : vector<256x36xf32>, vector<36x4xf32>, vector<256x4xf32> -> vector<256x4xf32>
    %c0_86 = arith.constant 0 : index
    %c0_87 = arith.constant 0 : index
    %63 = vector.load %arg6[%c0_86, %c0_87] : memref<1x4xf32, #tpu.memory_space<vmem>>, vector<1x4xf32>
    %64 = vector.broadcast %63 : vector<1x4xf32> to vector<256x4xf32>
    %65 = arith.mulf %62, %64 : vector<256x4xf32>
    %c0_88 = arith.constant 0 : index
    %c0_89 = arith.constant 0 : index
    %66 = vector.load %arg7[%c0_88, %c0_89] : memref<1x4xf32, #tpu.memory_space<vmem>>, vector<1x4xf32>
    %67 = vector.broadcast %66 : vector<1x4xf32> to vector<256x4xf32>
    %68 = arith.addf %65, %67 : vector<256x4xf32>
    %c0_90 = arith.constant 0 : index
    %c0_91 = arith.constant 0 : index
    %c0_92 = arith.constant 0 : index
    %c0_93 = arith.constant 0 : index
    %69 = vector.load %arg1[%c0_90, %c0_91, %c0_92, %c0_93] : memref<1x16x16x4xf32, #tpu.memory_space<vmem>>, vector<1x16x16x4xf32>
    %70 = vector.shape_cast %69 : vector<1x16x16x4xf32> to vector<16x16x4xf32>
    %71 = vector.shape_cast %70 : vector<16x16x4xf32> to vector<256x4xf32>
    %72 = arith.addf %68, %71 : vector<256x4xf32>
    %73 = tpu.transpose %72, [1, 0] : vector<256x4xf32> -> vector<4x256xf32>
    %c0_94 = arith.constant 0 : index
    %c0_95 = arith.constant 0 : index
    %c0_96 = arith.constant 0 : index
    %74 = vector.load %arg8[%c0_94, %c0_95, %c0_96] : memref<1x4x256xf32, #tpu.memory_space<vmem>>, vector<1x4x256xf32>
    %75 = vector.shape_cast %74 : vector<1x4x256xf32> to vector<4x256xf32>
    %76 = vector.shape_cast %73 : vector<4x256xf32> to vector<1x4x256xf32>
    tpu.vector_store %arg8[%c0_94, %c0_95, %c0_96], %76 {strides = array<i32>} : memref<1x4x256xf32, #tpu.memory_space<vmem>>, vector<1x4x256xf32>,
    return
  }
  func.func @transform_0(%arg0: i32) -> (i32, i32, i32, i32) {
    %c0_i32 = arith.constant 0 : i32
    %c0_i32_0 = arith.constant 0 : i32
    %c0_i32_1 = arith.constant 0 : i32
    %c0_i32_2 = arith.constant 0 : i32
    return %arg0, %c0_i32, %c0_i32_0, %c0_i32_1 : i32, i32, i32, i32
  }
  func.func @transform_1(%arg0: i32) -> (i32, i32) {
    %c0_i32 = arith.constant 0 : i32
    %c0_i32_0 = arith.constant 0 : i32
    %c0_i32_1 = arith.constant 0 : i32
    return %c0_i32, %c0_i32_0 : i32, i32
  }
  func.func @transform_2(%arg0: i32) -> (i32, i32) {
    %c0_i32 = arith.constant 0 : i32
    %c0_i32_0 = arith.constant 0 : i32
    %c0_i32_1 = arith.constant 0 : i32
    return %c0_i32, %c0_i32_0 : i32, i32
  }
  func.func @transform_3(%arg0: i32) -> (i32, i32) {
    %c0_i32 = arith.constant 0 : i32
    %c0_i32_0 = arith.constant 0 : i32
    %c0_i32_1 = arith.constant 0 : i32
    return %c0_i32, %c0_i32_0 : i32, i32
  }
  func.func @transform_4(%arg0: i32) -> (i32, i32) {
    %c0_i32 = arith.constant 0 : i32
    %c0_i32_0 = arith.constant 0 : i32
    %c0_i32_1 = arith.constant 0 : i32
    return %c0_i32, %c0_i32_0 : i32, i32
  }
  func.func @transform_5(%arg0: i32) -> (i32, i32) {
    %c0_i32 = arith.constant 0 : i32
    %c0_i32_0 = arith.constant 0 : i32
    %c0_i32_1 = arith.constant 0 : i32
    return %c0_i32, %c0_i32_0 : i32, i32
  }
  func.func @transform_6(%arg0: i32) -> (i32, i32) {
    %c0_i32 = arith.constant 0 : i32
    %c0_i32_0 = arith.constant 0 : i32
    %c0_i32_1 = arith.constant 0 : i32
    return %c0_i32, %c0_i32_0 : i32, i32
  }
  func.func @transform_7(%arg0: i32) -> (i32, i32, i32) {
    %c0_i32 = arith.constant 0 : i32
    %c0_i32_0 = arith.constant 0 : i32
    %c0_i32_1 = arith.constant 0 : i32
    return %arg0, %c0_i32, %c0_i32_0 : i32, i32, i32
  }
}

</mosaic_0001>

<bundles_post_ra>
// kernel: tpu_custom_call.1
= control target key start
LH: loop header
LB: loop body
LE: loop exit
PB: predicated region body
PF: predicated region fallthrough
CT: control target
= control target key end

     0   :  { %12 = vsyncpa [#allocation4], 0  ;;  %s8274_s0 = inlined_call_operand.vmem [shape: f32[2,16,16,4], index: 0, kind: input, shape index: {}]   ;;  %s8275_s1 = inlined_call_operand.vmem [shape: f32[36,4], index: 1, kind: input, shape index: {}]   ;;  %s8276_s2 = inlined_call_operand.vmem [shape: f32[1,4], index: 2, kind: input, shape index: {}]   ;;  %s8277_s3 = inlined_call_operand.vmem [shape: f32[1,4], index: 3, kind: input, shape index: {}]   ;;  %s8278_s4 = inlined_call_operand.vmem [shape: f32[36,4], index: 4, kind: input, shape index: {}]   ;;  %s8279_s5 = inlined_call_operand.vmem [shape: f32[1,4], index: 5, kind: input, shape index: {}]   ;;  %s8280_s6 = inlined_call_operand.vmem [shape: f32[1,4], index: 6, kind: input, shape index: {}]   ;;  %s8281_s7 = inlined_call_operand.hbm [shape: f32[2,4,256], index: 7, kind: output, shape index: {}]  }
   0x1   :  { %14 = vsyncpa [#allocation4 + $0x1], 0  ;;  %s5100_s24 = smov 0   ;;  %s5102_s25 = smov 0  }
   0x2   :  { %s5104_s26 = smov 0   ;;  %s5106_s27 = smov 0  }
   0x3 LB: > { %s5121_s28 = sadd.s32 4294967295, %s5048_s27   ;;  %s4619_s29 = sadd.s32 4294967294, %s5048_s27   ;;  %s5048_s27 = sphi %s5106_s27, %s8896_s27   ;;  %s5044_s26 = sphi %s5104_s26, %s8895_s26   ;;  %s5040_s25 = sphi %s5102_s25, %s8894_s25   ;;  %s5036_s24 = sphi %s5100_s24, %s8893_s24  }
   0x4   : > { %s5125_s30 = sadd.s32 1, %s5048_s27   ;;  %s179_s8 = sadd.s32 1, %s5044_s26 }
   0x5   : > { %s176_s9 = ssub.s32 %s5048_s27, %s5125_s30  ;;  %p189_p0 = scmp.ne.s32.totalorder %s5044_s26, %s5040_s25 }
   0x6   : > { %p177_p1 = scmp.eq.s32.totalorder %s176_s9, 0  ;;  %p190_p2 = scmp.eq.s32.totalorder %s5121_s28, 1 }
   0x7   : > { %p195_p3 = scmp.ne.s32.totalorder %s5040_s25, %s5036_s24  ;;  %p196_p4 = scmp.eq.s32.totalorder %s4619_s29, 1 }
   0x8   : > { %s5136_s10 = scalar_select %p177_p1, %s5044_s26, %s179_s8  }
   0x9   : > { %p5138_p5 = por %p190_p2, %p189_p0  ;;  %p5142_p6 = por %p196_p4, %p195_p3 }
   0xa   : > { %p4622_p7 = scmp.ge.s32.totalorder %s5048_s27, 1  ;;  %p240_p8 = scmp.lt.s32.totalorder %s5048_s27, 3 }
   0xc   : > { %p241_p9 = pnand %p4622_p7, %p240_p8 }
   0xe   : > { %244 = sbr.rel (%p241_p9) target bundleno = 1733 (0x6c5), region = 48 }
  0x13   : > { %vm277_vm0 = vcmask 31744   ;;  %vm280_vm1 = vcmask 25600   ;;  %p272_p10 = scmp.lt.s32.totalorder %s5121_s28, 1  ;;  %vm286_vm2 = vcmask 24576   ;;  %v5050_v0 = vmov 0.0   ;;  %s5051_s18 = smov 4  }
  0x14   : > { %278 = vst.msk [vmem:[#allocation2] sm:$0xff] %vm277_vm0, %v5050_v0  ;;  %279 = vst.msk [vmem:[#allocation2 + $0x8] sm:$0xff] %vm277_vm0, %v5050_v0  ;;  %s5052_s19 = smov 8   ;;  %s5053_s20 = smov 12   ;;  %vm2066_vm3 = vcmask 1043456   ;;  %vm1733_vm4 = vcmask 64512  }
  0x15   : > { %283 = vst.msk [vmem:[#allocation2 + $0x198] sm:$0xff] %vm277_vm0, %v5050_v0  ;;  %284 = vst.msk [vmem:[#allocation2 + $0x1a0] sm:$0xff] %vm277_vm0, %v5050_v0  ;;  %s273_s13 = scalar_select %p272_p10, %s5121_s28, 1  ;;  %vm1766_vm5 = vcmask 97280   ;;  %vm1799_vm6 = vcmask 130048   ;;  %vm1832_vm7 = vcmask 162816  }
  0x16   : > { %281 = vst.msk [vmem:[#allocation2 + $0x10] sm:$0x3] %vm280_vm1, %v5050_v0  ;;  %285 = vst.msk [vmem:[#allocation2 + $0x1a8] sm:$0x3] %vm280_vm1, %v5050_v0  ;;  %s5054_s21 = smov 16   ;;  %s5055_s22 = smov 20  }
  0x17   : > { %288 = vst.msk [vmem:[#allocation2 + $0x18] sm:$0x1] %vm286_vm2, %v5050_v0  ;;  %289 = vst.msk [vmem:[#allocation2 + $0x30] sm:$0x1] %vm286_vm2, %v5050_v0  ;;  %s4701_s14 = sshll.u32 %s273_s13, 8  ;;  %s5056_s23 = smov 24  }
  0x18   : > { %290 = vst.msk [vmem:[#allocation2 + $0x48] sm:$0x1] %vm286_vm2, %v5050_v0  ;;  %291 = vst.msk [vmem:[#allocation2 + $0x60] sm:$0x1] %vm286_vm2, %v5050_v0  ;;  %s5195_s17 = scalar_lea.vmem %s8274_s0, %s4701_s14  ;;  %s5057_s29 = smov 28   ;;  %vm1865_vm8 = vcmask 195584  }
  0x19   : > { %292 = vst.msk [vmem:[#allocation2 + $0x78] sm:$0x1] %vm286_vm2, %v5050_v0  ;;  %293 = vst.msk [vmem:[#allocation2 + $0x90] sm:$0x1] %vm286_vm2, %v5050_v0  ;;  %v323_v1 = vld [vmem:[%s5195_s17] sm:$0xff]  ;;  %v325_v2 = vld [vmem:[%s5195_s17 + $0x10] sm:$0xff] }
  0x1a   : > { %294 = vst.msk [vmem:[#allocation2 + $0xa8] sm:$0x1] %vm286_vm2, %v5050_v0  ;;  %295 = vst.msk [vmem:[#allocation2 + $0xc0] sm:$0x1] %vm286_vm2, %v5050_v0  ;;  %v324_v3 = vld [vmem:[%s5195_s17 + $0x8] sm:$0xff]  ;;  %v327_v4 = vld [vmem:[%s5195_s17 + $0x20] sm:$0xff] }
  0x1b   : > { %296 = vst.msk [vmem:[#allocation2 + $0xd8] sm:$0x1] %vm286_vm2, %v5050_v0  ;;  %297 = vst.msk [vmem:[#allocation2 + $0xf0] sm:$0x1] %vm286_vm2, %v5050_v0  ;;  %v326_v5 = vld [vmem:[%s5195_s17 + $0x18] sm:$0xff]  ;;  %v329_v6 = vld [vmem:[%s5195_s17 + $0x30] sm:$0xff] }
  0x1c   : > { %298 = vst.msk [vmem:[#allocation2 + $0x108] sm:$0x1] %vm286_vm2, %v5050_v0  ;;  %299 = vst.msk [vmem:[#allocation2 + $0x120] sm:$0x1] %vm286_vm2, %v5050_v0  ;;  %v420_v7 = vld [vmem:[#allocation2 + $0x1] sm:$0xff]  ;;  %v330_v11 = vld [vmem:[%s5195_s17 + $0x38] sm:$0xff] }
  0x1d   : > { %300 = vst.msk [vmem:[#allocation2 + $0x138] sm:$0x1] %vm286_vm2, %v5050_v0  ;;  %301 = vst.msk [vmem:[#allocation2 + $0x150] sm:$0x1] %vm286_vm2, %v5050_v0  ;;  %v421_v8 = vld [vmem:[#allocation2 + $0x9] sm:$0xff]  ;;  %709 = vrot.lane.b32.xlu0 %v420_v7, %s5051_s18  ;;  %v331_v10 = vld [vmem:[%s5195_s17 + $0x40] sm:$0xff] }
  0x1e   : > { %302 = vst.msk [vmem:[#allocation2 + $0x168] sm:$0x1] %vm286_vm2, %v5050_v0  ;;  %303 = vst.msk [vmem:[#allocation2 + $0x180] sm:$0x1] %vm286_vm2, %v5050_v0  ;;  %v328_v9 = vld [vmem:[%s5195_s17 + $0x28] sm:$0xff]  ;;  %v333_v12 = vld [vmem:[%s5195_s17 + $0x50] sm:$0xff] }
  0x1f   : > { %306 = vst.msk [vmem:[#allocation2 + $0x29] sm:$0x1] %vm286_vm2, %v5050_v0  ;;  %307 = vst.msk [vmem:[#allocation2 + $0x41] sm:$0x1] %vm286_vm2, %v5050_v0  ;;  %v332_v13 = vld [vmem:[%s5195_s17 + $0x48] sm:$0xff]  ;;  %v335_v14 = vld [vmem:[%s5195_s17 + $0x60] sm:$0xff] }
  0x20   : > { %308 = vst.msk [vmem:[#allocation2 + $0x59] sm:$0x1] %vm286_vm2, %v5050_v0  ;;  %309 = vst.msk [vmem:[#allocation2 + $0x71] sm:$0x1] %vm286_vm2, %v5050_v0  ;;  %v334_v15 = vld [vmem:[%s5195_s17 + $0x58] sm:$0xff]  ;;  %v337_v16 = vld [vmem:[%s5195_s17 + $0x70] sm:$0xff] }
  0x21   : > { %310 = vst.msk [vmem:[#allocation2 + $0x89] sm:$0x1] %vm286_vm2, %v5050_v0  ;;  %311 = vst.msk [vmem:[#allocation2 + $0xa1] sm:$0x1] %vm286_vm2, %v5050_v0  ;;  %v336_v17 = vld [vmem:[%s5195_s17 + $0x68] sm:$0xff]  ;;  %v339_v18 = vld [vmem:[%s5195_s17 + $0x80] sm:$0xff]  ;;  %711 = vrot.lane.b32.xlu0 %v421_v8, %s5051_s18 }
  0x22   : > { %312 = vst.msk [vmem:[#allocation2 + $0xb9] sm:$0x1] %vm286_vm2, %v5050_v0  ;;  %313 = vst.msk [vmem:[#allocation2 + $0xd1] sm:$0x1] %vm286_vm2, %v5050_v0  ;;  %v338_v19 = vld [vmem:[%s5195_s17 + $0x78] sm:$0xff]  ;;  %v341_v20 = vld [vmem:[%s5195_s17 + $0x90] sm:$0xff] }
  0x23   : > { %314 = vst.msk [vmem:[#allocation2 + $0xe9] sm:$0x1] %vm286_vm2, %v5050_v0  ;;  %315 = vst.msk [vmem:[#allocation2 + $0x101] sm:$0x1] %vm286_vm2, %v5050_v0  ;;  %v340_v21 = vld [vmem:[%s5195_s17 + $0x88] sm:$0xff]  ;;  %v343_v22 = vld [vmem:[%s5195_s17 + $0xa0] sm:$0xff] }
  0x24   : > { %316 = vst.msk [vmem:[#allocation2 + $0x119] sm:$0x1] %vm286_vm2, %v5050_v0  ;;  %317 = vst.msk [vmem:[#allocation2 + $0x131] sm:$0x1] %vm286_vm2, %v5050_v0  ;;  %v342_v23 = vld [vmem:[%s5195_s17 + $0x98] sm:$0xff]  ;;  %v345_v24 = vld [vmem:[%s5195_s17 + $0xb0] sm:$0xff] }
  0x25   : > { %318 = vst.msk [vmem:[#allocation2 + $0x149] sm:$0x1] %vm286_vm2, %v5050_v0  ;;  %319 = vst.msk [vmem:[#allocation2 + $0x161] sm:$0x1] %vm286_vm2, %v5050_v0  ;;  %v344_v28 = vld [vmem:[%s5195_s17 + $0xa8] sm:$0xff]  ;;  %v347_v29 = vld [vmem:[%s5195_s17 + $0xc0] sm:$0xff] }
  0x26   : > { %320 = vst.msk [vmem:[#allocation2 + $0x179] sm:$0x1] %vm286_vm2, %v5050_v0  ;;  %321 = vst.msk [vmem:[#allocation2 + $0x191] sm:$0x1] %vm286_vm2, %v5050_v0  ;;  %v346_v33 = vld [vmem:[%s5195_s17 + $0xb8] sm:$0xff]  ;;  %v349_v34 = vld [vmem:[%s5195_s17 + $0xd0] sm:$0xff] }
  0x27   : > { %305 = vst.msk [vmem:[#allocation2 + $0x11] sm:$0x1] %vm286_vm2, %v5050_v0  ;;  %287 = vst.msk [vmem:[#allocation2] sm:$0x1] %vm286_vm2, %v5050_v0  ;;  %v348_v35 = vld [vmem:[%s5195_s17 + $0xc8] sm:$0xff]  ;;  %v351_v36 = vld [vmem:[%s5195_s17 + $0xe0] sm:$0xff] }
  0x28   : > { %304 = vst.msk [vmem:[#allocation2 + $0x198] sm:$0x1] %vm286_vm2, %v5050_v0  ;;  %322 = vst.msk [vmem:[#allocation2 + $0x1a9] sm:$0x1] %vm286_vm2, %v5050_v0  ;;  %v350_v37 = vld [vmem:[%s5195_s17 + $0xd8] sm:$0xff]  ;;  %v352_v39 = vld [vmem:[%s5195_s17 + $0xe8] sm:$0xff] }
  0x29   : > { %356 = vst.msk [vmem:[#allocation2 + $0x19] sm:$0xff] %vm277_vm0, %v323_v1  ;;  %358 = vst.msk [vmem:[#allocation2 + $0x31] sm:$0xff] %vm277_vm0, %v325_v2  ;;  %v353_v58 = vld [vmem:[%s5195_s17 + $0xf0] sm:$0xff]  ;;  %v354_v62 = vld [vmem:[%s5195_s17 + $0xf8] sm:$0xff]  ;;  %s5058_s15 = smov 32   ;;  %vm1898_vm9 = vcmask 228352  }
  0x2a   : > { %357 = vst.msk [vmem:[#allocation2 + $0x21] sm:$0xff] %vm277_vm0, %v324_v3  ;;  %360 = vst.msk [vmem:[#allocation2 + $0x49] sm:$0xff] %vm277_vm0, %v327_v4  ;;  %v452_v0 = vld [vmem:[#allocation2 + $0x2] sm:$0xff]  ;;  %vm1931_vm10 = vcmask 261120   ;;  %vm1969_vm11 = vcmask 293888   ;;  %s4702_s14 = sshll.u32 %s5121_s28, 7 }
  0x2b   : > { %359 = vst.msk [vmem:[#allocation2 + $0x39] sm:$0xff] %vm277_vm0, %v326_v5  ;;  %362 = vst.msk [vmem:[#allocation2 + $0x61] sm:$0xff] %vm277_vm0, %v329_v6 }
  0x2c   : > { %361 = vst.msk [vmem:[#allocation2 + $0x51] sm:$0xff] %vm277_vm0, %v328_v9  ;;  %364 = vst.msk [vmem:[#allocation2 + $0x79] sm:$0xff] %vm277_vm0, %v331_v10 }
  0x2d   : > { %363 = vst.msk [vmem:[#allocation2 + $0x69] sm:$0xff] %vm277_vm0, %v330_v11  ;;  %366 = vst.msk [vmem:[#allocation2 + $0x91] sm:$0xff] %vm277_vm0, %v333_v12 }
  0x2e   : > { %365 = vst.msk [vmem:[#allocation2 + $0x81] sm:$0xff] %vm277_vm0, %v332_v13  ;;  %368 = vst.msk [vmem:[#allocation2 + $0xa9] sm:$0xff] %vm277_vm0, %v335_v14  ;;  %v453_v3 = vld [vmem:[#allocation2 + $0xa] sm:$0xff] }
  0x2f   : > { %367 = vst.msk [vmem:[#allocation2 + $0x99] sm:$0xff] %vm277_vm0, %v334_v15  ;;  %370 = vst.msk [vmem:[#allocation2 + $0xc1] sm:$0xff] %vm277_vm0, %v337_v16 }
  0x30   : > { %369 = vst.msk [vmem:[#allocation2 + $0xb1] sm:$0xff] %vm277_vm0, %v336_v17  ;;  %372 = vst.msk [vmem:[#allocation2 + $0xd9] sm:$0xff] %vm277_vm0, %v339_v18  ;;  %v5240_v25 = vld [vmem:[#allocation2 + $0x19] sm:$0xff]  ;;  %v5242_v26 = vld [vmem:[#allocation2 + $0x31] sm:$0xff] }
  0x31   : > { %371 = vst.msk [vmem:[#allocation2 + $0xc9] sm:$0xff] %vm277_vm0, %v338_v19  ;;  %374 = vst.msk [vmem:[#allocation2 + $0xf1] sm:$0xff] %vm277_vm0, %v341_v20  ;;  %713 = vrot.lane.b32.xlu1 %v5240_v25, %s5051_s18  ;;  %v5249_v27 = vld [vmem:[#allocation2 + $0x21] sm:$0xff]  ;;  %717 = vrot.lane.b32.xlu0 %v5242_v26, %s5051_s18  ;;  %v5257_v30 = vld [vmem:[#allocation2 + $0x49] sm:$0xff] }
  0x32   : > { %373 = vst.msk [vmem:[#allocation2 + $0xe1] sm:$0xff] %vm277_vm0, %v340_v21  ;;  %376 = vst.msk [vmem:[#allocation2 + $0x109] sm:$0xff] %vm277_vm0, %v343_v22  ;;  %v5261_v31 = vld [vmem:[#allocation2 + $0x39] sm:$0xff]  ;;  %v5265_v32 = vld [vmem:[#allocation2 + $0x61] sm:$0xff] }
  0x33   : > { %375 = vst.msk [vmem:[#allocation2 + $0xf9] sm:$0xff] %vm277_vm0, %v342_v23  ;;  %378 = vst.msk [vmem:[#allocation2 + $0x121] sm:$0xff] %vm277_vm0, %v345_v24  ;;  %v5277_v38 = vld [vmem:[#allocation2 + $0x51] sm:$0xff]  ;;  %v5285_v40 = vld [vmem:[#allocation2 + $0x79] sm:$0xff] }
  0x34   : > { %377 = vst.msk [vmem:[#allocation2 + $0x111] sm:$0xff] %vm277_vm0, %v344_v28  ;;  %380 = vst.msk [vmem:[#allocation2 + $0x139] sm:$0xff] %vm277_vm0, %v347_v29  ;;  %v5289_v41 = vld [vmem:[#allocation2 + $0x69] sm:$0xff]  ;;  %v5293_v42 = vld [vmem:[#allocation2 + $0x91] sm:$0xff] }
  0x35   : > { %715 = vrot.lane.b32.xlu1 %v5249_v27, %s5051_s18  ;;  %721 = vrot.lane.b32.xlu0 %v5257_v30, %s5051_s18  ;;  %379 = vst.msk [vmem:[#allocation2 + $0x129] sm:$0xff] %vm277_vm0, %v346_v33  ;;  %382 = vst.msk [vmem:[#allocation2 + $0x151] sm:$0xff] %vm277_vm0, %v349_v34  ;;  %v5297_v43 = vld [vmem:[#allocation2 + $0x81] sm:$0xff]  ;;  %v5301_v44 = vld [vmem:[#allocation2 + $0xa9] sm:$0xff] }
  0x36   : > { %381 = vst.msk [vmem:[#allocation2 + $0x141] sm:$0xff] %vm277_vm0, %v348_v35  ;;  %384 = vst.msk [vmem:[#allocation2 + $0x169] sm:$0xff] %vm277_vm0, %v351_v36  ;;  %v5305_v45 = vld [vmem:[#allocation2 + $0x99] sm:$0xff]  ;;  %v5309_v46 = vld [vmem:[#allocation2 + $0xc1] sm:$0xff] }
  0x37   : > { %383 = vst.msk [vmem:[#allocation2 + $0x159] sm:$0xff] %vm277_vm0, %v350_v37  ;;  %385 = vst.msk [vmem:[#allocation2 + $0x171] sm:$0xff] %vm277_vm0, %v352_v39  ;;  %v5313_v47 = vld [vmem:[#allocation2 + $0xb1] sm:$0xff]  ;;  %v5317_v48 = vld [vmem:[#allocation2 + $0xd9] sm:$0xff] }
  0x38   : > { %v5321_v49 = vld [vmem:[#allocation2 + $0xc9] sm:$0xff]  ;;  %v5325_v50 = vld [vmem:[#allocation2 + $0xf1] sm:$0xff]  ;;  %386 = vst.msk [vmem:[#allocation2 + $0x181] sm:$0xff] %vm277_vm0, %v353_v58  ;;  %387 = vst.msk [vmem:[#allocation2 + $0x189] sm:$0xff] %vm277_vm0, %v354_v62 }
  0x39   : > { %719 = vrot.lane.b32.xlu1 %v5261_v31, %s5051_s18  ;;  %725 = vrot.lane.b32.xlu0 %v5265_v32, %s5051_s18  ;;  %v5329_v51 = vld [vmem:[#allocation2 + $0xe1] sm:$0xff]  ;;  %v5333_v52 = vld [vmem:[#allocation2 + $0x109] sm:$0xff]  ;;  %v5388_v4 = vld [vmem:[#allocation2 + $0x32] sm:$0xff] }
  0x3a   : > { %v5337_v53 = vld [vmem:[#allocation2 + $0xf9] sm:$0xff]  ;;  %v5341_v54 = vld [vmem:[#allocation2 + $0x121] sm:$0xff]  ;;  %v5395_v6 = vld [vmem:[#allocation2 + $0x4a] sm:$0xff] }
  0x3b   : > { %v5345_v55 = vld [vmem:[#allocation2 + $0x111] sm:$0xff]  ;;  %v5349_v56 = vld [vmem:[#allocation2 + $0x139] sm:$0xff]  ;;  %v5391_v5 = vld [vmem:[#allocation2 + $0x22] sm:$0xff] }
  0x3c   : > { %v5353_v57 = vld [vmem:[#allocation2 + $0x129] sm:$0xff]  ;;  %v5359_v59 = vld [vmem:[#allocation2 + $0x151] sm:$0xff]  ;;  %v5382_v2 = vld [vmem:[#allocation2 + $0x1a] sm:$0xff] }
  0x3d   : > { %723 = vrot.lane.b32.xlu1 %v5277_v38, %s5051_s18  ;;  %729 = vrot.lane.b32.xlu0 %v5285_v40, %s5051_s18  ;;  %v5363_v60 = vld [vmem:[#allocation2 + $0x141] sm:$0xff]  ;;  %v5367_v61 = vld [vmem:[#allocation2 + $0x169] sm:$0xff]  ;;  %v5407_v9 = vld [vmem:[#allocation2 + $0x52] sm:$0xff] }
  0x3e   : > { %v5373_v63 = vld [vmem:[#allocation2 + $0x159] sm:$0xff]  ;;  %v5379_v1 = vld [vmem:[#allocation2 + $0x171] sm:$0xff]  ;;  %v5403_v8 = vld [vmem:[#allocation2 + $0x62] sm:$0xff] }
  0x3f   : > { %v5399_v7 = vld [vmem:[#allocation2 + $0x3a] sm:$0xff]  ;;  %v5415_v11 = vld [vmem:[#allocation2 + $0x6a] sm:$0xff]  ;;  %v5419_v12 = vld [vmem:[#allocation2 + $0x92] sm:$0xff] }
  0x40   : > { %v5411_v10 = vld [vmem:[#allocation2 + $0x7a] sm:$0xff]  ;;  %v5423_v13 = vld [vmem:[#allocation2 + $0x82] sm:$0xff]  ;;  %v5427_v14 = vld [vmem:[#allocation2 + $0xaa] sm:$0xff] }
  0x41   : > { %727 = vrot.lane.b32.xlu1 %v5289_v41, %s5051_s18  ;;  %733 = vrot.lane.b32.xlu0 %v5293_v42, %s5051_s18  ;;  %v5431_v15 = vld [vmem:[#allocation2 + $0x9a] sm:$0xff]  ;;  %v5435_v16 = vld [vmem:[#allocation2 + $0xc2] sm:$0xff]  ;;  %v5439_v17 = vld [vmem:[#allocation2 + $0xb2] sm:$0xff] }
  0x42   : > { %v5443_v18 = vld [vmem:[#allocation2 + $0xda] sm:$0xff]  ;;  %v5447_v19 = vld [vmem:[#allocation2 + $0xca] sm:$0xff]  ;;  %v5451_v20 = vld [vmem:[#allocation2 + $0xf2] sm:$0xff] }
  0x43   : > { %v5455_v21 = vld [vmem:[#allocation2 + $0xe2] sm:$0xff]  ;;  %v5459_v22 = vld [vmem:[#allocation2 + $0x10a] sm:$0xff]  ;;  %v5463_v23 = vld [vmem:[#allocation2 + $0xfa] sm:$0xff] }
  0x44   : > { %v5467_v24 = vld [vmem:[#allocation2 + $0x122] sm:$0xff]  ;;  %v5471_v28 = vld [vmem:[#allocation2 + $0x112] sm:$0xff]  ;;  %v5475_v29 = vld [vmem:[#allocation2 + $0x13a] sm:$0xff] }
  0x45   : > { %731 = vrot.lane.b32.xlu1 %v5297_v43, %s5051_s18  ;;  %737 = vrot.lane.b32.xlu0 %v5301_v44, %s5051_s18  ;;  %v5481_v34 = vld [vmem:[#allocation2 + $0x12a] sm:$0xff]  ;;  %v5485_v35 = vld [vmem:[#allocation2 + $0x152] sm:$0xff]  ;;  %v5491_v37 = vld [vmem:[#allocation2 + $0x142] sm:$0xff] }
  0x46   : > { %8325 = vst [vmem:[#allocation8_spill] sm:$0xff] %v5491_v37  ;;  %v5497_v58 = vld [vmem:[#allocation2 + $0x16a] sm:$0xff] }
  0x47   : > { %8327 = vst [vmem:[#allocation10_spill] sm:$0xff] %v5497_v58 }
  0x49   : > { %735 = vrot.lane.b32.xlu1 %v5305_v45, %s5051_s18  ;;  %741 = vrot.lane.b32.xlu0 %v5309_v46, %s5051_s18 }
  0x4d   : > { %739 = vrot.lane.b32.xlu1 %v5313_v47, %s5051_s18  ;;  %745 = vrot.lane.b32.xlu0 %v5317_v48, %s5051_s18 }
  0x51   : > { %743 = vrot.lane.b32.xlu1 %v5321_v49, %s5051_s18  ;;  %749 = vrot.lane.b32.xlu0 %v5325_v50, %s5051_s18 }
  0x55   : > { %747 = vrot.lane.b32.xlu1 %v5329_v51, %s5051_s18  ;;  %753 = vrot.lane.b32.xlu0 %v5333_v52, %s5051_s18 }
  0x59   : > { %751 = vrot.lane.b32.xlu1 %v5337_v53, %s5051_s18  ;;  %757 = vrot.lane.b32.xlu0 %v5341_v54, %s5051_s18 }
  0x5d   : > { %755 = vrot.lane.b32.xlu1 %v5345_v55, %s5051_s18  ;;  %761 = vrot.lane.b32.xlu0 %v5349_v56, %s5051_s18 }
  0x61   : > { %759 = vrot.lane.b32.xlu1 %v5353_v57, %s5051_s18  ;;  %765 = vrot.lane.b32.xlu0 %v5359_v59, %s5051_s18 }
  0x65   : > { %763 = vrot.lane.b32.xlu1 %v5363_v60, %s5051_s18  ;;  %769 = vrot.lane.b32.xlu0 %v5367_v61, %s5051_s18 }
  0x69   : > { %767 = vrot.lane.b32.xlu1 %v5373_v63, %s5051_s18  ;;  %837 = vrot.lane.b32.xlu0 %v452_v0, %s5052_s19  ;;  %v5503_v0 = vld [vmem:[#allocation2 + $0x15a] sm:$0xff] }
  0x6a   : > { %8329 = vst [vmem:[#allocation12_spill] sm:$0xff] %v5503_v0 }
  0x6d   : > { %771 = vrot.lane.b32.xlu1 %v5379_v1, %s5051_s18  ;;  %841 = vrot.lane.b32.xlu0 %v5382_v2, %s5052_s19 }
  0x71   : > { %839 = vrot.lane.b32.xlu1 %v453_v3, %s5052_s19  ;;  %845 = vrot.lane.b32.xlu0 %v5388_v4, %s5052_s19 }
  0x75   : > { %843 = vrot.lane.b32.xlu1 %v5391_v5, %s5052_s19  ;;  %849 = vrot.lane.b32.xlu0 %v5395_v6, %s5052_s19 }
  0x79   : > { %847 = vrot.lane.b32.xlu1 %v5399_v7, %s5052_s19  ;;  %853 = vrot.lane.b32.xlu0 %v5403_v8, %s5052_s19 }
  0x7d   : > { %851 = vrot.lane.b32.xlu1 %v5407_v9, %s5052_s19  ;;  %857 = vrot.lane.b32.xlu0 %v5411_v10, %s5052_s19 }
  0x81   : > { %855 = vrot.lane.b32.xlu1 %v5415_v11, %s5052_s19  ;;  %861 = vrot.lane.b32.xlu0 %v5419_v12, %s5052_s19 }
  0x85   : > { %859 = vrot.lane.b32.xlu1 %v5423_v13, %s5052_s19  ;;  %865 = vrot.lane.b32.xlu0 %v5427_v14, %s5052_s19 }
  0x89   : > { %863 = vrot.lane.b32.xlu1 %v5431_v15, %s5052_s19  ;;  %869 = vrot.lane.b32.xlu0 %v5435_v16, %s5052_s19 }
  0x8d   : > { %867 = vrot.lane.b32.xlu1 %v5439_v17, %s5052_s19  ;;  %873 = vrot.lane.b32.xlu0 %v5443_v18, %s5052_s19 }
  0x8f   : > { %v5477_v33 = vpop.permute.xlu0 %709 }
  0x90   : > { %8323 = vst [vmem:[#allocation6_spill] sm:$0xff] %v5477_v33  ;;  %v5513_v33 = vld [vmem:[#allocation2 + $0x172] sm:$0xff] }
  0x91   : > { %871 = vrot.lane.b32.xlu1 %v5447_v19, %s5052_s19  ;;  %877 = vrot.lane.b32.xlu0 %v5451_v20, %s5052_s19  ;;  %8332 = vst [vmem:[#allocation15_spill] sm:$0xff] %v5513_v33 }
  0x93   : > { %v5487_v36 = vpop.permute.xlu0 %711 }
  0x94   : > { %8324 = vst [vmem:[#allocation7_spill] sm:$0xff] %v5487_v36 }
  0x95   : > { %875 = vrot.lane.b32.xlu1 %v5455_v21, %s5052_s19  ;;  %881 = vrot.lane.b32.xlu0 %v5459_v22, %s5052_s19 }
  0x99   : > { %879 = vrot.lane.b32.xlu1 %v5463_v23, %s5052_s19  ;;  %885 = vrot.lane.b32.xlu0 %v5467_v24, %s5052_s19 }
  0x9d   : > { %883 = vrot.lane.b32.xlu1 %v5471_v28, %s5052_s19  ;;  %889 = vrot.lane.b32.xlu0 %v5475_v29, %s5052_s19 }
  0xa1   : > { %887 = vrot.lane.b32.xlu1 %v5481_v34, %s5052_s19  ;;  %893 = vrot.lane.b32.xlu0 %v5485_v35, %s5052_s19 }
  0xa3   : > { %v5495_v39 = vpop.permute.xlu1 %713  ;;  %v5499_v62 = vpop.permute.xlu0 %717 }
  0xa4   : > { %8326 = vst [vmem:[#allocation9_spill] sm:$0xff] %v5495_v39  ;;  %8328 = vst [vmem:[#allocation11_spill] sm:$0xff] %v5499_v62  ;;  %v390_v39 = vld [vmem:[#allocation2 + $0x18] sm:$0xff] }
  0xa5   : > { %891 = vrot.lane.b32.xlu1 %v5491_v37, %s5052_s19  ;;  %897 = vrot.lane.b32.xlu0 %v5497_v58, %s5052_s19  ;;  %v5522_v58 = vld [vmem:[#allocation2 + $0x30] sm:$0xff] }
  0xa6   : > { %8335 = vst [vmem:[#allocation18_spill] sm:$0xff] %v5522_v58 }
  0xa7   : > { %v5507_v3 = vpop.permute.xlu1 %715  ;;  %v5509_v36 = vpop.permute.xlu0 %721 }
  0xa8   : > { %8330 = vst [vmem:[#allocation13_spill] sm:$0xff] %v5507_v3  ;;  %8331 = vst [vmem:[#allocation14_spill] sm:$0xff] %v5509_v36  ;;  %v391_v3 = vld [vmem:[#allocation2 + $0x20] sm:$0xff] }
  0xa9   : > { %895 = vrot.lane.b32.xlu1 %v5503_v0, %s5052_s19  ;;  %965 = vrot.lane.b32.xlu0 %v390_v39, %s5053_s20  ;;  %v5531_v39 = vld [vmem:[#allocation2 + $0x48] sm:$0xff] }
  0xaa   : > { %8338 = vst [vmem:[#allocation21_spill] sm:$0xff] %v5531_v39 }
  0xab   : > { %v5516_v62 = vpop.permute.xlu1 %719  ;;  %v5518_v37 = vpop.permute.xlu0 %725 }
  0xac   : > { %8333 = vst [vmem:[#allocation16_spill] sm:$0xff] %v5516_v62  ;;  %8334 = vst [vmem:[#allocation17_spill] sm:$0xff] %v5518_v37  ;;  %v5537_v62 = vld [vmem:[#allocation2 + $0x38] sm:$0xff] }
  0xad   : > { %899 = vrot.lane.b32.xlu1 %v5513_v33, %s5052_s19  ;;  %969 = vrot.lane.b32.xlu0 %v5522_v58, %s5053_s20  ;;  %8340 = vst [vmem:[#allocation23_spill] sm:$0xff] %v5537_v62 }
  0xaf   : > { %v5526_v36 = vpop.permute.xlu1 %723  ;;  %v5528_v0 = vpop.permute.xlu0 %729 }
  0xb0   : > { %8336 = vst [vmem:[#allocation19_spill] sm:$0xff] %v5526_v36  ;;  %8337 = vst [vmem:[#allocation20_spill] sm:$0xff] %v5528_v0  ;;  %v5543_v36 = vld [vmem:[#allocation2 + $0x60] sm:$0xff]  ;;  %v5549_v0 = vld [vmem:[#allocation2 + $0x50] sm:$0xff] }
  0xb1   : > { %967 = vrot.lane.b32.xlu1 %v391_v3, %s5053_s20  ;;  %973 = vrot.lane.b32.xlu0 %v5531_v39, %s5053_s20  ;;  %8342 = vst [vmem:[#allocation25_spill] sm:$0xff] %v5543_v36  ;;  %8344 = vst [vmem:[#allocation27_spill] sm:$0xff] %v5549_v0 }
  0xb3   : > { %v5535_v37 = vpop.permute.xlu1 %727  ;;  %v5539_v33 = vpop.permute.xlu0 %733 }
  0xb4   : > { %8339 = vst [vmem:[#allocation22_spill] sm:$0xff] %v5535_v37  ;;  %8341 = vst [vmem:[#allocation24_spill] sm:$0xff] %v5539_v33  ;;  %v5555_v37 = vld [vmem:[#allocation2 + $0x78] sm:$0xff] }
  0xb5   : > { %971 = vrot.lane.b32.xlu1 %v5537_v62, %s5053_s20  ;;  %977 = vrot.lane.b32.xlu0 %v5543_v36, %s5053_s20  ;;  %8346 = vst [vmem:[#allocation29_spill] sm:$0xff] %v5555_v37  ;;  %v5561_v62 = vld [vmem:[#allocation2 + $0x68] sm:$0xff] }
  0xb6   : > { %8348 = vst [vmem:[#allocation31_spill] sm:$0xff] %v5561_v62 }
  0xb7   : > { %v5547_v3 = vpop.permute.xlu1 %731  ;;  %v5551_v58 = vpop.permute.xlu0 %737 }
  0xb8   : > { %8343 = vst [vmem:[#allocation26_spill] sm:$0xff] %v5547_v3  ;;  %8345 = vst [vmem:[#allocation28_spill] sm:$0xff] %v5551_v58  ;;  %v5567_v3 = vld [vmem:[#allocation2 + $0x90] sm:$0xff] }
  0xb9   : > { %975 = vrot.lane.b32.xlu1 %v5549_v0, %s5053_s20  ;;  %981 = vrot.lane.b32.xlu0 %v5555_v37, %s5053_s20  ;;  %8350 = vst [vmem:[#allocation33_spill] sm:$0xff] %v5567_v3  ;;  %v5573_v0 = vld [vmem:[#allocation2 + $0x80] sm:$0xff] }
  0xba   : > { %8352 = vst [vmem:[#allocation35_spill] sm:$0xff] %v5573_v0 }
  0xbb   : > { %v5559_v33 = vpop.permute.xlu1 %735  ;;  %v5563_v39 = vpop.permute.xlu0 %741 }
  0xbc   : > { %8347 = vst [vmem:[#allocation30_spill] sm:$0xff] %v5559_v33  ;;  %8349 = vst [vmem:[#allocation32_spill] sm:$0xff] %v5563_v39  ;;  %v5579_v33 = vld [vmem:[#allocation2 + $0xa8] sm:$0xff] }
  0xbd   : > { %979 = vrot.lane.b32.xlu1 %v5561_v62, %s5053_s20  ;;  %985 = vrot.lane.b32.xlu0 %v5567_v3, %s5053_s20  ;;  %8354 = vst [vmem:[#allocation37_spill] sm:$0xff] %v5579_v33  ;;  %v5585_v62 = vld [vmem:[#allocation2 + $0x98] sm:$0xff] }
  0xbe   : > { %8356 = vst [vmem:[#allocation39_spill] sm:$0xff] %v5585_v62 }
  0xbf   : > { %v5571_v58 = vpop.permute.xlu1 %739  ;;  %v5575_v36 = vpop.permute.xlu0 %745 }
  0xc0   : > { %8351 = vst [vmem:[#allocation34_spill] sm:$0xff] %v5571_v58  ;;  %8353 = vst [vmem:[#allocation36_spill] sm:$0xff] %v5575_v36  ;;  %v5591_v58 = vld [vmem:[#allocation2 + $0xc0] sm:$0xff] }
  0xc1   : > { %983 = vrot.lane.b32.xlu1 %v5573_v0, %s5053_s20  ;;  %989 = vrot.lane.b32.xlu0 %v5579_v33, %s5053_s20  ;;  %8358 = vst [vmem:[#allocation41_spill] sm:$0xff] %v5591_v58  ;;  %v5597_v0 = vld [vmem:[#allocation2 + $0xb0] sm:$0xff] }
  0xc2   : > { %8360 = vst [vmem:[#allocation43_spill] sm:$0xff] %v5597_v0 }
  0xc3   : > { %v5583_v39 = vpop.permute.xlu1 %743  ;;  %v5587_v37 = vpop.permute.xlu0 %749 }
  0xc4   : > { %8355 = vst [vmem:[#allocation38_spill] sm:$0xff] %v5583_v39  ;;  %8357 = vst [vmem:[#allocation40_spill] sm:$0xff] %v5587_v37  ;;  %v5603_v39 = vld [vmem:[#allocation2 + $0xd8] sm:$0xff] }
  0xc5   : > { %987 = vrot.lane.b32.xlu1 %v5585_v62, %s5053_s20  ;;  %993 = vrot.lane.b32.xlu0 %v5591_v58, %s5053_s20  ;;  %8362 = vst [vmem:[#allocation45_spill] sm:$0xff] %v5603_v39  ;;  %v5609_v62 = vld [vmem:[#allocation2 + $0xc8] sm:$0xff] }
  0xc6   : > { %8364 = vst [vmem:[#allocation47_spill] sm:$0xff] %v5609_v62 }
  0xc7   : > { %v5595_v36 = vpop.permute.xlu1 %747  ;;  %v5599_v3 = vpop.permute.xlu0 %753 }
  0xc8   : > { %8359 = vst [vmem:[#allocation42_spill] sm:$0xff] %v5595_v36  ;;  %8361 = vst [vmem:[#allocation44_spill] sm:$0xff] %v5599_v3  ;;  %v5615_v36 = vld [vmem:[#allocation2 + $0xf0] sm:$0xff] }
  0xc9   : > { %991 = vrot.lane.b32.xlu1 %v5597_v0, %s5053_s20  ;;  %997 = vrot.lane.b32.xlu0 %v5603_v39, %s5053_s20  ;;  %8366 = vst [vmem:[#allocation49_spill] sm:$0xff] %v5615_v36  ;;  %v5621_v0 = vld [vmem:[#allocation2 + $0xe0] sm:$0xff] }
  0xca   : > { %8368 = vst [vmem:[#allocation51_spill] sm:$0xff] %v5621_v0 }
  0xcb   : > { %v5607_v37 = vpop.permute.xlu1 %751  ;;  %v5611_v33 = vpop.permute.xlu0 %757 }
  0xcc   : > { %8363 = vst [vmem:[#allocation46_spill] sm:$0xff] %v5607_v37  ;;  %8365 = vst [vmem:[#allocation48_spill] sm:$0xff] %v5611_v33  ;;  %v5627_v37 = vld [vmem:[#allocation2 + $0x108] sm:$0xff] }
  0xcd   : > { %995 = vrot.lane.b32.xlu1 %v5609_v62, %s5053_s20  ;;  %1001 = vrot.lane.b32.xlu0 %v5615_v36, %s5053_s20  ;;  %8370 = vst [vmem:[#allocation53_spill] sm:$0xff] %v5627_v37  ;;  %v5633_v62 = vld [vmem:[#allocation2 + $0xf8] sm:$0xff] }
  0xce   : > { %8372 = vst [vmem:[#allocation55_spill] sm:$0xff] %v5633_v62 }
  0xcf   : > { %v5619_v3 = vpop.permute.xlu1 %755  ;;  %v5623_v58 = vpop.permute.xlu0 %761 }
  0xd0   : > { %8367 = vst [vmem:[#allocation50_spill] sm:$0xff] %v5619_v3  ;;  %8369 = vst [vmem:[#allocation52_spill] sm:$0xff] %v5623_v58  ;;  %v5639_v3 = vld [vmem:[#allocation2 + $0x120] sm:$0xff] }
  0xd1   : > { %999 = vrot.lane.b32.xlu1 %v5621_v0, %s5053_s20  ;;  %1005 = vrot.lane.b32.xlu0 %v5627_v37, %s5053_s20  ;;  %8374 = vst [vmem:[#allocation57_spill] sm:$0xff] %v5639_v3  ;;  %v5645_v0 = vld [vmem:[#allocation2 + $0x110] sm:$0xff] }
  0xd2   : > { %8376 = vst [vmem:[#allocation59_spill] sm:$0xff] %v5645_v0 }
  0xd3   : > { %v5631_v33 = vpop.permute.xlu1 %759  ;;  %v5635_v39 = vpop.permute.xlu0 %765 }
  0xd4   : > { %8371 = vst [vmem:[#allocation54_spill] sm:$0xff] %v5631_v33  ;;  %8373 = vst [vmem:[#allocation56_spill] sm:$0xff] %v5635_v39  ;;  %v5651_v33 = vld [vmem:[#allocation2 + $0x138] sm:$0xff] }
  0xd5   : > { %1003 = vrot.lane.b32.xlu1 %v5633_v62, %s5053_s20  ;;  %1009 = vrot.lane.b32.xlu0 %v5639_v3, %s5053_s20  ;;  %8378 = vst [vmem:[#allocation61_spill] sm:$0xff] %v5651_v33  ;;  %v5657_v62 = vld [vmem:[#allocation2 + $0x128] sm:$0xff] }
  0xd6   : > { %8380 = vst [vmem:[#allocation63_spill] sm:$0xff] %v5657_v62 }
  0xd7   : > { %v5643_v58 = vpop.permute.xlu1 %763  ;;  %v5647_v36 = vpop.permute.xlu0 %769 }
  0xd8   : > { %8375 = vst [vmem:[#allocation58_spill] sm:$0xff] %v5643_v58  ;;  %8377 = vst [vmem:[#allocation60_spill] sm:$0xff] %v5647_v36  ;;  %v5663_v58 = vld [vmem:[#allocation2 + $0x150] sm:$0xff] }
  0xd9   : > { %1007 = vrot.lane.b32.xlu1 %v5645_v0, %s5053_s20  ;;  %1013 = vrot.lane.b32.xlu0 %v5651_v33, %s5053_s20  ;;  %8382 = vst [vmem:[#allocation65_spill] sm:$0xff] %v5663_v58  ;;  %v5669_v0 = vld [vmem:[#allocation2 + $0x140] sm:$0xff] }
  0xda   : > { %8384 = vst [vmem:[#allocation67_spill] sm:$0xff] %v5669_v0  ;;  %v5683_v33 = vld [vmem:[#allocation2 + $0x180] sm:$0xff] }
  0xdb   : > { %v5655_v39 = vpop.permute.xlu1 %767  ;;  %v5659_v37 = vpop.permute.xlu0 %837 }
  0xdc   : > { %8379 = vst [vmem:[#allocation62_spill] sm:$0xff] %v5655_v39  ;;  %8381 = vst [vmem:[#allocation64_spill] sm:$0xff] %v5659_v37  ;;  %v5675_v39 = vld [vmem:[#allocation2 + $0x168] sm:$0xff] }
  0xdd   : > { %1011 = vrot.lane.b32.xlu1 %v5657_v62, %s5053_s20  ;;  %1017 = vrot.lane.b32.xlu0 %v5663_v58, %s5053_s20  ;;  %v5681_v62 = vld [vmem:[#allocation2 + $0x158] sm:$0xff] }
  0xde   : > { %8387 = vst [vmem:[#allocation70_spill] sm:$0xff] %v5681_v62 }
  0xdf   : > { %v5667_v36 = vpop.permute.xlu1 %771  ;;  %v5671_v3 = vpop.permute.xlu0 %841 }
  0xe0   : > { %8383 = vst [vmem:[#allocation66_spill] sm:$0xff] %v5667_v36  ;;  %8385 = vst [vmem:[#allocation68_spill] sm:$0xff] %v5671_v3  ;;  %v5693_v3 = vld [vmem:[#allocation2 + $0x170] sm:$0xff] }
  0xe1   : > { %1015 = vrot.lane.b32.xlu1 %v5669_v0, %s5053_s20  ;;  %1021 = vrot.lane.b32.xlu0 %v5675_v39, %s5053_s20 }
  0xe3   : > { %v5679_v37 = vpop.permute.xlu1 %839  ;;  %v5685_v58 = vpop.permute.xlu0 %845 }
  0xe4   : > { %8386 = vst [vmem:[#allocation69_spill] sm:$0xff] %v5679_v37  ;;  %8388 = vst [vmem:[#allocation71_spill] sm:$0xff] %v5685_v58  ;;  %v5699_v37 = vld [vmem:[#allocation2 + $0x188] sm:$0xff] }
  0xe5   : > { %1019 = vrot.lane.b32.xlu1 %v5681_v62, %s5053_s20  ;;  %1025 = vrot.lane.b32.xlu0 %v5683_v33, %s5053_s20 }
  0xe7   : > { %v5691_v36 = vpop.permute.xlu1 %843  ;;  %v5695_v0 = vpop.permute.xlu0 %849 }
  0xe8   : > { %8389 = vst [vmem:[#allocation72_spill] sm:$0xff] %v5691_v36  ;;  %8390 = vst [vmem:[#allocation73_spill] sm:$0xff] %v5695_v0 }
  0xe9   : > { %1023 = vrot.lane.b32.xlu1 %v5693_v3, %s5053_s20  ;;  %1093 = vrot.lane.b32.xlu0 %v5240_v25, %s5054_s21 }
  0xeb   : > { %v5703_v58 = vpop.permute.xlu1 %847  ;;  %v5705_v62 = vpop.permute.xlu0 %853 }
  0xec   : > { %8391 = vst [vmem:[#allocation74_spill] sm:$0xff] %v5703_v58  ;;  %8392 = vst [vmem:[#allocation75_spill] sm:$0xff] %v5705_v62 }
  0xed   : > { %1027 = vrot.lane.b32.xlu1 %v5699_v37, %s5053_s20  ;;  %1097 = vrot.lane.b32.xlu0 %v5242_v26, %s5054_s21 }
  0xef   : > { %v5711_v0 = vpop.permute.xlu1 %851  ;;  %v5713_v36 = vpop.permute.xlu0 %857 }
  0xf1   : > { %1095 = vrot.lane.b32.xlu1 %v5249_v27, %s5054_s21  ;;  %1101 = vrot.lane.b32.xlu0 %v5257_v30, %s5054_s21 }
  0xf3   : > { %v5719_v25 = vpop.permute.xlu1 %855  ;;  %v5721_v58 = vpop.permute.xlu0 %861 }
  0xf4   : > { %8393 = vst [vmem:[#allocation76_spill] sm:$0xff] %v5721_v58 }
  0xf5   : > { %1099 = vrot.lane.b32.xlu1 %v5261_v31, %s5054_s21  ;;  %1105 = vrot.lane.b32.xlu0 %v5265_v32, %s5054_s21 }
  0xf7   : > { %v5727_v26 = vpop.permute.xlu1 %859  ;;  %v5729_v62 = vpop.permute.xlu0 %865 }
  0xf8   : > { %8394 = vst [vmem:[#allocation77_spill] sm:$0xff] %v5727_v26  ;;  %8395 = vst [vmem:[#allocation78_spill] sm:$0xff] %v5729_v62  ;;  %v651_v62 = vld [vmem:[#allocation2 + $0x7a] sm:$0xff] }
  0xf9   : > { %1103 = vrot.lane.b32.xlu1 %v5277_v38, %s5054_s21  ;;  %1109 = vrot.lane.b32.xlu0 %v5285_v40, %s5054_s21 }
  0xfb   : > { %v5735_v27 = vpop.permute.xlu1 %863  ;;  %v5737_v30 = vpop.permute.xlu0 %869 }
  0xfc   : > { %8396 = vst [vmem:[#allocation79_spill] sm:$0xff] %v5735_v27  ;;  %8397 = vst [vmem:[#allocation80_spill] sm:$0xff] %v5737_v30  ;;  %v653_v27 = vld [vmem:[#allocation2 + $0x92] sm:$0xff] }
  0xfd   : > { %1107 = vrot.lane.b32.xlu1 %v5289_v41, %s5054_s21  ;;  %1113 = vrot.lane.b32.xlu0 %v5293_v42, %s5054_s21 }
  0xff   : > { %v5743_v31 = vpop.permute.xlu1 %867  ;;  %v5745_v32 = vpop.permute.xlu0 %873 }
 0x100   : > { %8398 = vst [vmem:[#allocation81_spill] sm:$0xff] %v5743_v31  ;;  %8399 = vst [vmem:[#allocation82_spill] sm:$0xff] %v5745_v32  ;;  %v625_v31 = vld [vmem:[#allocation2 + $0xc1] sm:$0xff] }
 0x101   : > { %1111 = vrot.lane.b32.xlu1 %v5297_v43, %s5054_s21  ;;  %1117 = vrot.lane.b32.xlu0 %v5301_v44, %s5054_s21 }
 0x103   : > { %v5751_v38 = vpop.permute.xlu1 %871  ;;  %v5753_v40 = vpop.permute.xlu0 %877 }
 0x104   : > { %8400 = vst [vmem:[#allocation83_spill] sm:$0xff] %v5751_v38  ;;  %8401 = vst [vmem:[#allocation84_spill] sm:$0xff] %v5753_v40  ;;  %v8460_v40 = vld [vmem:[#allocation43_spill] sm:$0xff]  ;;  %v619_v38 = vld [vmem:[#allocation2 + $0x79] sm:$0xff] }
 0x105   : > { %1115 = vrot.lane.b32.xlu1 %v5305_v45, %s5054_s21  ;;  %1121 = vrot.lane.b32.xlu0 %v5309_v46, %s5054_s21 }
 0x107   : > { %v5759_v41 = vpop.permute.xlu1 %875  ;;  %v5761_v42 = vpop.permute.xlu0 %881 }
 0x108   : > { %8402 = vst [vmem:[#allocation85_spill] sm:$0xff] %v5759_v41  ;;  %8403 = vst [vmem:[#allocation86_spill] sm:$0xff] %v5761_v42  ;;  %v8452_v42 = vld [vmem:[#allocation35_spill] sm:$0xff] }
 0x109   : > { %1119 = vrot.lane.b32.xlu1 %v5313_v47, %s5054_s21  ;;  %1125 = vrot.lane.b32.xlu0 %v5317_v48, %s5054_s21 }
 0x10b   : > { %v5767_v43 = vpop.permute.xlu1 %879  ;;  %v5769_v44 = vpop.permute.xlu0 %885 }
 0x10c   : > { %8404 = vst [vmem:[#allocation87_spill] sm:$0xff] %v5767_v43  ;;  %8405 = vst [vmem:[#allocation88_spill] sm:$0xff] %v5769_v44  ;;  %v8445_v44 = vld [vmem:[#allocation29_spill] sm:$0xff] }
 0x10d   : > { %1123 = vrot.lane.b32.xlu1 %v5321_v49, %s5054_s21  ;;  %1129 = vrot.lane.b32.xlu0 %v5325_v50, %s5054_s21 }
 0x10f   : > { %v5775_v45 = vpop.permute.xlu1 %883  ;;  %v5777_v46 = vpop.permute.xlu0 %889 }
 0x110   : > { %8406 = vst [vmem:[#allocation89_spill] sm:$0xff] %v5775_v45  ;;  %8407 = vst [vmem:[#allocation90_spill] sm:$0xff] %v5777_v46 }
 0x111   : > { %1127 = vrot.lane.b32.xlu1 %v5329_v51, %s5054_s21  ;;  %1133 = vrot.lane.b32.xlu0 %v5333_v52, %s5054_s21 }
 0x113   : > { %v5783_v47 = vpop.permute.xlu1 %887  ;;  %v5785_v48 = vpop.permute.xlu0 %893 }
 0x114   : > { %8408 = vst [vmem:[#allocation91_spill] sm:$0xff] %v5783_v47  ;;  %8409 = vst [vmem:[#allocation92_spill] sm:$0xff] %v5785_v48  ;;  %v8442_v47 = vld [vmem:[#allocation25_spill] sm:$0xff] }
 0x115   : > { %1131 = vrot.lane.b32.xlu1 %v5337_v53, %s5054_s21  ;;  %1137 = vrot.lane.b32.xlu0 %v5341_v54, %s5054_s21 }
 0x117   : > { %v5791_v49 = vpop.permute.xlu1 %891  ;;  %v5793_v50 = vpop.permute.xlu0 %897 }
 0x118   : > { %8410 = vst [vmem:[#allocation93_spill] sm:$0xff] %v5791_v49  ;;  %8411 = vst [vmem:[#allocation94_spill] sm:$0xff] %v5793_v50 }
 0x119   : > { %1135 = vrot.lane.b32.xlu1 %v5345_v55, %s5054_s21  ;;  %1141 = vrot.lane.b32.xlu0 %v5349_v56, %s5054_s21  ;;  %v5817_v56 = vld [vmem:[#allocation2 + $0x181] sm:$0xff] }
 0x11b   : > { %v5799_v51 = vpop.permute.xlu1 %895  ;;  %v5801_v52 = vpop.permute.xlu0 %965 }
 0x11c   : > { %8412 = vst [vmem:[#allocation95_spill] sm:$0xff] %v5799_v51 }
 0x11d   : > { %1139 = vrot.lane.b32.xlu1 %v5353_v57, %s5054_s21  ;;  %1145 = vrot.lane.b32.xlu0 %v5359_v59, %s5054_s21 }
 0x11f   : > { %v5807_v53 = vpop.permute.xlu1 %899  ;;  %v5809_v54 = vpop.permute.xlu0 %969 }
 0x120   : > { %8413 = vst [vmem:[#allocation96_spill] sm:$0xff] %v5807_v53 }
 0x121   : > { %1143 = vrot.lane.b32.xlu1 %v5363_v60, %s5054_s21  ;;  %1149 = vrot.lane.b32.xlu0 %v5367_v61, %s5054_s21  ;;  %v5831_v60 = vld [vmem:[#allocation2 + $0x189] sm:$0xff] }
 0x123   : > { %v5815_v55 = vpop.permute.xlu1 %967  ;;  %v5819_v50 = vpop.permute.xlu0 %973 }
 0x125   : > { %1147 = vrot.lane.b32.xlu1 %v5373_v63, %s5054_s21  ;;  %1153 = vrot.lane.b32.xlu0 %v5817_v56, %s5054_s21 }
 0x127   : > { %v5825_v57 = vpop.permute.xlu1 %971  ;;  %v5827_v59 = vpop.permute.xlu0 %977 }
 0x129   : > { %1151 = vrot.lane.b32.xlu1 %v5379_v1, %s5054_s21  ;;  %1221 = vrot.lane.b32.xlu0 %v5382_v2, %s5055_s22 }
 0x12b   : > { %v5835_v61 = vpop.permute.xlu1 %975  ;;  %v5837_v53 = vpop.permute.xlu0 %981 }
 0x12d   : > { %1155 = vrot.lane.b32.xlu1 %v5831_v60, %s5054_s21  ;;  %1225 = vrot.lane.b32.xlu0 %v5388_v4, %s5055_s22 }
 0x12f   : > { %v5843_v63 = vpop.permute.xlu1 %979  ;;  %v5845_v51 = vpop.permute.xlu0 %985 }
 0x131   : > { %1223 = vrot.lane.b32.xlu1 %v5391_v5, %s5055_s22  ;;  %1229 = vrot.lane.b32.xlu0 %v5395_v6, %s5055_s22 }
 0x133   : > { %v5851_v1 = vpop.permute.xlu1 %983  ;;  %v5853_v2 = vpop.permute.xlu0 %989 }
 0x134   : > { %8414 = vst [vmem:[#allocation97_spill] sm:$0xff] %v5853_v2 }
 0x135   : > { %1227 = vrot.lane.b32.xlu1 %v5399_v7, %s5055_s22  ;;  %1233 = vrot.lane.b32.xlu0 %v5403_v8, %s5055_s22 }
 0x137   : > { %v5859_v4 = vpop.permute.xlu1 %987  ;;  %v5861_v48 = vpop.permute.xlu0 %993 }
 0x138   : > { %8415 = vst [vmem:[#allocation98_spill] sm:$0xff] %v5859_v4  ;;  %8416 = vst [vmem:[#allocation99_spill] sm:$0xff] %v5861_v48  ;;  %v649_v48 = vld [vmem:[#allocation2 + $0x62] sm:$0xff] }
 0x139   : > { %1231 = vrot.lane.b32.xlu1 %v5407_v9, %s5055_s22  ;;  %1237 = vrot.lane.b32.xlu0 %v5411_v10, %s5055_s22 }
 0x13b   : > { %v5867_v5 = vpop.permute.xlu1 %991  ;;  %v5869_v6 = vpop.permute.xlu0 %997 }
 0x13c   : > { %8417 = vst [vmem:[#allocation100_spill] sm:$0xff] %v5867_v5  ;;  %8418 = vst [vmem:[#allocation101_spill] sm:$0xff] %v5869_v6 }
 0x13d   : > { %1235 = vrot.lane.b32.xlu1 %v5415_v11, %s5055_s22  ;;  %1241 = vrot.lane.b32.xlu0 %v5419_v12, %s5055_s22 }
 0x13f   : > { %v5875_v7 = vpop.permute.xlu1 %995  ;;  %v5877_v8 = vpop.permute.xlu0 %1001 }
 0x140   : > { %8419 = vst [vmem:[#allocation102_spill] sm:$0xff] %v5875_v7  ;;  %8420 = vst [vmem:[#allocation103_spill] sm:$0xff] %v5877_v8  ;;  %v623_v7 = vld [vmem:[#allocation2 + $0xa9] sm:$0xff] }
 0x141   : > { %1239 = vrot.lane.b32.xlu1 %v5423_v13, %s5055_s22  ;;  %1245 = vrot.lane.b32.xlu0 %v5427_v14, %s5055_s22 }
 0x143   : > { %v5883_v9 = vpop.permute.xlu1 %999  ;;  %v5885_v10 = vpop.permute.xlu0 %1005 }
 0x144   : > { %8421 = vst [vmem:[#allocation104_spill] sm:$0xff] %v5883_v9  ;;  %8422 = vst [vmem:[#allocation105_spill] sm:$0xff] %v5885_v10  ;;  %v8456_v10 = vld [vmem:[#allocation39_spill] sm:$0xff] }
 0x145   : > { %1243 = vrot.lane.b32.xlu1 %v5431_v15, %s5055_s22  ;;  %1249 = vrot.lane.b32.xlu0 %v5435_v16, %s5055_s22  ;;  %v617_v9 = vld [vmem:[#allocation2 + $0x61] sm:$0xff] }
 0x147   : > { %v5891_v11 = vpop.permute.xlu1 %1003  ;;  %v5893_v12 = vpop.permute.xlu0 %1009 }
 0x148   : > { %8423 = vst [vmem:[#allocation106_spill] sm:$0xff] %v5891_v11  ;;  %8424 = vst [vmem:[#allocation107_spill] sm:$0xff] %v5893_v12  ;;  %v8448_v12 = vld [vmem:[#allocation31_spill] sm:$0xff] }
 0x149   : > { %1247 = vrot.lane.b32.xlu1 %v5439_v17, %s5055_s22  ;;  %1253 = vrot.lane.b32.xlu0 %v5443_v18, %s5055_s22 }
 0x14b   : > { %v5899_v13 = vpop.permute.xlu1 %1007  ;;  %v5901_v14 = vpop.permute.xlu0 %1013 }
 0x14c   : > { %8425 = vst [vmem:[#allocation108_spill] sm:$0xff] %v5899_v13  ;;  %8426 = vst [vmem:[#allocation109_spill] sm:$0xff] %v5901_v14 }
 0x14d   : > { %1251 = vrot.lane.b32.xlu1 %v5447_v19, %s5055_s22  ;;  %1257 = vrot.lane.b32.xlu0 %v5451_v20, %s5055_s22 }
 0x14f   : > { %v5907_v15 = vpop.permute.xlu1 %1011  ;;  %v5909_v16 = vpop.permute.xlu0 %1017 }
 0x150   : > { %8427 = vst [vmem:[#allocation110_spill] sm:$0xff] %v5907_v15  ;;  %8428 = vst [vmem:[#allocation111_spill] sm:$0xff] %v5909_v16  ;;  %v8444_v15 = vld [vmem:[#allocation27_spill] sm:$0xff] }
 0x151   : > { %1255 = vrot.lane.b32.xlu1 %v5455_v21, %s5055_s22  ;;  %1261 = vrot.lane.b32.xlu0 %v5459_v22, %s5055_s22 }
 0x153   : > { %v5915_v17 = vpop.permute.xlu1 %1015  ;;  %v5917_v18 = vpop.permute.xlu0 %1021 }
 0x154   : > { %8429 = vst [vmem:[#allocation112_spill] sm:$0xff] %v5915_v17  ;;  %8430 = vst [vmem:[#allocation113_spill] sm:$0xff] %v5917_v18 }
 0x155   : > { %1259 = vrot.lane.b32.xlu1 %v5463_v23, %s5055_s22  ;;  %1265 = vrot.lane.b32.xlu0 %v5467_v24, %s5055_s22 }
 0x157   : > { %v5923_v19 = vpop.permute.xlu1 %1019  ;;  %v5925_v20 = vpop.permute.xlu0 %1025 }
 0x158   : > { %8431 = vst [vmem:[#allocation114_spill] sm:$0xff] %v5923_v19  ;;  %8432 = vst [vmem:[#allocation115_spill] sm:$0xff] %v5925_v20  ;;  %v8435_v20 = vld [vmem:[#allocation8_spill] sm:$0xff]  ;;  %v8439_v19 = vld [vmem:[#allocation18_spill] sm:$0xff] }
 0x159   : > { %1263 = vrot.lane.b32.xlu1 %v5471_v28, %s5055_s22  ;;  %1269 = vrot.lane.b32.xlu0 %v5475_v29, %s5055_s22  ;;  %v8436_v28 = vld [vmem:[#allocation10_spill] sm:$0xff] }
 0x15b   : > { %v5931_v21 = vpop.permute.xlu1 %1023  ;;  %v5933_v22 = vpop.permute.xlu0 %1093 }
 0x15c   : > { %8433 = vst [vmem:[#allocation116_spill] sm:$0xff] %v5931_v21  ;;  %v5949_v21 = vld [vmem:[#allocation2 + $0x182] sm:$0xff] }
 0x15d   : > { %1267 = vrot.lane.b32.xlu1 %v5481_v34, %s5055_s22  ;;  %1273 = vrot.lane.b32.xlu0 %v5485_v35, %s5055_s22  ;;  %v8437_v34 = vld [vmem:[#allocation12_spill] sm:$0xff] }
 0x15f   : > { %v5939_v23 = vpop.permute.xlu1 %1027  ;;  %v5941_v24 = vpop.permute.xlu0 %1097 }
 0x160   : > { %8434 = vst [vmem:[#allocation117_spill] sm:$0xff] %v5939_v23 }
 0x161   : > { %1271 = vrot.lane.b32.xlu1 %v8435_v20, %s5055_s22  ;;  %1277 = vrot.lane.b32.xlu0 %v8436_v28, %s5055_s22  ;;  %v8438_v20 = vld [vmem:[#allocation15_spill] sm:$0xff] }
 0x162   : > { %v5963_v28 = vld [vmem:[#allocation2 + $0x18a] sm:$0xff] }
 0x163   : > { %v5947_v29 = vpop.permute.xlu1 %1095  ;;  %v5951_v18 = vpop.permute.xlu0 %1101 }
 0x165   : > { %1275 = vrot.lane.b32.xlu1 %v8437_v34, %s5055_s22  ;;  %1281 = vrot.lane.b32.xlu0 %v5949_v21, %s5055_s22  ;;  %v8440_v34 = vld [vmem:[#allocation21_spill] sm:$0xff] }
 0x167   : > { %v5957_v35 = vpop.permute.xlu1 %1099  ;;  %v5959_v23 = vpop.permute.xlu0 %1105 }
 0x169   : > { %1279 = vrot.lane.b32.xlu1 %v8438_v20, %s5055_s22  ;;  %1349 = vrot.lane.b32.xlu0 %v8439_v19, %s5056_s23  ;;  %v8441_v20 = vld [vmem:[#allocation23_spill] sm:$0xff] }
 0x16b   : > { %v5967_v49 = vpop.permute.xlu1 %1103  ;;  %v5969_v16 = vpop.permute.xlu0 %1109 }
 0x16d   : > { %1283 = vrot.lane.b32.xlu1 %v5963_v28, %s5055_s22  ;;  %1353 = vrot.lane.b32.xlu0 %v8440_v34, %s5056_s23 }
 0x16f   : > { %v5975_v17 = vpop.permute.xlu1 %1107  ;;  %v5977_v46 = vpop.permute.xlu0 %1113 }
 0x171   : > { %1351 = vrot.lane.b32.xlu1 %v8441_v20, %s5056_s23  ;;  %1357 = vrot.lane.b32.xlu0 %v8442_v47, %s5056_s23  ;;  %v8449_v20 = vld [vmem:[#allocation33_spill] sm:$0xff] }
 0x173   : > { %v5983_v19 = vpop.permute.xlu1 %1111  ;;  %v5985_v14 = vpop.permute.xlu0 %1117 }
 0x174   : > { %8443 = vst [vmem:[#allocation8_spill] sm:$0xff] %v5985_v14  ;;  %v655_v14 = vld [vmem:[#allocation2 + $0xaa] sm:$0xff] }
 0x175   : > { %1355 = vrot.lane.b32.xlu1 %v8444_v15, %s5056_s23  ;;  %1361 = vrot.lane.b32.xlu0 %v8445_v44, %s5056_s23  ;;  %v8453_v15 = vld [vmem:[#allocation37_spill] sm:$0xff] }
 0x177   : > { %v5991_v34 = vpop.permute.xlu1 %1115  ;;  %v5993_v45 = vpop.permute.xlu0 %1121 }
 0x178   : > { %8446 = vst [vmem:[#allocation10_spill] sm:$0xff] %v5991_v34  ;;  %8447 = vst [vmem:[#allocation12_spill] sm:$0xff] %v5993_v45 }
 0x179   : > { %1359 = vrot.lane.b32.xlu1 %v8448_v12, %s5056_s23  ;;  %1365 = vrot.lane.b32.xlu0 %v8449_v20, %s5056_s23  ;;  %v8457_v12 = vld [vmem:[#allocation41_spill] sm:$0xff] }
 0x17b   : > { %v5999_v47 = vpop.permute.xlu1 %1119  ;;  %v6001_v13 = vpop.permute.xlu0 %1125 }
 0x17c   : > { %8450 = vst [vmem:[#allocation15_spill] sm:$0xff] %v5999_v47  ;;  %8451 = vst [vmem:[#allocation18_spill] sm:$0xff] %v6001_v13 }
 0x17d   : > { %1363 = vrot.lane.b32.xlu1 %v8452_v42, %s5056_s23  ;;  %1369 = vrot.lane.b32.xlu0 %v8453_v15, %s5056_s23  ;;  %v8461_v42 = vld [vmem:[#allocation45_spill] sm:$0xff] }
 0x17f   : > { %v6007_v44 = vpop.permute.xlu1 %1123  ;;  %v6009_v43 = vpop.permute.xlu0 %1129 }
 0x180   : > { %8454 = vst [vmem:[#allocation21_spill] sm:$0xff] %v6007_v44  ;;  %8455 = vst [vmem:[#allocation23_spill] sm:$0xff] %v6009_v43  ;;  %v8464_v43 = vld [vmem:[#allocation47_spill] sm:$0xff]  ;;  %v621_v44 = vld [vmem:[#allocation2 + $0x91] sm:$0xff] }
 0x181   : > { %1367 = vrot.lane.b32.xlu1 %v8456_v10, %s5056_s23  ;;  %1373 = vrot.lane.b32.xlu0 %v8457_v12, %s5056_s23  ;;  %v8465_v10 = vld [vmem:[#allocation49_spill] sm:$0xff] }
 0x183   : > { %v6015_v20 = vpop.permute.xlu1 %1127  ;;  %v6017_v11 = vpop.permute.xlu0 %1133 }
 0x184   : > { %8458 = vst [vmem:[#allocation25_spill] sm:$0xff] %v6015_v20  ;;  %8459 = vst [vmem:[#allocation27_spill] sm:$0xff] %v6017_v11  ;;  %v8468_v11 = vld [vmem:[#allocation51_spill] sm:$0xff] }
 0x185   : > { %1371 = vrot.lane.b32.xlu1 %v8460_v40, %s5056_s23  ;;  %1377 = vrot.lane.b32.xlu0 %v8461_v42, %s5056_s23  ;;  %v8469_v40 = vld [vmem:[#allocation53_spill] sm:$0xff] }
 0x187   : > { %v6023_v15 = vpop.permute.xlu1 %1131  ;;  %v6025_v41 = vpop.permute.xlu0 %1137 }
 0x188   : > { %8462 = vst [vmem:[#allocation29_spill] sm:$0xff] %v6023_v15  ;;  %8463 = vst [vmem:[#allocation31_spill] sm:$0xff] %v6025_v41  ;;  %v8472_v41 = vld [vmem:[#allocation55_spill] sm:$0xff] }
 0x189   : > { %1375 = vrot.lane.b32.xlu1 %v8464_v43, %s5056_s23  ;;  %1381 = vrot.lane.b32.xlu0 %v8465_v10, %s5056_s23  ;;  %v8473_v43 = vld [vmem:[#allocation57_spill] sm:$0xff] }
 0x18b   : > { %v6031_v12 = vpop.permute.xlu1 %1135  ;;  %v6033_v20 = vpop.permute.xlu0 %1141 }
 0x18c   : > { %8466 = vst [vmem:[#allocation33_spill] sm:$0xff] %v6031_v12  ;;  %8467 = vst [vmem:[#allocation35_spill] sm:$0xff] %v6033_v20  ;;  %v8476_v20 = vld [vmem:[#allocation59_spill] sm:$0xff] }
 0x18d   : > { %1379 = vrot.lane.b32.xlu1 %v8468_v11, %s5056_s23  ;;  %1385 = vrot.lane.b32.xlu0 %v8469_v40, %s5056_s23  ;;  %v8477_v11 = vld [vmem:[#allocation61_spill] sm:$0xff] }
 0x18f   : > { %v6039_v42 = vpop.permute.xlu1 %1139  ;;  %v6041_v15 = vpop.permute.xlu0 %1145 }
 0x190   : > { %8470 = vst [vmem:[#allocation37_spill] sm:$0xff] %v6039_v42  ;;  %8471 = vst [vmem:[#allocation39_spill] sm:$0xff] %v6041_v15  ;;  %v8480_v15 = vld [vmem:[#allocation63_spill] sm:$0xff] }
 0x191   : > { %1383 = vrot.lane.b32.xlu1 %v8472_v41, %s5056_s23  ;;  %1389 = vrot.lane.b32.xlu0 %v8473_v43, %s5056_s23  ;;  %v8481_v41 = vld [vmem:[#allocation65_spill] sm:$0xff] }
 0x193   : > { %v6047_v10 = vpop.permute.xlu1 %1143  ;;  %v6049_v12 = vpop.permute.xlu0 %1149 }
 0x194   : > { %8474 = vst [vmem:[#allocation41_spill] sm:$0xff] %v6047_v10  ;;  %8475 = vst [vmem:[#allocation43_spill] sm:$0xff] %v6049_v12  ;;  %v8483_v12 = vld [vmem:[#allocation67_spill] sm:$0xff] }
 0x195   : > { %1387 = vrot.lane.b32.xlu1 %v8476_v20, %s5056_s23  ;;  %1393 = vrot.lane.b32.xlu0 %v8477_v11, %s5056_s23 }
 0x197   : > { %v6055_v40 = vpop.permute.xlu1 %1147  ;;  %v6057_v42 = vpop.permute.xlu0 %1153 }
 0x198   : > { %8478 = vst [vmem:[#allocation45_spill] sm:$0xff] %v6055_v40  ;;  %8479 = vst [vmem:[#allocation47_spill] sm:$0xff] %v6057_v42  ;;  %v8485_v42 = vld [vmem:[#allocation70_spill] sm:$0xff]  ;;  %v615_v40 = vld [vmem:[#allocation2 + $0x49] sm:$0xff] }
 0x199   : > { %1391 = vrot.lane.b32.xlu1 %v8480_v15, %s5056_s23  ;;  %1397 = vrot.lane.b32.xlu0 %v8481_v41, %s5056_s23  ;;  %v611_v41 = vld [vmem:[#allocation2 + $0x198] sm:$0xff] }
 0x19b   : > { %v6063_v43 = vpop.permute.xlu1 %1151  ;;  %v6065_v10 = vpop.permute.xlu0 %1221 }
 0x19c   : > { %8482 = vst [vmem:[#allocation49_spill] sm:$0xff] %v6063_v43 }
 0x19d   : > { %1395 = vrot.lane.b32.xlu1 %v8483_v12, %s5056_s23  ;;  %1401 = vrot.lane.b32.xlu0 %v5675_v39, %s5056_s23  ;;  %v613_v12 = vld [vmem:[#allocation2 + $0x31] sm:$0xff] }
 0x19f   : > { %v6071_v20 = vpop.permute.xlu1 %1155  ;;  %v6073_v11 = vpop.permute.xlu0 %1225 }
 0x1a0   : > { %8484 = vst [vmem:[#allocation51_spill] sm:$0xff] %v6071_v20 }
 0x1a1   : > { %1399 = vrot.lane.b32.xlu1 %v8485_v42, %s5056_s23  ;;  %1405 = vrot.lane.b32.xlu0 %v5683_v33, %s5056_s23  ;;  %v612_v42 = vld [vmem:[#allocation2 + $0x1a0] sm:$0xff] }
 0x1a3   : > { %v6079_v15 = vpop.permute.xlu1 %1223  ;;  %v6081_v43 = vpop.permute.xlu0 %1229 }
 0x1a5   : > { %1403 = vrot.lane.b32.xlu1 %v5693_v3, %s5056_s23  ;;  %1409 = vrot.lane.b32.xlu0 %v611_v41, %s5056_s23  ;;  %v614_v3 = vld [vmem:[#allocation2 + $0x39] sm:$0xff] }
 0x1a7   : > { %v6086_v39 = vpop.permute.xlu1 %1227  ;;  %v6088_v20 = vpop.permute.xlu0 %1233 }
 0x1a9   : > { %1407 = vrot.lane.b32.xlu1 %v5699_v37, %s5056_s23  ;;  %1477 = vrot.lane.b32.xlu0 %v613_v12, %s5057_s29  ;;  %v616_v37 = vld [vmem:[#allocation2 + $0x51] sm:$0xff] }
 0x1ab   : > { %v6093_v33 = vpop.permute.xlu1 %1231  ;;  %v6095_v8 = vpop.permute.xlu0 %1237 }
 0x1ad   : > { %1411 = vrot.lane.b32.xlu1 %v612_v42, %s5056_s23  ;;  %1481 = vrot.lane.b32.xlu0 %v615_v40, %s5057_s29  ;;  %v618_v42 = vld [vmem:[#allocation2 + $0x69] sm:$0xff] }
 0x1af   : > { %v6099_v41 = vpop.permute.xlu1 %1235  ;;  %v6101_v32 = vpop.permute.xlu0 %1241 }
 0x1b0   : > { %8486 = vst [vmem:[#allocation53_spill] sm:$0xff] %v6101_v32 }
 0x1b1   : > { %1479 = vrot.lane.b32.xlu1 %v614_v3, %s5057_s29  ;;  %1485 = vrot.lane.b32.xlu0 %v617_v9, %s5057_s29  ;;  %v620_v3 = vld [vmem:[#allocation2 + $0x81] sm:$0xff] }
 0x1b3   : > { %v6105_v12 = vpop.permute.xlu1 %1239  ;;  %v6107_v13 = vpop.permute.xlu0 %1245 }
 0x1b4   : > { %8487 = vst [vmem:[#allocation55_spill] sm:$0xff] %v6105_v12  ;;  %8488 = vst [vmem:[#allocation57_spill] sm:$0xff] %v6107_v13 }
 0x1b5   : > { %1483 = vrot.lane.b32.xlu1 %v616_v37, %s5057_s29  ;;  %1489 = vrot.lane.b32.xlu0 %v619_v38, %s5057_s29  ;;  %v622_v37 = vld [vmem:[#allocation2 + $0x99] sm:$0xff] }
 0x1b7   : > { %v6111_v40 = vpop.permute.xlu1 %1243  ;;  %v6113_v6 = vpop.permute.xlu0 %1249 }
 0x1b8   : > { %8489 = vst [vmem:[#allocation59_spill] sm:$0xff] %v6111_v40  ;;  %8490 = vst [vmem:[#allocation61_spill] sm:$0xff] %v6113_v6  ;;  %v627_v6 = vld [vmem:[#allocation2 + $0xd9] sm:$0xff] }
 0x1b9   : > { %1487 = vrot.lane.b32.xlu1 %v618_v42, %s5057_s29  ;;  %1493 = vrot.lane.b32.xlu0 %v621_v44, %s5057_s29  ;;  %v624_v42 = vld [vmem:[#allocation2 + $0xb1] sm:$0xff] }
 0x1bb   : > { %v6117_v9 = vpop.permute.xlu1 %1247  ;;  %v6119_v30 = vpop.permute.xlu0 %1253 }
 0x1bc   : > { %8491 = vst [vmem:[#allocation63_spill] sm:$0xff] %v6117_v9  ;;  %8492 = vst [vmem:[#allocation65_spill] sm:$0xff] %v6119_v30  ;;  %v629_v30 = vld [vmem:[#allocation2 + $0xf1] sm:$0xff] }
 0x1bd   : > { %1491 = vrot.lane.b32.xlu1 %v620_v3, %s5057_s29  ;;  %1497 = vrot.lane.b32.xlu0 %v623_v7, %s5057_s29  ;;  %v626_v3 = vld [vmem:[#allocation2 + $0xc9] sm:$0xff] }
 0x1bf   : > { %v6123_v38 = vpop.permute.xlu1 %1251  ;;  %v6125_v45 = vpop.permute.xlu0 %1257 }
 0x1c0   : > { %8493 = vst [vmem:[#allocation67_spill] sm:$0xff] %v6123_v38  ;;  %8494 = vst [vmem:[#allocation70_spill] sm:$0xff] %v6125_v45  ;;  %v631_v45 = vld [vmem:[#allocation2 + $0x109] sm:$0xff] }
 0x1c1   : > { %1495 = vrot.lane.b32.xlu1 %v622_v37, %s5057_s29  ;;  %1501 = vrot.lane.b32.xlu0 %v625_v31, %s5057_s29  ;;  %v628_v37 = vld [vmem:[#allocation2 + $0xe1] sm:$0xff] }
 0x1c3   : > { %v6129_v44 = vpop.permute.xlu1 %1255  ;;  %v6131_v9 = vpop.permute.xlu0 %1261 }
 0x1c4   : > { %8495 = vst [vmem:[#allocation118_spill] sm:$0xff] %v6129_v44  ;;  %8496 = vst [vmem:[#allocation119_spill] sm:$0xff] %v6131_v9  ;;  %v633_v9 = vld [vmem:[#allocation2 + $0x121] sm:$0xff] }
 0x1c5   : > { %1499 = vrot.lane.b32.xlu1 %v624_v42, %s5057_s29  ;;  %1505 = vrot.lane.b32.xlu0 %v627_v6, %s5057_s29  ;;  %v630_v42 = vld [vmem:[#allocation2 + $0xf9] sm:$0xff] }
 0x1c7   : > { %v6135_v7 = vpop.permute.xlu1 %1259  ;;  %v6137_v38 = vpop.permute.xlu0 %1265 }
 0x1c8   : > { %8497 = vst [vmem:[#allocation120_spill] sm:$0xff] %v6135_v7  ;;  %8498 = vst [vmem:[#allocation121_spill] sm:$0xff] %v6137_v38  ;;  %v635_v38 = vld [vmem:[#allocation2 + $0x139] sm:$0xff] }
 0x1c9   : > { %1503 = vrot.lane.b32.xlu1 %v626_v3, %s5057_s29  ;;  %1509 = vrot.lane.b32.xlu0 %v629_v30, %s5057_s29  ;;  %v632_v3 = vld [vmem:[#allocation2 + $0x111] sm:$0xff] }
 0x1cb   : > { %v6141_v31 = vpop.permute.xlu1 %1263  ;;  %v6143_v44 = vpop.permute.xlu0 %1269 }
 0x1cc   : > { %8499 = vst [vmem:[#allocation122_spill] sm:$0xff] %v6141_v31  ;;  %8500 = vst [vmem:[#allocation123_spill] sm:$0xff] %v6143_v44  ;;  %v637_v44 = vld [vmem:[#allocation2 + $0x151] sm:$0xff] }
 0x1cd   : > { %1507 = vrot.lane.b32.xlu1 %v628_v37, %s5057_s29  ;;  %1513 = vrot.lane.b32.xlu0 %v631_v45, %s5057_s29  ;;  %v634_v37 = vld [vmem:[#allocation2 + $0x129] sm:$0xff] }
 0x1cf   : > { %v6147_v6 = vpop.permute.xlu1 %1267  ;;  %v6149_v7 = vpop.permute.xlu0 %1273 }
 0x1d0   : > { %8501 = vst [vmem:[#allocation124_spill] sm:$0xff] %v6147_v6  ;;  %8502 = vst [vmem:[#allocation125_spill] sm:$0xff] %v6149_v7 }
 0x1d1   : > { %1511 = vrot.lane.b32.xlu1 %v630_v42, %s5057_s29  ;;  %1517 = vrot.lane.b32.xlu0 %v633_v9, %s5057_s29  ;;  %v636_v42 = vld [vmem:[#allocation2 + $0x141] sm:$0xff] }
 0x1d2   : > { %v1968_v9 = vld [vmem:[%s8275_s1 + $0x20] sm:$0xf] }
 0x1d3   : > { %v6153_v30 = vpop.permute.xlu1 %1271  ;;  %v6155_v31 = vpop.permute.xlu0 %1277  ;;  %4777 = vmatprep.subr.msk.mxu0 %vm2066_vm3, %v1968_v9 }
 0x1d4   : > { %8503 = vst [vmem:[#allocation126_spill] sm:$0xff] %v6153_v30  ;;  %8504 = vst [vmem:[#allocation127_spill] sm:$0xff] %v6155_v31  ;;  %4778 = vmatpush3.msk.msra.mxu0 %vm2066_vm3, %v1968_v9  ;;  %v1965_v9 = vld [vmem:[%s8275_s1 + $0x8] sm:$0xff] }
 0x1d5   : > { %1515 = vrot.lane.b32.xlu1 %v632_v3, %s5057_s29  ;;  %1521 = vrot.lane.b32.xlu0 %v635_v38, %s5057_s29  ;;  %v639_v38 = vld [vmem:[#allocation2 + $0x169] sm:$0xff]  ;;  %v1967_v3 = vld [vmem:[%s8275_s1 + $0x18] sm:$0xff] }
 0x1d6   : > { %4779 = vmatprep.subr.mxu0 %v1967_v3 }
 0x1d7   : > { %v6159_v45 = vpop.permute.xlu1 %1275  ;;  %v6161_v6 = vpop.permute.xlu0 %1281  ;;  %4780 = vmatpush3.msra.mxu0 %v1967_v3  ;;  %v1964_v3 = vld [vmem:[%s8275_s1] sm:$0xff] }
 0x1d8   : > { %8505 = vst [vmem:[#allocation128_spill] sm:$0xff] %v6159_v45  ;;  %8506 = vst [vmem:[#allocation129_spill] sm:$0xff] %v6161_v6  ;;  %v638_v6 = vld [vmem:[#allocation2 + $0x159] sm:$0xff] }
 0x1d9   : > { %1519 = vrot.lane.b32.xlu1 %v634_v37, %s5057_s29  ;;  %1525 = vrot.lane.b32.xlu0 %v637_v44, %s5057_s29  ;;  %v1966_v44 = vld [vmem:[%s8275_s1 + $0x10] sm:$0xff] }
 0x1da   : > { %4781 = vmatprep.subr.mxu0 %v1966_v44 }
 0x1db   : > { %v6168_v31 = vpop.permute.xlu1 %1279  ;;  %v6175_v37 = vpop.permute.xlu0 %1349  ;;  %4782 = vmatpush3.msra.mxu0 %v1966_v44  ;;  %v643_v44 = vld [vmem:[#allocation2 + $0x199] sm:$0xff] }
 0x1dc   : > { %8507 = vst [vmem:[#allocation130_spill] sm:$0xff] %v6168_v31  ;;  %4783 = vmatprep.subr.mxu0 %v1965_v9 }
 0x1dd   : > { %1523 = vrot.lane.b32.xlu1 %v636_v42, %s5057_s29  ;;  %1529 = vrot.lane.b32.xlu0 %v639_v38, %s5057_s29  ;;  %v640_v42 = vld [vmem:[#allocation2 + $0x171] sm:$0xff] }
 0x1de   : > { %4784 = vmatpush3.msra.mxu0 %v1965_v9  ;;  %v645_v9 = vld [vmem:[#allocation2 + $0x32] sm:$0xff] }
 0x1df   : > { %v6182_v31 = vpop.permute.xlu1 %1283  ;;  %v6187_v45 = vpop.permute.xlu0 %1353  ;;  %4785 = vmatprep.subr.mxu0 %v1964_v3 }
 0x1e0   : > { %8508 = vst [vmem:[#allocation131_spill] sm:$0xff] %v6182_v31  ;;  %4786 = vmatpush3.msra.mxu0 %v1964_v3  ;;  %v647_v3 = vld [vmem:[#allocation2 + $0x4a] sm:$0xff] }
 0x1e1   : > { %1527 = vrot.lane.b32.xlu1 %v638_v6, %s5057_s29  ;;  %1533 = vrot.lane.b32.xlu0 %v5817_v56, %s5057_s29  ;;  %v644_v56 = vld [vmem:[#allocation2 + $0x1a1] sm:$0xff] }
 0x1e3   : > { %v6195_v38 = vpop.permute.xlu1 %1351  ;;  %v6197_v31 = vpop.permute.xlu0 %1357 }
 0x1e5   : > { %1531 = vrot.lane.b32.xlu1 %v640_v42, %s5057_s29  ;;  %1537 = vrot.lane.b32.xlu0 %v643_v44, %s5057_s29  ;;  %v646_v42 = vld [vmem:[#allocation2 + $0x3a] sm:$0xff] }
 0x1e7   : > { %v6201_v6 = vpop.permute.xlu1 %1355  ;;  %v6203_v7 = vpop.permute.xlu0 %1361 }
 0x1e9   : > { %1535 = vrot.lane.b32.xlu1 %v5831_v60, %s5057_s29  ;;  %1605 = vrot.lane.b32.xlu0 %v645_v9, %s5058_s15  ;;  %v648_v60 = vld [vmem:[#allocation2 + $0x52] sm:$0xff] }
 0x1eb   : > { %v6208_v30 = vpop.permute.xlu1 %1359  ;;  %v6210_v47 = vpop.permute.xlu0 %1365 }
 0x1ed   : > { %1539 = vrot.lane.b32.xlu1 %v644_v56, %s5057_s29  ;;  %1609 = vrot.lane.b32.xlu0 %v647_v3, %s5058_s15  ;;  %v650_v56 = vld [vmem:[#allocation2 + $0x6a] sm:$0xff] }
 0x1ef   : > { %v6214_v44 = vpop.permute.xlu1 %1363  ;;  %v6216_v5 = vpop.permute.xlu0 %1369 }
 0x1f0   : > { %8509 = vst [vmem:[#allocation132_spill] sm:$0xff] %v6216_v5 }
 0x1f1   : > { %1607 = vrot.lane.b32.xlu1 %v646_v42, %s5058_s15  ;;  %1613 = vrot.lane.b32.xlu0 %v649_v48, %s5058_s15  ;;  %v652_v42 = vld [vmem:[#allocation2 + $0x82] sm:$0xff] }
 0x1f3   : > { %v6220_v9 = vpop.permute.xlu1 %1367  ;;  %v6222_v13 = vpop.permute.xlu0 %1373 }
 0x1f4   : > { %8510 = vst [vmem:[#allocation133_spill] sm:$0xff] %v6220_v9  ;;  %8511 = vst [vmem:[#allocation134_spill] sm:$0xff] %v6222_v13  ;;  %v657_v13 = vld [vmem:[#allocation2 + $0xc2] sm:$0xff] }
 0x1f5   : > { %1611 = vrot.lane.b32.xlu1 %v648_v60, %s5058_s15  ;;  %1617 = vrot.lane.b32.xlu0 %v651_v62, %s5058_s15  ;;  %v654_v60 = vld [vmem:[#allocation2 + $0x9a] sm:$0xff] }
 0x1f7   : > { %v6226_v3 = vpop.permute.xlu1 %1371  ;;  %v6228_v40 = vpop.permute.xlu0 %1377 }
 0x1f8   : > { %8512 = vst [vmem:[#allocation135_spill] sm:$0xff] %v6226_v3  ;;  %8513 = vst [vmem:[#allocation136_spill] sm:$0xff] %v6228_v40  ;;  %v659_v40 = vld [vmem:[#allocation2 + $0xda] sm:$0xff] }
 0x1f9   : > { %1615 = vrot.lane.b32.xlu1 %v650_v56, %s5058_s15  ;;  %1621 = vrot.lane.b32.xlu0 %v653_v27, %s5058_s15  ;;  %v656_v56 = vld [vmem:[#allocation2 + $0xb2] sm:$0xff] }
 0x1fb   : > { %v6232_v48 = vpop.permute.xlu1 %1375  ;;  %v6234_v34 = vpop.permute.xlu0 %1381 }
 0x1fc   : > { %8514 = vst [vmem:[#allocation137_spill] sm:$0xff] %v6232_v48  ;;  %8515 = vst [vmem:[#allocation138_spill] sm:$0xff] %v6234_v34  ;;  %v661_v34 = vld [vmem:[#allocation2 + $0xf2] sm:$0xff] }
 0x1fd   : > { %1619 = vrot.lane.b32.xlu1 %v652_v42, %s5058_s15  ;;  %1625 = vrot.lane.b32.xlu0 %v655_v14, %s5058_s15  ;;  %v658_v42 = vld [vmem:[#allocation2 + $0xca] sm:$0xff] }
 0x1ff   : > { %v6238_v62 = vpop.permute.xlu1 %1379  ;;  %v6240_v3 = vpop.permute.xlu0 %1385 }
 0x200   : > { %8516 = vst [vmem:[#allocation139_spill] sm:$0xff] %v6238_v62  ;;  %8517 = vst [vmem:[#allocation140_spill] sm:$0xff] %v6240_v3  ;;  %v663_v3 = vld [vmem:[#allocation2 + $0x10a] sm:$0xff] }
 0x201   : > { %1623 = vrot.lane.b32.xlu1 %v654_v60, %s5058_s15  ;;  %1629 = vrot.lane.b32.xlu0 %v657_v13, %s5058_s15  ;;  %v660_v60 = vld [vmem:[#allocation2 + $0xe2] sm:$0xff] }
 0x203   : > { %v6244_v27 = vpop.permute.xlu1 %1383  ;;  %v6246_v48 = vpop.permute.xlu0 %1389 }
 0x204   : > { %8518 = vst [vmem:[#allocation141_spill] sm:$0xff] %v6244_v27  ;;  %8519 = vst [vmem:[#allocation142_spill] sm:$0xff] %v6246_v48  ;;  %v665_v48 = vld [vmem:[#allocation2 + $0x122] sm:$0xff] }
 0x205   : > { %1627 = vrot.lane.b32.xlu1 %v656_v56, %s5058_s15  ;;  %1633 = vrot.lane.b32.xlu0 %v659_v40, %s5058_s15  ;;  %v662_v56 = vld [vmem:[#allocation2 + $0xfa] sm:$0xff] }
 0x207   : > { %v6250_v14 = vpop.permute.xlu1 %1387  ;;  %v6252_v62 = vpop.permute.xlu0 %1393 }
 0x208   : > { %8520 = vst [vmem:[#allocation143_spill] sm:$0xff] %v6250_v14  ;;  %8521 = vst [vmem:[#allocation144_spill] sm:$0xff] %v6252_v62  ;;  %v667_v62 = vld [vmem:[#allocation2 + $0x13a] sm:$0xff] }
 0x209   : > { %1631 = vrot.lane.b32.xlu1 %v658_v42, %s5058_s15  ;;  %1637 = vrot.lane.b32.xlu0 %v661_v34, %s5058_s15  ;;  %v664_v42 = vld [vmem:[#allocation2 + $0x112] sm:$0xff] }
 0x20b   : > { %v6256_v13 = vpop.permute.xlu1 %1391  ;;  %v6258_v27 = vpop.permute.xlu0 %1397 }
 0x20c   : > { %8522 = vst [vmem:[#allocation145_spill] sm:$0xff] %v6256_v13  ;;  %8523 = vst [vmem:[#allocation146_spill] sm:$0xff] %v6258_v27  ;;  %v669_v27 = vld [vmem:[#allocation2 + $0x152] sm:$0xff] }
 0x20d   : > { %1635 = vrot.lane.b32.xlu1 %v660_v60, %s5058_s15  ;;  %1641 = vrot.lane.b32.xlu0 %v663_v3, %s5058_s15  ;;  %v666_v60 = vld [vmem:[#allocation2 + $0x12a] sm:$0xff] }
 0x20f   : > { %v6262_v40 = vpop.permute.xlu1 %1395  ;;  %v6264_v14 = vpop.permute.xlu0 %1401 }
 0x210   : > { %8524 = vst [vmem:[#allocation147_spill] sm:$0xff] %v6262_v40  ;;  %8525 = vst [vmem:[#allocation148_spill] sm:$0xff] %v6264_v14  ;;  %v671_v14 = vld [vmem:[#allocation2 + $0x16a] sm:$0xff] }
 0x211   : > { %1639 = vrot.lane.b32.xlu1 %v662_v56, %s5058_s15  ;;  %1645 = vrot.lane.b32.xlu0 %v665_v48, %s5058_s15  ;;  %v668_v56 = vld [vmem:[#allocation2 + $0x142] sm:$0xff] }
 0x213   : > { %v6268_v34 = vpop.permute.xlu1 %1399  ;;  %v6270_v13 = vpop.permute.xlu0 %1405 }
 0x214   : > { %8526 = vst [vmem:[#allocation149_spill] sm:$0xff] %v6268_v34  ;;  %8527 = vst [vmem:[#allocation150_spill] sm:$0xff] %v6270_v13 }
 0x215   : > { %1643 = vrot.lane.b32.xlu1 %v664_v42, %s5058_s15  ;;  %1649 = vrot.lane.b32.xlu0 %v667_v62, %s5058_s15  ;;  %v670_v42 = vld [vmem:[#allocation2 + $0x15a] sm:$0xff] }
 0x217   : > { %v6274_v3 = vpop.permute.xlu1 %1403  ;;  %v6276_v40 = vpop.permute.xlu0 %1409 }
 0x218   : > { %8528 = vst [vmem:[#allocation151_spill] sm:$0xff] %v6274_v3  ;;  %8529 = vst [vmem:[#allocation152_spill] sm:$0xff] %v6276_v40  ;;  %v672_v40 = vld [vmem:[#allocation2 + $0x172] sm:$0xff] }
 0x219   : > { %1647 = vrot.lane.b32.xlu1 %v666_v60, %s5058_s15  ;;  %1653 = vrot.lane.b32.xlu0 %v669_v27, %s5058_s15  ;;  %v675_v60 = vld [vmem:[#allocation2 + $0x19a] sm:$0xff] }
 0x21b   : > { %v6280_v48 = vpop.permute.xlu1 %1407  ;;  %v1478_v34 = vpop.permute.xlu0 %1477 }
 0x21c   : > { %8530 = vst [vmem:[#allocation153_spill] sm:$0xff] %v6280_v48 }
 0x21d   : > { %1651 = vrot.lane.b32.xlu1 %v668_v56, %s5058_s15  ;;  %1657 = vrot.lane.b32.xlu0 %v671_v14, %s5058_s15 }
 0x21f   : > { %v6284_v62 = vpop.permute.xlu1 %1411  ;;  %v6286_v13 = vpop.permute.xlu0 %1481 }
 0x220   : > { %8531 = vst [vmem:[#allocation154_spill] sm:$0xff] %v6284_v62 }
 0x221   : > { %1655 = vrot.lane.b32.xlu1 %v670_v42, %s5058_s15  ;;  %1661 = vrot.lane.b32.xlu0 %v5949_v21, %s5058_s15  ;;  %v676_v42 = vld [vmem:[#allocation2 + $0x1a2] sm:$0xff] }
 0x223   : > { %v6291_v27 = vpop.permute.xlu1 %1479  ;;  %v6293_v48 = vpop.permute.xlu0 %1485 }
 0x225   : > { %1659 = vrot.lane.b32.xlu1 %v672_v40, %s5058_s15  ;;  %1665 = vrot.lane.b32.xlu0 %v675_v60, %s5058_s15 }
 0x227   : > { %v6297_v14 = vpop.permute.xlu1 %1483  ;;  %v6299_v56 = vpop.permute.xlu0 %1489 }
 0x229   : > { %1663 = vrot.lane.b32.xlu1 %v5963_v28, %s5058_s15 }
 0x22b   : > { %v6303_v62 = vpop.permute.xlu1 %1487  ;;  %v6305_v21 = vpop.permute.xlu0 %1493 }
 0x22d   : > { %1667 = vrot.lane.b32.xlu1 %v676_v42, %s5058_s15 }
 0x22f   : > { %v6308_v3 = vpop.permute.xlu1 %1491  ;;  %v6310_v2 = vpop.permute.xlu0 %1497 }
 0x230   : > { %8532 = vst [vmem:[#allocation155_spill] sm:$0xff] %v6310_v2 }
 0x233   : > { %v6312_v40 = vpop.permute.xlu1 %1495  ;;  %v6314_v60 = vpop.permute.xlu0 %1501 }
 0x234   : > { %8533 = vst [vmem:[#allocation156_spill] sm:$0xff] %v6312_v40  ;;  %8534 = vst [vmem:[#allocation157_spill] sm:$0xff] %v6314_v60 }
 0x237   : > { %v6316_v5 = vpop.permute.xlu1 %1499  ;;  %v6318_v4 = vpop.permute.xlu0 %1505 }
 0x238   : > { %8535 = vst [vmem:[#allocation158_spill] sm:$0xff] %v6316_v5  ;;  %8536 = vst [vmem:[#allocation159_spill] sm:$0xff] %v6318_v4 }
 0x23b   : > { %v6320_v28 = vpop.permute.xlu1 %1503  ;;  %v6322_v58 = vpop.permute.xlu0 %1509 }
 0x23c   : > { %8537 = vst [vmem:[#allocation160_spill] sm:$0xff] %v6320_v28  ;;  %8538 = vst [vmem:[#allocation161_spill] sm:$0xff] %v6322_v58 }
 0x23f   : > { %v6324_v9 = vpop.permute.xlu1 %1507  ;;  %v6326_v32 = vpop.permute.xlu0 %1513 }
 0x240   : > { %8539 = vst [vmem:[#allocation162_spill] sm:$0xff] %v6324_v9  ;;  %8540 = vst [vmem:[#allocation163_spill] sm:$0xff] %v6326_v32  ;;  %v388_v9 = vld [vmem:[#allocation2] sm:$0xff] }
 0x243   : > { %v6328_v42 = vpop.permute.xlu1 %1511  ;;  %v6330_v26 = vpop.permute.xlu0 %1517 }
 0x244   : > { %8541 = vst [vmem:[#allocation164_spill] sm:$0xff] %v6328_v42  ;;  %8542 = vst [vmem:[#allocation165_spill] sm:$0xff] %v6330_v26  ;;  %v8551_v26 = vld [vmem:[#allocation6_spill] sm:$0xff]  ;;  %v8557_v42 = vld [vmem:[#allocation9_spill] sm:$0xff] }
 0x247   : > { %v6332_v2 = vpop.permute.xlu1 %1515  ;;  %v6334_v40 = vpop.permute.xlu0 %1521 }
 0x248   : > { %8543 = vst [vmem:[#allocation166_spill] sm:$0xff] %v6332_v2  ;;  %8544 = vst [vmem:[#allocation167_spill] sm:$0xff] %v6334_v40  ;;  %v1701_v2 = vsel %vm277_vm0, %v388_v9, %v8551_v26 }
 0x24b   : > { %v6336_v60 = vpop.permute.xlu1 %1519  ;;  %v6338_v5 = vpop.permute.xlu0 %1525 }
 0x24c   : > { %8545 = vst [vmem:[#allocation168_spill] sm:$0xff] %v6336_v60  ;;  %8546 = vst [vmem:[#allocation169_spill] sm:$0xff] %v6338_v5  ;;  %v8553_v60 = vld [vmem:[#allocation64_spill] sm:$0xff] }
 0x24d   : > { %v1734_v5 = vsel %vm1733_vm4, %v1701_v2, %v8553_v60  ;;  %v8556_v60 = vld [vmem:[#allocation7_spill] sm:$0xff] }
 0x24f   : > { %v6340_v4 = vpop.permute.xlu1 %1523  ;;  %v6342_v28 = vpop.permute.xlu0 %1529 }
 0x250   : > { %8547 = vst [vmem:[#allocation170_spill] sm:$0xff] %v6340_v4  ;;  %8548 = vst [vmem:[#allocation171_spill] sm:$0xff] %v6342_v28  ;;  %v1767_v28 = vsel %vm1766_vm5, %v1734_v5, %v5801_v52  ;;  %v389_v4 = vld [vmem:[#allocation2 + $0x8] sm:$0xff] }
 0x251   : > { %v1702_v52 = vsel %vm277_vm0, %v389_v4, %v8556_v60  ;;  %v4943_v60 = vld [vmem:[#allocation2 + $0x30] sm:$0xff] }
 0x253   : > { %v6344_v58 = vpop.permute.xlu1 %1527  ;;  %v6346_v32 = vpop.permute.xlu0 %1533 }
 0x254   : > { %8549 = vst [vmem:[#allocation172_spill] sm:$0xff] %v6344_v58  ;;  %8550 = vst [vmem:[#allocation173_spill] sm:$0xff] %v6346_v32  ;;  %v1800_v32 = vsel %vm1799_vm6, %v1767_v28, %v5933_v22  ;;  %v8558_v28 = vld [vmem:[#allocation69_spill] sm:$0xff] }
 0x255   : > { %v1833_v26 = vsel %vm1832_vm7, %v1800_v32, %v6065_v10  ;;  %v1735_v32 = vsel %vm1733_vm4, %v1702_v52, %v8558_v28  ;;  %v8561_v52 = vld [vmem:[#allocation11_spill] sm:$0xff] }
 0x256   : > { %v1866_v2 = vsel %vm1865_vm8, %v1833_v26, %v6175_v37  ;;  %v1768_v37 = vsel %vm1766_vm5, %v1735_v32, %v5815_v55  ;;  %v8560_v26 = vld [vmem:[#allocation13_spill] sm:$0xff]  ;;  %v8563_v28 = vld [vmem:[#allocation71_spill] sm:$0xff] }
 0x257   : > { %v6350_v40 = vpop.permute.xlu1 %1531  ;;  %v6356_v58 = vpop.permute.xlu0 %1537  ;;  %v1899_v5 = vsel %vm1898_vm9, %v1866_v2, %v1478_v34 }
 0x258   : > { %8552 = vst [vmem:[#allocation6_spill] sm:$0xff] %v6350_v40  ;;  %8554 = vst [vmem:[#allocation64_spill] sm:$0xff] %v6356_v58  ;;  %v4941_v40 = vld [vmem:[#allocation2 + $0x18] sm:$0xff] }
 0x259   : > { %v1703_v22 = vsel %vm277_vm0, %v4941_v40, %v8557_v42  ;;  %v1801_v40 = vsel %vm1799_vm6, %v1768_v37, %v5947_v29  ;;  %v4942_v42 = vld [vmem:[#allocation2 + $0x20] sm:$0xff] }
 0x25a   : > { %v1834_v55 = vsel %vm1832_vm7, %v1801_v40, %v6079_v15 }
 0x25b   : > { %v6362_v9 = vpop.permute.xlu1 %1535  ;;  %v1606_v58 = vpop.permute.xlu0 %1605 }
 0x25c   : > { %8555 = vst [vmem:[#allocation174_spill] sm:$0xff] %v6362_v9  ;;  %v1932_v10 = vsel %vm1931_vm10, %v1899_v5, %v1606_v58  ;;  %v8559_v9 = vld [vmem:[#allocation68_spill] sm:$0xff]  ;;  %v1704_v58 = vsel %vm277_vm0, %v4942_v42, %v8560_v26  ;;  %v1705_v5 = vsel %vm277_vm0, %v4943_v60, %v8561_v52  ;;  %v4944_v42 = vld [vmem:[#allocation2 + $0x38] sm:$0xff] }
 0x25d   : > { %v1736_v12 = vsel %vm1733_vm4, %v1703_v22, %v8559_v9  ;;  %4787 = vmatprep.mubr.msk.f32.mxu0 %vm1969_vm11, %v1932_v10  ;;  %v8562_v22 = vld [vmem:[#allocation72_spill] sm:$0xff] }
 0x25e   : > { %v1769_v34 = vsel %vm1766_vm5, %v1736_v12, %v5809_v54  ;;  %v1737_v54 = vsel %vm1733_vm4, %v1704_v58, %v8562_v22  ;;  %v1867_v12 = vsel %vm1865_vm8, %v1834_v55, %v6195_v38  ;;  %v8566_v55 = vld [vmem:[#allocation74_spill] sm:$0xff] }
 0x25f   : > { %v6379_v4 = vpop.permute.xlu1 %1539  ;;  %v1802_v9 = vsel %vm1799_vm6, %v1769_v34, %v5941_v24  ;;  %v1610_v2 = vpop.permute.xlu0 %1609  ;;  %v1738_v24 = vsel %vm1733_vm4, %v1705_v5, %v8563_v28  ;;  %v1770_v15 = vsel %vm1766_vm5, %v1737_v54, %v5825_v57  ;;  %v1900_v10 = vsel %vm1898_vm9, %v1867_v12, %v6291_v27  ;;  %v8564_v57 = vld [vmem:[#allocation16_spill] sm:$0xff] }
 0x260   : > { %v1835_v29 = vsel %vm1832_vm7, %v1802_v9, %v6073_v11  ;;  %v1771_v34 = vsel %vm1766_vm5, %v1738_v24, %v5819_v50  ;;  %v1803_v11 = vsel %vm1799_vm6, %v1770_v15, %v5957_v35  ;;  %v1706_v26 = vsel %vm277_vm0, %v4944_v42, %v8564_v57  ;;  %v4945_v35 = vld [vmem:[#allocation2 + $0x48] sm:$0xff]  ;;  %v8565_v9 = vld [vmem:[#allocation14_spill] sm:$0xff]  ;;  %v4946_v24 = vld [vmem:[#allocation2 + $0x50] sm:$0xff] }
 0x261   : > { %v1868_v32 = vsel %vm1865_vm8, %v1835_v29, %v6187_v45  ;;  %v1804_v45 = vsel %vm1799_vm6, %v1771_v34, %v5951_v18  ;;  %v1836_v27 = vsel %vm1832_vm7, %v1803_v11, %v6086_v39  ;;  %v1739_v60 = vsel %vm1733_vm4, %v1706_v26, %v8566_v55  ;;  %v8567_v39 = vld [vmem:[#allocation73_spill] sm:$0xff] }
 0x262   : > { %v1901_v38 = vsel %vm1898_vm9, %v1868_v32, %v6286_v13  ;;  %v1707_v13 = vsel %vm277_vm0, %v4945_v35, %v8565_v9  ;;  %v1837_v52 = vsel %vm1832_vm7, %v1804_v45, %v6081_v43  ;;  %v1869_v18 = vsel %vm1865_vm8, %v1836_v27, %v6201_v6  ;;  %v4948_v45 = vld [vmem:[#allocation2 + $0x68] sm:$0xff] }
 0x263   : > { %v1608_v37 = vpop.permute.xlu1 %1607  ;;  %v1934_v50 = vsel %vm1931_vm10, %v1901_v38, %v1610_v2  ;;  %v1614_v58 = vpop.permute.xlu0 %1613  ;;  %v1740_v2 = vsel %vm1733_vm4, %v1707_v13, %v8567_v39  ;;  %v1772_v5 = vsel %vm1766_vm5, %v1739_v60, %v5835_v61  ;;  %v1870_v22 = vsel %vm1865_vm8, %v1837_v52, %v6197_v31  ;;  %v8568_v61 = vld [vmem:[#allocation19_spill] sm:$0xff] }
 0x264   : > { %v1933_v40 = vsel %vm1931_vm10, %v1900_v10, %v1608_v37  ;;  %v1902_v54 = vsel %vm1898_vm9, %v1869_v18, %v6297_v14  ;;  %v1773_v43 = vsel %vm1766_vm5, %v1740_v2, %v5827_v59  ;;  %v1805_v6 = vsel %vm1799_vm6, %v1772_v5, %v5967_v49  ;;  %v4947_v49 = vld [vmem:[#allocation2 + $0x60] sm:$0xff]  ;;  %v8569_v10 = vld [vmem:[#allocation17_spill] sm:$0xff] }
 0x265   : > { %4788 = vmatmul.mubr.msk.f32.vlgmr.msra.gmra.mxu0 %vm1969_vm11, %v1933_v40  ;;  %v1903_v12 = vsel %vm1898_vm9, %v1870_v22, %v6293_v48  ;;  %v1708_v15 = vsel %vm277_vm0, %v4946_v24, %v8568_v61  ;;  %v1806_v31 = vsel %vm1799_vm6, %v1773_v43, %v5959_v23  ;;  %v1838_v14 = vsel %vm1832_vm7, %v1805_v6, %v6093_v33  ;;  %v8570_v33 = vld [vmem:[#allocation75_spill] sm:$0xff]  ;;  %v4950_v18 = vld [vmem:[#allocation2 + $0x80] sm:$0xff]  ;;  %v8575_v22 = vld [vmem:[#allocation24_spill] sm:$0xff] }
 0x266   : > { %4790 = vmatprep.mubr.msk.f32.mxu0 %vm1969_vm11, %v1934_v50  ;;  %v1936_v59 = vsel %vm1931_vm10, %v1903_v12, %v1614_v58  ;;  %v1709_v48 = vsel %vm277_vm0, %v4947_v49, %v8569_v10  ;;  %v1741_v37 = vsel %vm1733_vm4, %v1708_v15, %v5711_v0  ;;  %v1839_v34 = vsel %vm1832_vm7, %v1806_v31, %v6088_v20  ;;  %v8572_v58 = vld [vmem:[#allocation20_spill] sm:$0xff]  ;;  %v8577_v43 = vld [vmem:[#allocation53_spill] sm:$0xff]  ;;  %v8580_v61 = vld [vmem:[#allocation98_spill] sm:$0xff] }
 0x267   : > { %v1612_v29 = vpop.permute.xlu1 %1611  ;;  %v1618_v32 = vpop.permute.xlu0 %1617  ;;  %v1871_v23 = vsel %vm1865_vm8, %v1838_v14, %v6208_v30  ;;  %v1742_v11 = vsel %vm1733_vm4, %v1709_v48, %v8570_v33  ;;  %v1774_v38 = vsel %vm1766_vm5, %v1741_v37, %v5843_v63  ;;  %v1872_v40 = vsel %vm1865_vm8, %v1839_v34, %v6203_v7  ;;  %v8571_v63 = vld [vmem:[#allocation22_spill] sm:$0xff]  ;;  %v8578_v12 = vld [vmem:[#allocation133_spill] sm:$0xff]  ;;  %v8581_v31 = vld [vmem:[#allocation132_spill] sm:$0xff] }
 0x268   : > { %v1935_v28 = vsel %vm1931_vm10, %v1902_v54, %v1612_v29  ;;  %v1904_v0 = vsel %vm1898_vm9, %v1871_v23, %v6303_v62  ;;  %v1775_v20 = vsel %vm1766_vm5, %v1742_v11, %v5837_v53  ;;  %v1807_v30 = vsel %vm1799_vm6, %v1774_v38, %v5975_v17  ;;  %v4949_v17 = vld [vmem:[#allocation2 + $0x78] sm:$0xff]  ;;  %v8584_v37 = vld [vmem:[#allocation10_spill] sm:$0xff]  ;;  %v8585_v23 = vld [vmem:[#allocation155_spill] sm:$0xff] }
 0x269   : > { %4791 = vmatmul.mubr.msk.f32.gmra.mxu0 %vm1969_vm11, %v1935_v28  ;;  %v1905_v57 = vsel %vm1898_vm9, %v1872_v40, %v6299_v56  ;;  %v1710_v27 = vsel %vm277_vm0, %v4948_v45, %v8571_v63  ;;  %v1808_v7 = vsel %vm1799_vm6, %v1775_v20, %v5969_v16  ;;  %v1840_v62 = vsel %vm1832_vm7, %v1807_v30, %v6099_v41  ;;  %v8576_v54 = vld [vmem:[#allocation77_spill] sm:$0xff]  ;;  %v8579_v28 = vld [vmem:[#allocation76_spill] sm:$0xff]  ;;  %v8586_v40 = vld [vmem:[#allocation30_spill] sm:$0xff] }
 0x26a   : > { %4793 = vmatprep.mubr.msk.f32.mxu0 %vm1969_vm11, %v1936_v59  ;;  %v1938_v53 = vsel %vm1931_vm10, %v1905_v57, %v1618_v32  ;;  %v1711_v56 = vsel %vm277_vm0, %v4949_v17, %v8572_v58  ;;  %v1743_v35 = vsel %vm1733_vm4, %v1710_v27, %v5719_v25  ;;  %v1841_v9 = vsel %vm1832_vm7, %v1808_v7, %v6095_v8  ;;  %v8582_v59 = vld [vmem:[#allocation156_spill] sm:$0xff]  ;;  %v8583_v10 = vld [vmem:[#allocation97_spill] sm:$0xff]  ;;  %v8588_v30 = vld [vmem:[#allocation59_spill] sm:$0xff] }
 0x26b   : > { %v1616_v42 = vpop.permute.xlu1 %1615  ;;  %v1622_v50 = vpop.permute.xlu0 %1621  ;;  %v1873_v16 = vsel %vm1865_vm8, %v1840_v62, %v6214_v44  ;;  %v1744_v41 = vsel %vm1733_vm4, %v1711_v56, %v5713_v36  ;;  %v1776_v13 = vsel %vm1766_vm5, %v1743_v35, %v5851_v1  ;;  %v1874_v55 = vsel %vm1865_vm8, %v1841_v9, %v6210_v47  ;;  %v8573_v1 = vld [vmem:[#allocation26_spill] sm:$0xff]  ;;  %v4952_v38 = vld [vmem:[#allocation2 + $0x98] sm:$0xff]  ;;  %v4953_v63 = vld [vmem:[#allocation2 + $0xa8] sm:$0xff] }
 0x26c   : > { %v1937_v26 = vsel %vm1931_vm10, %v1904_v0, %v1616_v42  ;;  %v1906_v25 = vsel %vm1898_vm9, %v1873_v16, %v6308_v3  ;;  %v1777_v8 = vsel %vm1766_vm5, %v1744_v41, %v5845_v51  ;;  %v1809_v44 = vsel %vm1799_vm6, %v1776_v13, %v5983_v19  ;;  %v8574_v3 = vld [vmem:[#allocation55_spill] sm:$0xff]  ;;  %v4951_v19 = vld [vmem:[#allocation2 + $0x90] sm:$0xff]  ;;  %v8593_v35 = vld [vmem:[#allocation78_spill] sm:$0xff] }
 0x26d   : > { %4794 = vmatmul.mubr.msk.f32.gmra.mxu0 %vm1969_vm11, %v1937_v26  ;;  %v1907_v52 = vsel %vm1898_vm9, %v1874_v55, %v6305_v21  ;;  %v1712_v39 = vsel %vm277_vm0, %v4950_v18, %v8573_v1  ;;  %v1810_v47 = vsel %vm1799_vm6, %v1777_v8, %v5977_v46  ;;  %v1842_v2 = vsel %vm1832_vm7, %v1809_v44, %v8574_v3  ;;  %v8587_v42 = vld [vmem:[#allocation8_spill] sm:$0xff]  ;;  %v8590_v62 = vld [vmem:[#allocation79_spill] sm:$0xff]  ;;  %v8595_v13 = vld [vmem:[#allocation134_spill] sm:$0xff] }
 0x26e   : > { %4796 = vmatprep.mubr.msk.f32.mxu0 %vm1969_vm11, %v1938_v53  ;;  %v1940_v51 = vsel %vm1931_vm10, %v1907_v52, %v1622_v50  ;;  %v1713_v21 = vsel %vm277_vm0, %v4951_v19, %v8575_v22  ;;  %v1745_v29 = vsel %vm1733_vm4, %v1712_v39, %v8576_v54  ;;  %v1843_v6 = vsel %vm1832_vm7, %v1810_v47, %v8577_v43  ;;  %v8589_v27 = vld [vmem:[#allocation28_spill] sm:$0xff]  ;;  %v8591_v50 = vld [vmem:[#allocation57_spill] sm:$0xff]  ;;  %v8592_v58 = vld [vmem:[#allocation135_spill] sm:$0xff] }
 0x26f   : > { %v1620_v60 = vpop.permute.xlu1 %1619  ;;  %v1626_v5 = vpop.permute.xlu0 %1625  ;;  %v1875_v46 = vsel %vm1865_vm8, %v1842_v2, %v8578_v12  ;;  %v1746_v24 = vsel %vm1733_vm4, %v1713_v21, %v8579_v28  ;;  %v1778_v15 = vsel %vm1766_vm5, %v1745_v29, %v8580_v61  ;;  %v1876_v14 = vsel %vm1865_vm8, %v1843_v6, %v8581_v31  ;;  %v8594_v16 = vld [vmem:[#allocation100_spill] sm:$0xff]  ;;  %v8597_v44 = vld [vmem:[#allocation99_spill] sm:$0xff]  ;;  %v8599_v1 = vld [vmem:[#allocation157_spill] sm:$0xff] }
 0x270   : > { %v1939_v36 = vsel %vm1931_vm10, %v1906_v25, %v1620_v60  ;;  %v1908_v32 = vsel %vm1898_vm9, %v1875_v46, %v8582_v59  ;;  %v1779_v48 = vsel %vm1766_vm5, %v1746_v24, %v8583_v10  ;;  %v1811_v34 = vsel %vm1799_vm6, %v1778_v15, %v8584_v37  ;;  %v8596_v25 = vld [vmem:[#allocation158_spill] sm:$0xff]  ;;  %v4954_v3 = vld [vmem:[#allocation2 + $0xb0] sm:$0xff]  ;;  %v8602_v22 = vld [vmem:[#allocation63_spill] sm:$0xff] }
 0x271   : > { %4797 = vmatmul.mubr.msk.f32.gmra.mxu0 %vm1969_vm11, %v1939_v36  ;;  %v1909_v33 = vsel %vm1898_vm9, %v1876_v14, %v8585_v23  ;;  %v1714_v0 = vsel %vm277_vm0, %v4952_v38, %v8586_v40  ;;  %v1812_v20 = vsel %vm1799_vm6, %v1779_v48, %v8587_v42  ;;  %v1844_v57 = vsel %vm1832_vm7, %v1811_v34, %v8588_v30  ;;  %v8598_v36 = vld [vmem:[#allocation15_spill] sm:$0xff]  ;;  %v8600_v2 = vld [vmem:[#allocation34_spill] sm:$0xff]  ;;  %v8603_v6 = vld [vmem:[#allocation32_spill] sm:$0xff] }
 0x272   : > { %4799 = vmatprep.mubr.msk.f32.mxu0 %vm1969_vm11, %v1940_v51  ;;  %v1942_v26 = vsel %vm1931_vm10, %v1909_v33, %v1626_v5  ;;  %v1715_v7 = vsel %vm277_vm0, %v4953_v63, %v8589_v27  ;;  %v1747_v53 = vsel %vm1733_vm4, %v1714_v0, %v8590_v62  ;;  %v1845_v17 = vsel %vm1832_vm7, %v1812_v20, %v8591_v50  ;;  %v8601_v5 = vld [vmem:[#allocation12_spill] sm:$0xff]  ;;  %v4955_v43 = vld [vmem:[#allocation2 + $0xc0] sm:$0xff]  ;;  %v8604_v46 = vld [vmem:[#allocation81_spill] sm:$0xff] }
 0x273   : > { %v1624_v49 = vpop.permute.xlu1 %1623  ;;  %v1630_v45 = vpop.permute.xlu0 %1629  ;;  %v1877_v56 = vsel %vm1865_vm8, %v1844_v57, %v8592_v58  ;;  %v1748_v9 = vsel %vm1733_vm4, %v1715_v7, %v8593_v35  ;;  %v1780_v41 = vsel %vm1766_vm5, %v1747_v53, %v8594_v16  ;;  %v1878_v55 = vsel %vm1865_vm8, %v1845_v17, %v8595_v13  ;;  %v8605_v24 = vld [vmem:[#allocation61_spill] sm:$0xff]  ;;  %v8607_v14 = vld [vmem:[#allocation80_spill] sm:$0xff]  ;;  %v8613_v0 = vld [vmem:[#allocation159_spill] sm:$0xff] }
 0x274   : > { %v1941_v11 = vsel %vm1931_vm10, %v1908_v32, %v1624_v49  ;;  %v1910_v60 = vsel %vm1898_vm9, %v1877_v56, %v8596_v25  ;;  %v1781_v52 = vsel %vm1766_vm5, %v1748_v9, %v8597_v44  ;;  %v1813_v18 = vsel %vm1799_vm6, %v1780_v41, %v8598_v36  ;;  %v8606_v15 = vld [vmem:[#allocation137_spill] sm:$0xff]  ;;  %v8608_v32 = vld [vmem:[#allocation102_spill] sm:$0xff]  ;;  %v8609_v10 = vld [vmem:[#allocation136_spill] sm:$0xff] }
 0x275   : > { %4800 = vmatmul.mubr.msk.f32.gmra.mxu0 %vm1969_vm11, %v1941_v11  ;;  %v1911_v39 = vsel %vm1898_vm9, %v1878_v55, %v8599_v1  ;;  %v1716_v51 = vsel %vm277_vm0, %v4954_v3, %v8600_v2  ;;  %v1814_v19 = vsel %vm1799_vm6, %v1781_v52, %v8601_v5  ;;  %v1846_v21 = vsel %vm1832_vm7, %v1813_v18, %v8602_v22  ;;  %v8610_v37 = vld [vmem:[#allocation160_spill] sm:$0xff]  ;;  %v8611_v33 = vld [vmem:[#allocation101_spill] sm:$0xff]  ;;  %v4956_v30 = vld [vmem:[#allocation2 + $0xc8] sm:$0xff] }
 0x276   : > { %4802 = vmatprep.mubr.msk.f32.mxu0 %vm1969_vm11, %v1942_v26  ;;  %v1944_v54 = vsel %vm1931_vm10, %v1911_v39, %v1630_v45  ;;  %v1717_v12 = vsel %vm277_vm0, %v4955_v43, %v8603_v6  ;;  %v1749_v28 = vsel %vm1733_vm4, %v1716_v51, %v8604_v46  ;;  %v1847_v61 = vsel %vm1832_vm7, %v1814_v19, %v8605_v24  ;;  %v8612_v38 = vld [vmem:[#allocation21_spill] sm:$0xff]  ;;  %v8614_v57 = vld [vmem:[#allocation38_spill] sm:$0xff]  ;;  %v8616_v27 = vld [vmem:[#allocation67_spill] sm:$0xff] }
 0x277   : > { %v1628_v8 = vpop.permute.xlu1 %1627  ;;  %v1634_v29 = vpop.permute.xlu0 %1633  ;;  %v1879_v31 = vsel %vm1865_vm8, %v1846_v21, %v8606_v15  ;;  %v1750_v59 = vsel %vm1733_vm4, %v1717_v12, %v8607_v14  ;;  %v1782_v49 = vsel %vm1766_vm5, %v1749_v28, %v8608_v32  ;;  %v1880_v48 = vsel %vm1865_vm8, %v1847_v61, %v8609_v10  ;;  %v8615_v45 = vld [vmem:[#allocation18_spill] sm:$0xff]  ;;  %v4957_v50 = vld [vmem:[#allocation2 + $0xd8] sm:$0xff]  ;;  %v8617_v17 = vld [vmem:[#allocation36_spill] sm:$0xff] }
 0x278   : > { %v1943_v47 = vsel %vm1931_vm10, %v1910_v60, %v1628_v8  ;;  %v1912_v34 = vsel %vm1898_vm9, %v1879_v31, %v8610_v37  ;;  %v1783_v11 = vsel %vm1766_vm5, %v1750_v59, %v8611_v33  ;;  %v1815_v40 = vsel %vm1799_vm6, %v1782_v49, %v8612_v38  ;;  %v8618_v56 = vld [vmem:[#allocation83_spill] sm:$0xff]  ;;  %v8619_v9 = vld [vmem:[#allocation65_spill] sm:$0xff]  ;;  %v8621_v55 = vld [vmem:[#allocation82_spill] sm:$0xff] }
 0x279   : > { %4803 = vmatmul.mubr.msk.f32.gmra.mxu0 %vm1969_vm11, %v1943_v47  ;;  %v1913_v42 = vsel %vm1898_vm9, %v1880_v48, %v8613_v0  ;;  %v1718_v26 = vsel %vm277_vm0, %v4956_v30, %v8614_v57  ;;  %v1816_v63 = vsel %vm1799_vm6, %v1783_v11, %v8615_v45  ;;  %v1848_v7 = vsel %vm1832_vm7, %v1815_v40, %v8616_v27  ;;  %v8620_v41 = vld [vmem:[#allocation139_spill] sm:$0xff]  ;;  %v8622_v60 = vld [vmem:[#allocation104_spill] sm:$0xff]  ;;  %v8623_v44 = vld [vmem:[#allocation138_spill] sm:$0xff] }
 0x27a   : > { %4805 = vmatprep.mubr.msk.f32.mxu0 %vm1969_vm11, %v1944_v54  ;;  %v1946_v62 = vsel %vm1931_vm10, %v1913_v42, %v1634_v29  ;;  %v1719_v58 = vsel %vm277_vm0, %v4957_v50, %v8617_v17  ;;  %v1751_v35 = vsel %vm1733_vm4, %v1718_v26, %v8618_v56  ;;  %v1849_v16 = vsel %vm1832_vm7, %v1816_v63, %v8619_v9  ;;  %v8624_v36 = vld [vmem:[#allocation162_spill] sm:$0xff]  ;;  %v8625_v39 = vld [vmem:[#allocation103_spill] sm:$0xff]  ;;  %v8626_v3 = vld [vmem:[#allocation25_spill] sm:$0xff] }
 0x27b   : > { %v1632_v23 = vpop.permute.xlu1 %1631  ;;  %v1638_v53 = vpop.permute.xlu0 %1637  ;;  %v1881_v13 = vsel %vm1865_vm8, %v1848_v7, %v8620_v41  ;;  %v1752_v25 = vsel %vm1733_vm4, %v1719_v58, %v8621_v55  ;;  %v1784_v8 = vsel %vm1766_vm5, %v1751_v35, %v8622_v60  ;;  %v1882_v52 = vsel %vm1865_vm8, %v1849_v16, %v8623_v44  ;;  %v8627_v51 = vld [vmem:[#allocation161_spill] sm:$0xff]  ;;  %v4958_v22 = vld [vmem:[#allocation2 + $0xe0] sm:$0xff]  ;;  %v8629_v29 = vld [vmem:[#allocation23_spill] sm:$0xff] }
 0x27c   : > { %v1945_v20 = vsel %vm1931_vm10, %v1912_v34, %v1632_v23  ;;  %v1914_v18 = vsel %vm1898_vm9, %v1881_v13, %v8624_v36  ;;  %v1785_v47 = vsel %vm1766_vm5, %v1752_v25, %v8625_v39  ;;  %v1817_v2 = vsel %vm1799_vm6, %v1784_v8, %v8626_v3  ;;  %v8628_v21 = vld [vmem:[#allocation42_spill] sm:$0xff]  ;;  %v4959_v24 = vld [vmem:[#allocation2 + $0xf0] sm:$0xff]  ;;  %v8632_v31 = vld [vmem:[#allocation85_spill] sm:$0xff] }
 0x27d   : > { %4806 = vmatmul.mubr.msk.f32.gmra.mxu0 %vm1969_vm11, %v1945_v20  ;;  %v1915_v5 = vsel %vm1898_vm9, %v1882_v52, %v8627_v51  ;;  %v1720_v54 = vsel %vm277_vm0, %v4958_v22, %v8628_v21  ;;  %v1818_v43 = vsel %vm1799_vm6, %v1785_v47, %v8629_v29  ;;  %v8630_v6 = vld [vmem:[#allocation118_spill] sm:$0xff]  ;;  %v8631_v61 = vld [vmem:[#allocation40_spill] sm:$0xff]  ;;  %v8634_v49 = vld [vmem:[#allocation141_spill] sm:$0xff] }
 0x27e   : > { %4808 = vmatprep.mubr.msk.f32.mxu0 %vm1969_vm11, %v1946_v62  ;;  %v1850_v12 = vsel %vm1832_vm7, %v1817_v2, %v8630_v6  ;;  %v1948_v46 = vsel %vm1931_vm10, %v1915_v5, %v1638_v53  ;;  %v1721_v15 = vsel %vm277_vm0, %v4959_v24, %v8631_v61  ;;  %v1753_v14 = vsel %vm1733_vm4, %v1720_v54, %v8632_v31  ;;  %v8633_v59 = vld [vmem:[#allocation70_spill] sm:$0xff]  ;;  %v8635_v48 = vld [vmem:[#allocation84_spill] sm:$0xff]  ;;  %v8639_v42 = vld [vmem:[#allocation105_spill] sm:$0xff] }
 0x27f   : > { %v1636_v1 = vpop.permute.xlu1 %1635  ;;  %v1642_v28 = vpop.permute.xlu0 %1641  ;;  %v1851_v32 = vsel %vm1832_vm7, %v1818_v43, %v8633_v59  ;;  %v1883_v10 = vsel %vm1865_vm8, %v1850_v12, %v8634_v49  ;;  %v1754_v37 = vsel %vm1733_vm4, %v1721_v15, %v8635_v48  ;;  %v8636_v34 = vld [vmem:[#allocation106_spill] sm:$0xff]  ;;  %v8637_v33 = vld [vmem:[#allocation140_spill] sm:$0xff]  ;;  %v8640_v30 = vld [vmem:[#allocation29_spill] sm:$0xff] }
 0x280   : > { %v1947_v19 = vsel %vm1931_vm10, %v1914_v18, %v1636_v1  ;;  %v1786_v23 = vsel %vm1766_vm5, %v1753_v14, %v8636_v34  ;;  %v1884_v11 = vsel %vm1865_vm8, %v1851_v32, %v8637_v33  ;;  %v8638_v38 = vld [vmem:[#allocation164_spill] sm:$0xff]  ;;  %v1787_v20 = vsel %vm1766_vm5, %v1754_v37, %v8639_v42  ;;  %v8641_v26 = vld [vmem:[#allocation163_spill] sm:$0xff]  ;;  %v4960_v27 = vld [vmem:[#allocation2 + $0xf8] sm:$0xff] }
 0x281   : > { %4809 = vmatmul.mubr.msk.f32.gmra.mxu0 %vm1969_vm11, %v1947_v19  ;;  %v1916_v40 = vsel %vm1898_vm9, %v1883_v10, %v8638_v38  ;;  %v1819_v57 = vsel %vm1799_vm6, %v1786_v23, %v8640_v30  ;;  %v1917_v45 = vsel %vm1898_vm9, %v1884_v11, %v8641_v26  ;;  %v8642_v7 = vld [vmem:[#allocation46_spill] sm:$0xff]  ;;  %v8643_v53 = vld [vmem:[#allocation27_spill] sm:$0xff]  ;;  %v8644_v17 = vld [vmem:[#allocation120_spill] sm:$0xff] }
 0x282   : > { %4811 = vmatprep.mubr.msk.f32.mxu0 %vm1969_vm11, %v1948_v46  ;;  %v1722_v62 = vsel %vm277_vm0, %v4960_v27, %v8642_v7  ;;  %v1820_v50 = vsel %vm1799_vm6, %v1787_v20, %v8643_v53  ;;  %v1852_v58 = vsel %vm1832_vm7, %v1819_v57, %v8644_v17  ;;  %v1950_v56 = vsel %vm1931_vm10, %v1917_v45, %v1642_v28  ;;  %v4961_v9 = vld [vmem:[#allocation2 + $0x108] sm:$0xff]  ;;  %v8645_v16 = vld [vmem:[#allocation44_spill] sm:$0xff]  ;;  %v8649_v52 = vld [vmem:[#allocation86_spill] sm:$0xff] }
 0x283   : > { %v1640_v0 = vpop.permute.xlu1 %1639  ;;  %v1646_v35 = vpop.permute.xlu0 %1645  ;;  %v1723_v41 = vsel %vm277_vm0, %v4961_v9, %v8645_v16  ;;  %v8646_v13 = vld [vmem:[#allocation87_spill] sm:$0xff]  ;;  %v8650_v18 = vld [vmem:[#allocation108_spill] sm:$0xff]  ;;  %v8651_v39 = vld [vmem:[#allocation142_spill] sm:$0xff] }
 0x284   : > { %v1949_v63 = vsel %vm1931_vm10, %v1916_v40, %v1640_v0  ;;  %v1755_v55 = vsel %vm1733_vm4, %v1722_v62, %v8646_v13  ;;  %v8647_v25 = vld [vmem:[#allocation119_spill] sm:$0xff]  ;;  %v1756_v36 = vsel %vm1733_vm4, %v1723_v41, %v8649_v52  ;;  %v8652_v3 = vld [vmem:[#allocation166_spill] sm:$0xff]  ;;  %v8654_v22 = vld [vmem:[#allocation33_spill] sm:$0xff] }
 0x285   : > { %4812 = vmatmul.mubr.msk.f32.gmra.mxu0 %vm1969_vm11, %v1949_v63  ;;  %v1853_v60 = vsel %vm1832_vm7, %v1820_v50, %v8647_v25  ;;  %v8648_v8 = vld [vmem:[#allocation143_spill] sm:$0xff]  ;;  %v1788_v1 = vsel %vm1766_vm5, %v1755_v55, %v8650_v18  ;;  %v8655_v54 = vld [vmem:[#allocation165_spill] sm:$0xff]  ;;  %v4962_v6 = vld [vmem:[#allocation2 + $0x110] sm:$0xff] }
 0x286   : > { %v1885_v44 = vsel %vm1865_vm8, %v1852_v58, %v8648_v8  ;;  %4814 = vmatprep.mubr.msk.f32.mxu0 %vm1969_vm11, %v1950_v56  ;;  %v1886_v47 = vsel %vm1865_vm8, %v1853_v60, %v8651_v39  ;;  %v8653_v5 = vld [vmem:[#allocation107_spill] sm:$0xff]  ;;  %v1821_v21 = vsel %vm1799_vm6, %v1788_v1, %v8654_v22  ;;  %v8656_v12 = vld [vmem:[#allocation50_spill] sm:$0xff]  ;;  %v8659_v32 = vld [vmem:[#allocation48_spill] sm:$0xff] }
 0x287   : > { %v1918_v2 = vsel %vm1898_vm9, %v1885_v44, %v8652_v3  ;;  %v1644_v51 = vpop.permute.xlu1 %1643  ;;  %v1789_v19 = vsel %vm1766_vm5, %v1756_v36, %v8653_v5  ;;  %v1919_v29 = vsel %vm1898_vm9, %v1886_v47, %v8655_v54  ;;  %v1724_v46 = vsel %vm277_vm0, %v4962_v6, %v8656_v12  ;;  %v8657_v28 = vld [vmem:[#allocation31_spill] sm:$0xff]  ;;  %v8658_v61 = vld [vmem:[#allocation122_spill] sm:$0xff]  ;;  %v1650_v14 = vpop.permute.xlu0 %1649  ;;  %v8660_v10 = vld [vmem:[#allocation89_spill] sm:$0xff] }
 0x288   : > { %v1951_v43 = vsel %vm1931_vm10, %v1918_v2, %v1644_v51  ;;  %v1822_v24 = vsel %vm1799_vm6, %v1789_v19, %v8657_v28  ;;  %v1854_v15 = vsel %vm1832_vm7, %v1821_v21, %v8658_v61  ;;  %v1952_v31 = vsel %vm1931_vm10, %v1919_v29, %v1646_v35  ;;  %v4963_v59 = vld [vmem:[#allocation2 + $0x120] sm:$0xff]  ;;  %v8661_v37 = vld [vmem:[#allocation121_spill] sm:$0xff]  ;;  %v8663_v11 = vld [vmem:[#allocation88_spill] sm:$0xff] }
 0x289   : > { %4815 = vmatmul.mubr.msk.f32.gmra.mxu0 %vm1969_vm11, %v1951_v43  ;;  %v1725_v49 = vsel %vm277_vm0, %v4963_v59, %v8659_v32  ;;  %v1757_v48 = vsel %vm1733_vm4, %v1724_v46, %v8660_v10  ;;  %v1855_v34 = vsel %vm1832_vm7, %v1822_v24, %v8661_v37  ;;  %v8662_v23 = vld [vmem:[#allocation145_spill] sm:$0xff]  ;;  %v8664_v40 = vld [vmem:[#allocation110_spill] sm:$0xff]  ;;  %v8665_v42 = vld [vmem:[#allocation144_spill] sm:$0xff] }
 0x28a   : > { %v1887_v33 = vsel %vm1865_vm8, %v1854_v15, %v8662_v23  ;;  %4817 = vmatprep.mubr.msk.f32.mxu0 %vm1969_vm11, %v1952_v31  ;;  %v1758_v38 = vsel %vm1733_vm4, %v1725_v49, %v8663_v11  ;;  %v1790_v0 = vsel %vm1766_vm5, %v1757_v48, %v8664_v40  ;;  %v1888_v20 = vsel %vm1865_vm8, %v1855_v34, %v8665_v42  ;;  %v8666_v30 = vld [vmem:[#allocation168_spill] sm:$0xff]  ;;  %v8667_v45 = vld [vmem:[#allocation109_spill] sm:$0xff]  ;;  %v8669_v62 = vld [vmem:[#allocation167_spill] sm:$0xff] }
 0x28b   : > { %v1920_v57 = vsel %vm1898_vm9, %v1887_v33, %v8666_v30  ;;  %v1648_v26 = vpop.permute.xlu1 %1647  ;;  %v1791_v63 = vsel %vm1766_vm5, %v1758_v38, %v8667_v45  ;;  %v8668_v27 = vld [vmem:[#allocation37_spill] sm:$0xff]  ;;  %v1921_v53 = vsel %vm1898_vm9, %v1888_v20, %v8669_v62  ;;  %v4964_v17 = vld [vmem:[#allocation2 + $0x128] sm:$0xff]  ;;  %v8670_v58 = vld [vmem:[#allocation54_spill] sm:$0xff]  ;;  %v1654_v55 = vpop.permute.xlu0 %1653 }
 0x28c   : > { %v1823_v7 = vsel %vm1799_vm6, %v1790_v0, %v8668_v27  ;;  %v1953_v50 = vsel %vm1931_vm10, %v1920_v57, %v1648_v26  ;;  %v1726_v56 = vsel %vm277_vm0, %v4964_v17, %v8670_v58  ;;  %v8671_v35 = vld [vmem:[#allocation35_spill] sm:$0xff]  ;;  %v8672_v16 = vld [vmem:[#allocation124_spill] sm:$0xff]  ;;  %v1954_v13 = vsel %vm1931_vm10, %v1921_v53, %v1650_v14  ;;  %v4965_v25 = vld [vmem:[#allocation2 + $0x138] sm:$0xff] }
 0x28d   : > { %v1824_v9 = vsel %vm1799_vm6, %v1791_v63, %v8671_v35  ;;  %v1856_v41 = vsel %vm1832_vm7, %v1823_v7, %v8672_v16  ;;  %4818 = vmatmul.mubr.msk.f32.gmra.mxu0 %vm1969_vm11, %v1953_v50  ;;  %v8673_v60 = vld [vmem:[#allocation52_spill] sm:$0xff]  ;;  %v8674_v44 = vld [vmem:[#allocation91_spill] sm:$0xff]  ;;  %v8677_v47 = vld [vmem:[#allocation90_spill] sm:$0xff] }
 0x28e   : > { %v1727_v8 = vsel %vm277_vm0, %v4965_v25, %v8673_v60  ;;  %v1759_v52 = vsel %vm1733_vm4, %v1726_v56, %v8674_v44  ;;  %v8675_v36 = vld [vmem:[#allocation123_spill] sm:$0xff]  ;;  %4820 = vmatprep.mubr.msk.f32.mxu0 %vm1969_vm11, %v1954_v13  ;;  %v8678_v2 = vld [vmem:[#allocation112_spill] sm:$0xff]  ;;  %v8679_v5 = vld [vmem:[#allocation146_spill] sm:$0xff] }
 0x28f   : > { %v1857_v18 = vsel %vm1832_vm7, %v1824_v9, %v8675_v36  ;;  %v8676_v1 = vld [vmem:[#allocation147_spill] sm:$0xff]  ;;  %v1760_v3 = vsel %vm1733_vm4, %v1727_v8, %v8677_v47  ;;  %v1792_v51 = vsel %vm1766_vm5, %v1759_v52, %v8678_v2  ;;  %v8680_v22 = vld [vmem:[#allocation170_spill] sm:$0xff]  ;;  %v1652_v54 = vpop.permute.xlu1 %1651  ;;  %v8682_v6 = vld [vmem:[#allocation41_spill] sm:$0xff]  ;;  %v1658_v48 = vpop.permute.xlu0 %1657 }
 0x290   : > { %v1889_v39 = vsel %vm1865_vm8, %v1856_v41, %v8676_v1  ;;  %v1890_v19 = vsel %vm1865_vm8, %v1857_v18, %v8679_v5  ;;  %v8681_v29 = vld [vmem:[#allocation111_spill] sm:$0xff]  ;;  %v1825_v12 = vsel %vm1799_vm6, %v1792_v51, %v8682_v6  ;;  %v8683_v46 = vld [vmem:[#allocation169_spill] sm:$0xff]  ;;  %v4966_v61 = vld [vmem:[#allocation2 + $0x140] sm:$0xff] }
 0x291   : > { %v1922_v21 = vsel %vm1898_vm9, %v1889_v39, %v8680_v22  ;;  %v1793_v43 = vsel %vm1766_vm5, %v1760_v3, %v8681_v29  ;;  %v1923_v28 = vsel %vm1898_vm9, %v1890_v19, %v8683_v46  ;;  %v8684_v15 = vld [vmem:[#allocation58_spill] sm:$0xff]  ;;  %v8685_v14 = vld [vmem:[#allocation39_spill] sm:$0xff]  ;;  %v4967_v37 = vld [vmem:[#allocation2 + $0x150] sm:$0xff] }
 0x292   : > { %v1955_v24 = vsel %vm1931_vm10, %v1922_v21, %v1652_v54  ;;  %v1728_v31 = vsel %vm277_vm0, %v4966_v61, %v8684_v15  ;;  %v1826_v59 = vsel %vm1799_vm6, %v1793_v43, %v8685_v14  ;;  %v8686_v32 = vld [vmem:[#allocation126_spill] sm:$0xff]  ;;  %v1956_v10 = vsel %vm1931_vm10, %v1923_v28, %v1654_v55  ;;  %v8687_v34 = vld [vmem:[#allocation56_spill] sm:$0xff]  ;;  %v8688_v33 = vld [vmem:[#allocation93_spill] sm:$0xff] }
 0x293   : > { %v1858_v49 = vsel %vm1832_vm7, %v1825_v12, %v8686_v32  ;;  %4821 = vmatmul.mubr.msk.f32.gmra.mxu0 %vm1969_vm11, %v1955_v24  ;;  %v1729_v23 = vsel %vm277_vm0, %v4967_v37, %v8687_v34  ;;  %v1761_v11 = vsel %vm1733_vm4, %v1728_v31, %v8688_v33  ;;  %v8689_v38 = vld [vmem:[#allocation125_spill] sm:$0xff]  ;;  %v8691_v20 = vld [vmem:[#allocation92_spill] sm:$0xff]  ;;  %v8692_v57 = vld [vmem:[#allocation114_spill] sm:$0xff]  ;;  %v1656_v62 = vpop.permute.xlu1 %1655  ;;  %v1662_v52 = vpop.permute.xlu0 %1661 }
 0x294   : > { %v1859_v40 = vsel %vm1832_vm7, %v1826_v59, %v8689_v38  ;;  %v8690_v0 = vld [vmem:[#allocation149_spill] sm:$0xff]  ;;  %4823 = vmatprep.mubr.msk.f32.mxu0 %vm1969_vm11, %v1956_v10  ;;  %v1762_v30 = vsel %vm1733_vm4, %v1729_v23, %v8691_v20  ;;  %v1794_v26 = vsel %vm1766_vm5, %v1761_v11, %v8692_v57  ;;  %v8693_v45 = vld [vmem:[#allocation148_spill] sm:$0xff]  ;;  %v8697_v56 = vld [vmem:[#allocation171_spill] sm:$0xff] }
 0x295   : > { %v1891_v42 = vsel %vm1865_vm8, %v1858_v49, %v8690_v0  ;;  %v1892_v63 = vsel %vm1865_vm8, %v1859_v40, %v8693_v45  ;;  %v8694_v27 = vld [vmem:[#allocation172_spill] sm:$0xff]  ;;  %v8695_v53 = vld [vmem:[#allocation113_spill] sm:$0xff]  ;;  %v8698_v41 = vld [vmem:[#allocation62_spill] sm:$0xff] }
 0x296   : > { %v1924_v7 = vsel %vm1898_vm9, %v1891_v42, %v8694_v27  ;;  %v1795_v50 = vsel %vm1766_vm5, %v1762_v30, %v8695_v53  ;;  %v8696_v17 = vld [vmem:[#allocation45_spill] sm:$0xff]  ;;  %v1925_v35 = vsel %vm1898_vm9, %v1892_v63, %v8697_v56  ;;  %v8699_v55 = vld [vmem:[#allocation43_spill] sm:$0xff]  ;;  %v8700_v60 = vld [vmem:[#allocation128_spill] sm:$0xff] }
 0x297   : > { %v1827_v58 = vsel %vm1799_vm6, %v1794_v26, %v8696_v17  ;;  %v1957_v9 = vsel %vm1931_vm10, %v1924_v7, %v1656_v62  ;;  %v4968_v16 = vld [vmem:[#allocation2 + $0x158] sm:$0xff]  ;;  %v1828_v25 = vsel %vm1799_vm6, %v1795_v50, %v8699_v55  ;;  %v1958_v44 = vsel %vm1931_vm10, %v1925_v35, %v1658_v48  ;;  %v4969_v36 = vld [vmem:[#allocation2 + $0x168] sm:$0xff]  ;;  %v8701_v18 = vld [vmem:[#allocation60_spill] sm:$0xff]  ;;  %v1660_v46 = vpop.permute.xlu1 %1659  ;;  %v1666_v30 = vpop.permute.xlu0 %1665 }
 0x298   : > { %v1730_v13 = vsel %vm277_vm0, %v4968_v16, %v8698_v41  ;;  %v1860_v8 = vsel %vm1832_vm7, %v1827_v58, %v8700_v60  ;;  %4824 = vmatmul.mubr.msk.f32.gmra.mxu0 %vm1969_vm11, %v1957_v9  ;;  %v1731_v1 = vsel %vm277_vm0, %v4969_v36, %v8701_v18  ;;  %v8702_v39 = vld [vmem:[#allocation95_spill] sm:$0xff]  ;;  %v8705_v19 = vld [vmem:[#allocation94_spill] sm:$0xff]  ;;  %v8706_v21 = vld [vmem:[#allocation116_spill] sm:$0xff] }
 0x299   : > { %v1763_v47 = vsel %vm1733_vm4, %v1730_v13, %v8702_v39  ;;  %v8703_v3 = vld [vmem:[#allocation127_spill] sm:$0xff]  ;;  %4826 = vmatprep.mubr.msk.f32.mxu0 %vm1969_vm11, %v1958_v44  ;;  %v1764_v22 = vsel %vm1733_vm4, %v1731_v1, %v8705_v19  ;;  %v8707_v29 = vld [vmem:[#allocation150_spill] sm:$0xff]  ;;  %v8710_v61 = vld [vmem:[#allocation49_spill] sm:$0xff] }
 0x29a   : > { %v1861_v2 = vsel %vm1832_vm7, %v1828_v25, %v8703_v3  ;;  %v8704_v51 = vld [vmem:[#allocation151_spill] sm:$0xff]  ;;  %v1796_v54 = vsel %vm1766_vm5, %v1763_v47, %v8706_v21  ;;  %v8708_v6 = vld [vmem:[#allocation6_spill] sm:$0xff]  ;;  %v8711_v31 = vld [vmem:[#allocation173_spill] sm:$0xff] }
 0x29b   : > { %v1893_v5 = vsel %vm1865_vm8, %v1860_v8, %v8704_v51  ;;  %v1894_v43 = vsel %vm1865_vm8, %v1861_v2, %v8707_v29  ;;  %v8709_v28 = vld [vmem:[#allocation115_spill] sm:$0xff]  ;;  %v1829_v15 = vsel %vm1799_vm6, %v1796_v54, %v8710_v61  ;;  %v4970_v32 = vld [vmem:[#allocation2 + $0x170] sm:$0xff]  ;;  %v8712_v49 = vld [vmem:[#allocation66_spill] sm:$0xff]  ;;  %v1664_v62 = vpop.permute.xlu1 %1663 }
 0x29c   : > { %v1926_v12 = vsel %vm1898_vm9, %v1893_v5, %v8708_v6  ;;  %v1797_v24 = vsel %vm1766_vm5, %v1764_v22, %v8709_v28  ;;  %v1927_v14 = vsel %vm1898_vm9, %v1894_v43, %v8711_v31  ;;  %v1732_v10 = vsel %vm277_vm0, %v4970_v32, %v8712_v49  ;;  %v8713_v48 = vld [vmem:[#allocation47_spill] sm:$0xff]  ;;  %v8714_v34 = vld [vmem:[#allocation130_spill] sm:$0xff]  ;;  %v8715_v11 = vld [vmem:[#allocation96_spill] sm:$0xff] }
 0x29d   : > { %v1959_v59 = vsel %vm1931_vm10, %v1926_v12, %v1660_v46  ;;  %v1830_v37 = vsel %vm1799_vm6, %v1797_v24, %v8713_v48  ;;  %v1862_v23 = vsel %vm1832_vm7, %v1829_v15, %v8714_v34  ;;  %v1960_v33 = vsel %vm1931_vm10, %v1927_v14, %v1662_v52  ;;  %v8716_v40 = vld [vmem:[#allocation129_spill] sm:$0xff]  ;;  %v8719_v45 = vld [vmem:[#allocation152_spill] sm:$0xff]  ;;  %v8720_v27 = vld [vmem:[#allocation174_spill] sm:$0xff] }
 0x29e   : > { %4827 = vmatmul.mubr.msk.f32.gmra.mxu0 %vm1969_vm11, %v1959_v59  ;;  %v1765_v38 = vsel %vm1733_vm4, %v1732_v10, %v8715_v11  ;;  %v1863_v0 = vsel %vm1832_vm7, %v1830_v37, %v8716_v40  ;;  %v8717_v42 = vld [vmem:[#allocation153_spill] sm:$0xff]  ;;  %v8721_v53 = vld [vmem:[#allocation51_spill] sm:$0xff]  ;;  %v8722_v17 = vld [vmem:[#allocation64_spill] sm:$0xff] }
 0x29f   : > { %v1895_v20 = vsel %vm1865_vm8, %v1862_v23, %v8717_v42  ;;  %4829 = vmatprep.mubr.msk.f32.mxu0 %vm1969_vm11, %v1960_v33  ;;  %v8718_v57 = vld [vmem:[#allocation117_spill] sm:$0xff]  ;;  %v1896_v63 = vsel %vm1865_vm8, %v1863_v0, %v8719_v45  ;;  %v8723_v35 = vld [vmem:[#allocation131_spill] sm:$0xff]  ;;  %v8724_v41 = vld [vmem:[#allocation154_spill] sm:$0xff]  ;;  %v1668_v25 = vpop.permute.xlu1 %1667 }
 0x2a0   : > { %v1798_v26 = vsel %vm1766_vm5, %v1765_v38, %v8718_v57  ;;  %v1928_v7 = vsel %vm1898_vm9, %v1895_v20, %v8720_v27  ;;  %v1929_v58 = vsel %vm1898_vm9, %v1896_v63, %v8722_v17  ;;  %v2470_v8 = vld [vmem:[#allocation2 + $0x9] sm:$0xff]  ;;  %v2469_v44 = vld [vmem:[#allocation2 + $0x1] sm:$0xff]  ;;  %v6872_v52 = vld [vmem:[%s8276_s2] ss:$0 sm:$0xff] }
 0x2a1   : > { %v1831_v50 = vsel %vm1799_vm6, %v1798_v26, %v8721_v53  ;;  %v1961_v56 = vsel %vm1931_vm10, %v1928_v7, %v1664_v62  ;;  %v1962_v16 = vsel %vm1931_vm10, %v1929_v58, %v1666_v30  ;;  %2759 = vrot.lane.b32.xlu1 %v2470_v8, %s5051_s18  ;;  %2757 = vrot.lane.b32.xlu0 %v2469_v44, %s5051_s18 }
 0x2a2   : > { %v1864_v9 = vsel %vm1832_vm7, %v1831_v50, %v8723_v35  ;;  %4830 = vmatmul.mubr.msk.f32.gmra.mxu0 %vm1969_vm11, %v1961_v56 }
 0x2a3   : > { %v1897_v13 = vsel %vm1865_vm8, %v1864_v9, %v8724_v41  ;;  %4832 = vmatprep.mubr.msk.f32.mxu0 %vm1969_vm11, %v1962_v16 }
 0x2a4   : > { %v1930_v55 = vsel %vm1898_vm9, %v1897_v13, %v6379_v4  ;;  %v6877_v4 = vld [vmem:[%s8277_s3] ss:$0 sm:$0xff] }
 0x2a5   : > { %v1963_v60 = vsel %vm1931_vm10, %v1930_v55, %v1668_v25 }
 0x2a6   : > { %4833 = vmatmul.mubr.msk.f32.gmra.mxu0 %vm1969_vm11, %v1963_v60 }
 0x325   : > { %v4789_v36 = vpop.f32.mrf.mxu0 }
 0x326   : > { %v2303_v18 = vmul.f32 %v4789_v36, %v6872_v52 }
 0x327   : > { %v2136_v1 = vpop.f32.mrf.mxu0 }
 0x328   : > { %v2342_v39 = vadd.f32 %v6877_v4, %v2303_v18  ;;  %v2302_v47 = vmul.f32 %v6872_v52, %v2136_v1 }
 0x329   : > { %v4792_v3 = vpop.f32.mrf.mxu0 }
 0x32a   : > { %v2374_v2 = vmax.f32 %v2342_v39, 0.0  ;;  %v2341_v51 = vadd.f32 %v6877_v4, %v2302_v47  ;;  %v2305_v5 = vmul.f32 %v4792_v3, %v6872_v52 }
 0x32b   : > { %v2146_v19 = vpop.f32.mrf.mxu0 }
 0x32c   : > { %2406 = vst.msk [vmem:[#allocation2 + $0x21] sm:$0xff] %vm277_vm0, %v2374_v2  ;;  %v2373_v22 = vmax.f32 %v2341_v51, 0.0  ;;  %v2344_v21 = vadd.f32 %v6877_v4, %v2305_v5  ;;  %v2304_v54 = vmul.f32 %v6872_v52, %v2146_v19 }
 0x32d   : > { %v4795_v29 = vpop.f32.mrf.mxu0 }
 0x32e   : > { %2405 = vst.msk [vmem:[#allocation2 + $0x19] sm:$0xff] %vm277_vm0, %v2373_v22  ;;  %v2376_v43 = vmax.f32 %v2344_v21, 0.0  ;;  %v2343_v6 = vadd.f32 %v6877_v4, %v2304_v54  ;;  %v2307_v12 = vmul.f32 %v4795_v29, %v6872_v52 }
 0x32f   : > { %v2156_v46 = vpop.f32.mrf.mxu0 }
 0x330   : > { %2408 = vst.msk [vmem:[#allocation2 + $0x39] sm:$0xff] %vm277_vm0, %v2376_v43  ;;  %v2375_v28 = vmax.f32 %v2343_v6, 0.0  ;;  %v2346_v24 = vadd.f32 %v6877_v4, %v2307_v12  ;;  %v2306_v61 = vmul.f32 %v6872_v52, %v2156_v46 }
 0x331   : > { %v4798_v15 = vpop.f32.mrf.mxu0 }
 0x332   : > { %2407 = vst.msk [vmem:[#allocation2 + $0x31] sm:$0xff] %vm277_vm0, %v2375_v28  ;;  %v2378_v31 = vmax.f32 %v2346_v24, 0.0  ;;  %v2345_v14 = vadd.f32 %v6877_v4, %v2306_v61  ;;  %v2309_v59 = vmul.f32 %v4798_v15, %v6872_v52 }
 0x333   : > { %v2166_v32 = vpop.f32.mrf.mxu0  ;;  %v6896_v49 = vld [vmem:[#allocation2 + $0x21] sm:$0xff] }
 0x334   : > { %2410 = vst.msk [vmem:[#allocation2 + $0x51] sm:$0xff] %vm277_vm0, %v2378_v31  ;;  %v2377_v10 = vmax.f32 %v2345_v14, 0.0  ;;  %v2348_v48 = vadd.f32 %v6877_v4, %v2309_v59  ;;  %v2308_v37 = vmul.f32 %v6872_v52, %v2166_v32  ;;  %2763 = vrot.lane.b32.xlu1 %v6896_v49, %s5051_s18 }
 0x335   : > { %v4801_v34 = vpop.f32.mrf.mxu0  ;;  %v6903_v23 = vld [vmem:[#allocation2 + $0x19] sm:$0xff] }
 0x336   : > { %2409 = vst.msk [vmem:[#allocation2 + $0x49] sm:$0xff] %vm277_vm0, %v2377_v10  ;;  %v2380_v33 = vmax.f32 %v2348_v48, 0.0  ;;  %v2347_v11 = vadd.f32 %v6877_v4, %v2308_v37  ;;  %v2311_v38 = vmul.f32 %v4801_v34, %v6872_v52  ;;  %2761 = vrot.lane.b32.xlu0 %v6903_v23, %s5051_s18 }
 0x337   : > { %v2176_v40 = vpop.f32.mrf.mxu0  ;;  %v6910_v0 = vld [vmem:[#allocation2 + $0x39] sm:$0xff] }
 0x338   : > { %2412 = vst.msk [vmem:[#allocation2 + $0x69] sm:$0xff] %vm277_vm0, %v2380_v33  ;;  %v2379_v42 = vmax.f32 %v2347_v11, 0.0  ;;  %v2350_v20 = vadd.f32 %v6877_v4, %v2311_v38  ;;  %v2310_v30 = vmul.f32 %v6872_v52, %v2176_v40  ;;  %2767 = vrot.lane.b32.xlu1 %v6910_v0, %s5051_s18 }
 0x339   : > { %v4804_v57 = vpop.f32.mrf.mxu0  ;;  %v6917_v26 = vld [vmem:[#allocation2 + $0x31] sm:$0xff] }
 0x33a   : > { %2411 = vst.msk [vmem:[#allocation2 + $0x61] sm:$0xff] %vm277_vm0, %v2379_v42  ;;  %v2382_v45 = vmax.f32 %v2350_v20, 0.0  ;;  %v2349_v63 = vadd.f32 %v6877_v4, %v2310_v30  ;;  %v2313_v27 = vmul.f32 %v4804_v57, %v6872_v52  ;;  %2765 = vrot.lane.b32.xlu0 %v6917_v26, %s5051_s18 }
 0x33b   : > { %v2186_v7 = vpop.f32.mrf.mxu0  ;;  %v6924_v62 = vld [vmem:[#allocation2 + $0x51] sm:$0xff] }
 0x33c   : > { %2414 = vst.msk [vmem:[#allocation2 + $0x81] sm:$0xff] %vm277_vm0, %v2382_v45  ;;  %v2381_v53 = vmax.f32 %v2349_v63, 0.0  ;;  %v2352_v50 = vadd.f32 %v6877_v4, %v2313_v27  ;;  %v2312_v17 = vmul.f32 %v6872_v52, %v2186_v7  ;;  %2771 = vrot.lane.b32.xlu1 %v6924_v62, %s5051_s18 }
 0x33d   : > { %v4807_v58 = vpop.f32.mrf.mxu0  ;;  %v6931_v56 = vld [vmem:[#allocation2 + $0x49] sm:$0xff] }
 0x33e   : > { %2413 = vst.msk [vmem:[#allocation2 + $0x79] sm:$0xff] %vm277_vm0, %v2381_v53  ;;  %v2384_v35 = vmax.f32 %v2352_v50, 0.0  ;;  %v2351_v9 = vadd.f32 %v6877_v4, %v2312_v17  ;;  %v2315_v16 = vmul.f32 %v4807_v58, %v6872_v52  ;;  %2769 = vrot.lane.b32.xlu0 %v6931_v56, %s5051_s18 }
 0x33f   : > { %v2196_v41 = vpop.f32.mrf.mxu0  ;;  %v6938_v13 = vld [vmem:[#allocation2 + $0x69] sm:$0xff] }
 0x340   : > { %2416 = vst.msk [vmem:[#allocation2 + $0x99] sm:$0xff] %vm277_vm0, %v2384_v35  ;;  %v2383_v55 = vmax.f32 %v2351_v9, 0.0  ;;  %v2354_v25 = vadd.f32 %v6877_v4, %v2315_v16  ;;  %v2314_v60 = vmul.f32 %v6872_v52, %v2196_v41  ;;  %2775 = vrot.lane.b32.xlu1 %v6938_v13, %s5051_s18 }
 0x341   : > { %v4810_v8 = vpop.f32.mrf.mxu0  ;;  %v6945_v44 = vld [vmem:[#allocation2 + $0x61] sm:$0xff] }
 0x342   : > { %2415 = vst.msk [vmem:[#allocation2 + $0x91] sm:$0xff] %vm277_vm0, %v2383_v55  ;;  %v2386_v36 = vmax.f32 %v2354_v25, 0.0  ;;  %v2353_v18 = vadd.f32 %v6877_v4, %v2314_v60  ;;  %v2317_v1 = vmul.f32 %v4810_v8, %v6872_v52  ;;  %2773 = vrot.lane.b32.xlu0 %v6945_v44, %s5051_s18 }
 0x343   : > { %v2206_v39 = vpop.f32.mrf.mxu0  ;;  %v6952_v47 = vld [vmem:[#allocation2 + $0x81] sm:$0xff] }
 0x344   : > { %2418 = vst.msk [vmem:[#allocation2 + $0xb1] sm:$0xff] %vm277_vm0, %v2386_v36  ;;  %v2385_v3 = vmax.f32 %v2353_v18, 0.0  ;;  %v2356_v2 = vadd.f32 %v6877_v4, %v2317_v1  ;;  %v2316_v51 = vmul.f32 %v6872_v52, %v2206_v39  ;;  %2779 = vrot.lane.b32.xlu1 %v6952_v47, %s5051_s18 }
 0x345   : > { %v4813_v5 = vpop.f32.mrf.mxu0  ;;  %v6959_v19 = vld [vmem:[#allocation2 + $0x79] sm:$0xff] }
 0x346   : > { %2417 = vst.msk [vmem:[#allocation2 + $0xa9] sm:$0xff] %vm277_vm0, %v2385_v3  ;;  %v2388_v22 = vmax.f32 %v2356_v2, 0.0  ;;  %v2355_v21 = vadd.f32 %v6877_v4, %v2316_v51  ;;  %v2319_v54 = vmul.f32 %v4813_v5, %v6872_v52  ;;  %2777 = vrot.lane.b32.xlu0 %v6959_v19, %s5051_s18 }
 0x347   : > { %v2216_v29 = vpop.f32.mrf.mxu0  ;;  %v6966_v43 = vld [vmem:[#allocation2 + $0x99] sm:$0xff] }
 0x348   : > { %2420 = vst.msk [vmem:[#allocation2 + $0xc9] sm:$0xff] %vm277_vm0, %v2388_v22  ;;  %v2387_v6 = vmax.f32 %v2355_v21, 0.0  ;;  %v2358_v12 = vadd.f32 %v6877_v4, %v2319_v54  ;;  %v2318_v46 = vmul.f32 %v6872_v52, %v2216_v29  ;;  %2783 = vrot.lane.b32.xlu1 %v6966_v43, %s5051_s18 }
 0x349   : > { %v4816_v28 = vpop.f32.mrf.mxu0  ;;  %v6973_v24 = vld [vmem:[#allocation2 + $0x91] sm:$0xff] }
 0x34a   : > { %2419 = vst.msk [vmem:[#allocation2 + $0xc1] sm:$0xff] %vm277_vm0, %v2387_v6  ;;  %v2390_v61 = vmax.f32 %v2358_v12, 0.0  ;;  %v2357_v15 = vadd.f32 %v6877_v4, %v2318_v46  ;;  %v2321_v31 = vmul.f32 %v4816_v28, %v6872_v52  ;;  %2781 = vrot.lane.b32.xlu0 %v6973_v24, %s5051_s18 }
 0x34b   : > { %v2226_v14 = vpop.f32.mrf.mxu0  ;;  %v6980_v59 = vld [vmem:[#allocation2 + $0xb1] sm:$0xff] }
 0x34c   : > { %2422 = vst.msk [vmem:[#allocation2 + $0xe1] sm:$0xff] %vm277_vm0, %v2390_v61  ;;  %v2389_v32 = vmax.f32 %v2357_v15, 0.0  ;;  %v2360_v10 = vadd.f32 %v6877_v4, %v2321_v31  ;;  %v2320_v48 = vmul.f32 %v6872_v52, %v2226_v14  ;;  %2787 = vrot.lane.b32.xlu1 %v6980_v59, %s5051_s18 }
 0x34d   : > { %v4819_v37 = vpop.f32.mrf.mxu0  ;;  %v6987_v34 = vld [vmem:[#allocation2 + $0xa9] sm:$0xff] }
 0x34e   : > { %2421 = vst.msk [vmem:[#allocation2 + $0xd9] sm:$0xff] %vm277_vm0, %v2389_v32  ;;  %v2392_v33 = vmax.f32 %v2360_v10, 0.0  ;;  %v2359_v11 = vadd.f32 %v6877_v4, %v2320_v48  ;;  %v2323_v38 = vmul.f32 %v4819_v37, %v6872_v52  ;;  %2785 = vrot.lane.b32.xlu0 %v6987_v34, %s5051_s18 }
 0x34f   : > { %v2236_v40 = vpop.f32.mrf.mxu0  ;;  %v6994_v42 = vld [vmem:[#allocation2 + $0xc9] sm:$0xff] }
 0x350   : > { %2424 = vst.msk [vmem:[#allocation2 + $0xf9] sm:$0xff] %vm277_vm0, %v2392_v33  ;;  %v2391_v20 = vmax.f32 %v2359_v11, 0.0  ;;  %v2362_v30 = vadd.f32 %v6877_v4, %v2323_v38  ;;  %v2322_v57 = vmul.f32 %v6872_v52, %v2236_v40  ;;  %2791 = vrot.lane.b32.xlu1 %v6994_v42, %s5051_s18 }
 0x351   : > { %v7001_v63 = vld [vmem:[#allocation2 + $0xc1] sm:$0xff] }
 0x352   : > { %2423 = vst.msk [vmem:[#allocation2 + $0xf1] sm:$0xff] %vm277_vm0, %v2391_v20  ;;  %v2394_v27 = vmax.f32 %v2362_v30, 0.0  ;;  %v2361_v7 = vadd.f32 %v6877_v4, %v2322_v57  ;;  %2789 = vrot.lane.b32.xlu0 %v7001_v63, %s5051_s18 }
 0x353   : > { %v4822_v45 = vpop.f32.mrf.mxu0  ;;  %v7008_v17 = vld [vmem:[#allocation2 + $0xe1] sm:$0xff] }
 0x354   : > { %v2325_v53 = vmul.f32 %v4822_v45, %v6872_v52  ;;  %2426 = vst.msk [vmem:[#allocation2 + $0x111] sm:$0xff] %vm277_vm0, %v2394_v27  ;;  %v2393_v58 = vmax.f32 %v2361_v7, 0.0  ;;  %2795 = vrot.lane.b32.xlu1 %v7008_v17, %s5051_s18 }
 0x355   : > { %v2246_v50 = vpop.f32.mrf.mxu0  ;;  %v7015_v41 = vld [vmem:[#allocation2 + $0xd9] sm:$0xff] }
 0x356   : > { %v2364_v35 = vadd.f32 %v6877_v4, %v2325_v53  ;;  %v2324_v9 = vmul.f32 %v6872_v52, %v2246_v50  ;;  %2425 = vst.msk [vmem:[#allocation2 + $0x109] sm:$0xff] %vm277_vm0, %v2393_v58  ;;  %2793 = vrot.lane.b32.xlu0 %v7015_v41, %s5051_s18 }
 0x357   : > { %v2490_v36 = vld [vmem:[#allocation2 + $0xf9] sm:$0xff] }
 0x358   : > { %v4825_v16 = vpop.f32.mrf.mxu0  ;;  %v2396_v55 = vmax.f32 %v2364_v35, 0.0  ;;  %v2363_v25 = vadd.f32 %v6877_v4, %v2324_v9  ;;  %2799 = vrot.lane.b32.xlu1 %v2490_v36, %s5051_s18  ;;  %v7069_v36 = vld [vmem:[#allocation2 + $0x3a] sm:$0xff] }
 0x359   : > { %v2327_v60 = vmul.f32 %v4825_v16, %v6872_v52  ;;  %v2489_v2 = vld [vmem:[#allocation2 + $0xf1] sm:$0xff] }
 0x35a   : > { %v2256_v8 = vpop.f32.mrf.mxu0  ;;  %2428 = vst.msk [vmem:[#allocation2 + $0x129] sm:$0xff] %vm277_vm0, %v2396_v55  ;;  %v2395_v18 = vmax.f32 %v2363_v25, 0.0  ;;  %2797 = vrot.lane.b32.xlu0 %v2489_v2, %s5051_s18  ;;  %v2502_v25 = vld [vmem:[#allocation2 + $0xa] sm:$0xff]  ;;  %v7089_v2 = vld [vmem:[#allocation2 + $0x62] sm:$0xff] }
 0x35b   : > { %v2366_v1 = vadd.f32 %v6877_v4, %v2327_v60  ;;  %v2326_v39 = vmul.f32 %v6872_v52, %v2256_v8  ;;  %v2492_v54 = vld [vmem:[#allocation2 + $0x111] sm:$0xff]  ;;  %v7061_v60 = vld [vmem:[#allocation2 + $0x22] sm:$0xff]  ;;  %v7065_v8 = vld [vmem:[#allocation2 + $0x1a] sm:$0xff] }
 0x35c   : > { %2427 = vst.msk [vmem:[#allocation2 + $0x121] sm:$0xff] %vm277_vm0, %v2395_v18  ;;  %2803 = vrot.lane.b32.xlu1 %v2492_v54, %s5051_s18  ;;  %v7073_v18 = vld [vmem:[#allocation2 + $0x32] sm:$0xff] }
 0x35d   : > { %v2398_v51 = vmax.f32 %v2366_v1, 0.0  ;;  %v2365_v5 = vadd.f32 %v6877_v4, %v2326_v39  ;;  %v2491_v28 = vld [vmem:[#allocation2 + $0x109] sm:$0xff]  ;;  %v7077_v1 = vld [vmem:[#allocation2 + $0x52] sm:$0xff] }
 0x35e   : > { %v4828_v3 = vpop.f32.mrf.mxu0  ;;  %2801 = vrot.lane.b32.xlu0 %v2491_v28, %s5051_s18  ;;  %v7081_v39 = vld [vmem:[#allocation2 + $0x4a] sm:$0xff]  ;;  %v7109_v54 = vld [vmem:[#allocation2 + $0xb2] sm:$0xff]  ;;  %v2519_v28 = vld [vmem:[#allocation2 + $0xda] sm:$0xff] }
 0x35f   : > { %v2329_v22 = vmul.f32 %v4828_v3, %v6872_v52  ;;  %2430 = vst.msk [vmem:[#allocation2 + $0x141] sm:$0xff] %vm277_vm0, %v2398_v51  ;;  %v2397_v29 = vmax.f32 %v2365_v5, 0.0  ;;  %v7085_v3 = vld [vmem:[#allocation2 + $0x6a] sm:$0xff]  ;;  %v7093_v51 = vld [vmem:[#allocation2 + $0x82] sm:$0xff]  ;;  %v7097_v5 = vld [vmem:[#allocation2 + $0x7a] sm:$0xff] }
 0x360   : > { %v2266_v21 = vpop.f32.mrf.mxu0 }
 0x361   : > { %v2368_v6 = vadd.f32 %v6877_v4, %v2329_v22  ;;  %v2328_v12 = vmul.f32 %v6872_v52, %v2266_v21  ;;  %2429 = vst.msk [vmem:[#allocation2 + $0x139] sm:$0xff] %vm277_vm0, %v2397_v29  ;;  %v2494_v32 = vld [vmem:[#allocation2 + $0x129] sm:$0xff]  ;;  %v7101_v22 = vld [vmem:[#allocation2 + $0x9a] sm:$0xff]  ;;  %v7105_v21 = vld [vmem:[#allocation2 + $0x92] sm:$0xff] }
 0x362   : > { %v4831_v46 = vpop.f32.mrf.mxu0  ;;  %2807 = vrot.lane.b32.xlu1 %v2494_v32, %s5051_s18  ;;  %v7113_v29 = vld [vmem:[#allocation2 + $0xaa] sm:$0xff] }
 0x363   : > { %v2400_v61 = vmax.f32 %v2368_v6, 0.0  ;;  %v2367_v15 = vadd.f32 %v6877_v4, %v2328_v12  ;;  %v2331_v31 = vmul.f32 %v4831_v46, %v6872_v52  ;;  %v2493_v11 = vld [vmem:[#allocation2 + $0x121] sm:$0xff]  ;;  %v7117_v6 = vld [vmem:[#allocation2 + $0xca] sm:$0xff] }
 0x364   : > { %v2276_v14 = vpop.f32.mrf.mxu0  ;;  %2805 = vrot.lane.b32.xlu0 %v2493_v11, %s5051_s18  ;;  %v7121_v12 = vld [vmem:[#allocation2 + $0xc2] sm:$0xff]  ;;  %v2526_v32 = vld [vmem:[#allocation2 + $0x12a] sm:$0xff] }
 0x365   : > { %2432 = vst.msk [vmem:[#allocation2 + $0x159] sm:$0xff] %vm277_vm0, %v2400_v61  ;;  %v2399_v10 = vmax.f32 %v2367_v15, 0.0  ;;  %v2370_v48 = vadd.f32 %v6877_v4, %v2331_v31  ;;  %v2330_v37 = vmul.f32 %v6872_v52, %v2276_v14  ;;  %v2520_v46 = vld [vmem:[#allocation2 + $0xe2] sm:$0xff]  ;;  %v2522_v61 = vld [vmem:[#allocation2 + $0xfa] sm:$0xff]  ;;  %v2521_v15 = vld [vmem:[#allocation2 + $0xf2] sm:$0xff] }
 0x366   : > { %v4834_v33 = vpop.f32.mrf.mxu0  ;;  %v2496_v57 = vld [vmem:[#allocation2 + $0x141] sm:$0xff]  ;;  %v2524_v31 = vld [vmem:[#allocation2 + $0x112] sm:$0xff]  ;;  %v2523_v14 = vld [vmem:[#allocation2 + $0x10a] sm:$0xff] }
 0x367   : > { %2431 = vst.msk [vmem:[#allocation2 + $0x151] sm:$0xff] %vm277_vm0, %v2399_v10  ;;  %v2402_v38 = vmax.f32 %v2370_v48, 0.0  ;;  %v2369_v40 = vadd.f32 %v6877_v4, %v2330_v37  ;;  %v2333_v20 = vmul.f32 %v4834_v33, %v6872_v52  ;;  %2811 = vrot.lane.b32.xlu1 %v2496_v57, %s5051_s18  ;;  %v7132_v10 = vpop.permute.xlu1 %2759  ;;  %v2525_v48 = vld [vmem:[#allocation2 + $0x122] sm:$0xff]  ;;  %v7135_v37 = vpop.permute.xlu0 %2757 }
 0x368   : > { %v2286_v30 = vpop.f32.mrf.mxu0  ;;  %v2495_v53 = vld [vmem:[#allocation2 + $0x139] sm:$0xff]  ;;  %v2528_v33 = vld [vmem:[#allocation2 + $0x142] sm:$0xff] }
 0x369   : > { %2434 = vst.msk [vmem:[#allocation2 + $0x171] sm:$0xff] %vm277_vm0, %v2402_v38  ;;  %v2401_v45 = vmax.f32 %v2369_v40, 0.0  ;;  %v2372_v27 = vadd.f32 %v6877_v4, %v2333_v20  ;;  %v2332_v7 = vmul.f32 %v6872_v52, %v2286_v30  ;;  %2809 = vrot.lane.b32.xlu0 %v2495_v53, %s5051_s18  ;;  %v2527_v11 = vld [vmem:[#allocation2 + $0x13a] sm:$0xff] }
 0x36b   : > { %2433 = vst.msk [vmem:[#allocation2 + $0x169] sm:$0xff] %vm277_vm0, %v2401_v45  ;;  %v2404_v50 = vmax.f32 %v2372_v27, 0.0  ;;  %v2371_v58 = vadd.f32 %v6877_v4, %v2332_v7  ;;  %v2501_v4 = vld [vmem:[#allocation2 + $0x2] sm:$0xff] }
 0x36c   : > { %v2498_v35 = vld [vmem:[#allocation2 + $0x159] sm:$0xff] }
 0x36d   : > { %2436 = vst.msk [vmem:[#allocation2 + $0x189] sm:$0xff] %vm277_vm0, %v2404_v50  ;;  %v2403_v9 = vmax.f32 %v2371_v58, 0.0  ;;  %2815 = vrot.lane.b32.xlu1 %v2498_v35, %s5051_s18  ;;  %v2530_v40 = vld [vmem:[#allocation2 + $0x15a] sm:$0xff] }
 0x36e   : > { %v2497_v16 = vld [vmem:[#allocation2 + $0x151] sm:$0xff]  ;;  %v7153_v50 = vld [vmem:[#allocation2 + $0x20] sm:$0xff] }
 0x36f   : > { %2435 = vst.msk [vmem:[#allocation2 + $0x181] sm:$0xff] %vm277_vm0, %v2403_v9  ;;  %2813 = vrot.lane.b32.xlu0 %v2497_v16, %s5051_s18  ;;  %v2529_v30 = vld [vmem:[#allocation2 + $0x152] sm:$0xff]  ;;  %8730 = vst [vmem:[#allocation11_spill] sm:$0xff] %v7153_v50 }
 0x370   : > { %v2500_v52 = vld [vmem:[#allocation2 + $0x171] sm:$0xff] }
 0x371   : > { %2819 = vrot.lane.b32.xlu1 %v2500_v52, %s5051_s18  ;;  %v2532_v45 = vld [vmem:[#allocation2 + $0x172] sm:$0xff] }
 0x372   : > { %v2499_v55 = vld [vmem:[#allocation2 + $0x169] sm:$0xff]  ;;  %v7159_v35 = vld [vmem:[#allocation2 + $0x18] sm:$0xff] }
 0x373   : > { %2817 = vrot.lane.b32.xlu0 %v2499_v55, %s5051_s18  ;;  %v2531_v7 = vld [vmem:[#allocation2 + $0x16a] sm:$0xff]  ;;  %8732 = vst [vmem:[#allocation71_spill] sm:$0xff] %v7159_v35  ;;  %v7165_v16 = vld [vmem:[#allocation2 + $0x38] sm:$0xff]  ;;  %s4558_s18 = scalar_lea.hbm %s8281_s7, %s4702_s14 }
 0x374   : > { %v7171_v55 = vld [vmem:[#allocation2 + $0x30] sm:$0xff] }
 0x375   : > { %2887 = vrot.lane.b32.xlu1 %v2502_v25, %s5052_s19 }
 0x377   : > { %2885 = vrot.lane.b32.xlu0 %v2501_v4, %s5052_s19  ;;  %v7177_v4 = vld [vmem:[#allocation2 + $0x50] sm:$0xff] }
 0x379   : > { %2891 = vrot.lane.b32.xlu1 %v7061_v60, %s5052_s19 }
 0x37b   : > { %2889 = vrot.lane.b32.xlu0 %v7065_v8, %s5052_s19 }
 0x37d   : > { %2895 = vrot.lane.b32.xlu1 %v7069_v36, %s5052_s19 }
 0x37f   : > { %2893 = vrot.lane.b32.xlu0 %v7073_v18, %s5052_s19 }
 0x381   : > { %2899 = vrot.lane.b32.xlu1 %v7077_v1, %s5052_s19 }
 0x383   : > { %2897 = vrot.lane.b32.xlu0 %v7081_v39, %s5052_s19 }
 0x385   : > { %2903 = vrot.lane.b32.xlu1 %v7085_v3, %s5052_s19 }
 0x387   : > { %2901 = vrot.lane.b32.xlu0 %v7089_v2, %s5052_s19 }
 0x389   : > { %2907 = vrot.lane.b32.xlu1 %v7093_v51, %s5052_s19 }
 0x38b   : > { %2905 = vrot.lane.b32.xlu0 %v7097_v5, %s5052_s19 }
 0x38d   : > { %2911 = vrot.lane.b32.xlu1 %v7101_v22, %s5052_s19 }
 0x38f   : > { %2909 = vrot.lane.b32.xlu0 %v7105_v21, %s5052_s19 }
 0x391   : > { %2915 = vrot.lane.b32.xlu1 %v7109_v54, %s5052_s19 }
 0x393   : > { %2913 = vrot.lane.b32.xlu0 %v7113_v29, %s5052_s19 }
 0x395   : > { %2919 = vrot.lane.b32.xlu1 %v7117_v6, %s5052_s19 }
 0x397   : > { %2917 = vrot.lane.b32.xlu0 %v7121_v12, %s5052_s19 }
 0x399   : > { %2923 = vrot.lane.b32.xlu1 %v2520_v46, %s5052_s19 }
 0x39b   : > { %2921 = vrot.lane.b32.xlu0 %v2519_v28, %s5052_s19  ;;  %v7183_v28 = vld [vmem:[#allocation2 + $0x48] sm:$0xff] }
 0x39d   : > { %2927 = vrot.lane.b32.xlu1 %v2522_v61, %s5052_s19 }
 0x39f   : > { %2925 = vrot.lane.b32.xlu0 %v2521_v15, %s5052_s19  ;;  %v7189_v15 = vld [vmem:[#allocation2 + $0x68] sm:$0xff] }
 0x3a1   : > { %2931 = vrot.lane.b32.xlu1 %v2524_v31, %s5052_s19 }
 0x3a3   : > { %2929 = vrot.lane.b32.xlu0 %v2523_v14, %s5052_s19  ;;  %v7195_v14 = vld [vmem:[#allocation2 + $0x60] sm:$0xff] }
 0x3a5   : > { %2935 = vrot.lane.b32.xlu1 %v2526_v32, %s5052_s19 }
 0x3a6   : > { %v7138_v38 = vpop.permute.xlu1 %2763 }
 0x3a7   : > { %2933 = vrot.lane.b32.xlu0 %v2525_v48, %s5052_s19  ;;  %8725 = vst [vmem:[#allocation7_spill] sm:$0xff] %v7138_v38  ;;  %v7201_v48 = vld [vmem:[#allocation2 + $0x80] sm:$0xff] }
 0x3a8   : > { %v7141_v20 = vpop.permute.xlu0 %2761 }
 0x3a9   : > { %2939 = vrot.lane.b32.xlu1 %v2528_v33, %s5052_s19  ;;  %8726 = vst [vmem:[#allocation9_spill] sm:$0xff] %v7141_v20 }
 0x3aa   : > { %v7144_v57 = vpop.permute.xlu1 %2767 }
 0x3ab   : > { %2937 = vrot.lane.b32.xlu0 %v2527_v11, %s5052_s19  ;;  %8727 = vst [vmem:[#allocation69_spill] sm:$0xff] %v7144_v57  ;;  %v7207_v11 = vld [vmem:[#allocation2 + $0x78] sm:$0xff]  ;;  %v7279_v57 = vld [vmem:[#allocation2 + $0x108] sm:$0xff] }
 0x3ac   : > { %v7147_v27 = vpop.permute.xlu0 %2765  ;;  %8757 = vst [vmem:[#allocation59_spill] sm:$0xff] %v7279_v57 }
 0x3ad   : > { %2943 = vrot.lane.b32.xlu1 %v2530_v40, %s5052_s19  ;;  %8728 = vst [vmem:[#allocation68_spill] sm:$0xff] %v7147_v27  ;;  %v7285_v27 = vld [vmem:[#allocation2 + $0x128] sm:$0xff] }
 0x3ae   : > { %v7150_v53 = vpop.permute.xlu1 %2771  ;;  %8759 = vst [vmem:[#allocation79_spill] sm:$0xff] %v7285_v27 }
 0x3af   : > { %2941 = vrot.lane.b32.xlu0 %v2529_v30, %s5052_s19  ;;  %8729 = vst [vmem:[#allocation13_spill] sm:$0xff] %v7150_v53  ;;  %v7213_v30 = vld [vmem:[#allocation2 + $0x98] sm:$0xff]  ;;  %v7267_v53 = vld [vmem:[#allocation2 + $0xf0] sm:$0xff] }
 0x3b0   : > { %v7155_v58 = vpop.permute.xlu0 %2769  ;;  %8753 = vst [vmem:[#allocation10_spill] sm:$0xff] %v7267_v53 }
 0x3b1   : > { %2947 = vrot.lane.b32.xlu1 %v2532_v45, %s5052_s19  ;;  %8731 = vst [vmem:[#allocation72_spill] sm:$0xff] %v7155_v58  ;;  %v7273_v58 = vld [vmem:[#allocation2 + $0x110] sm:$0xff] }
 0x3b2   : > { %v7161_v9 = vpop.permute.xlu1 %2775  ;;  %8755 = vst [vmem:[#allocation30_spill] sm:$0xff] %v7273_v58 }
 0x3b3   : > { %2945 = vrot.lane.b32.xlu0 %v2531_v7, %s5052_s19  ;;  %8733 = vst [vmem:[#allocation16_spill] sm:$0xff] %v7161_v9  ;;  %v7219_v7 = vld [vmem:[#allocation2 + $0x90] sm:$0xff]  ;;  %v7255_v9 = vld [vmem:[#allocation2 + $0xd8] sm:$0xff] }
 0x3b4   : > { %v7167_v52 = vpop.permute.xlu0 %2773 }
 0x3b5   : > { %3015 = vrot.lane.b32.xlu1 %v7153_v50, %s5053_s20  ;;  %8734 = vst [vmem:[#allocation14_spill] sm:$0xff] %v7167_v52  ;;  %v7261_v52 = vld [vmem:[#allocation2 + $0xf8] sm:$0xff]  ;;  %v7291_v50 = vld [vmem:[#allocation2 + $0x120] sm:$0xff] }
 0x3b6   : > { %v7173_v25 = vpop.permute.xlu1 %2779  ;;  %8751 = vst [vmem:[#allocation156_spill] sm:$0xff] %v7261_v52  ;;  %8761 = vst [vmem:[#allocation135_spill] sm:$0xff] %v7291_v50 }
 0x3b7   : > { %3013 = vrot.lane.b32.xlu0 %v7159_v35, %s5053_s20  ;;  %8735 = vst [vmem:[#allocation74_spill] sm:$0xff] %v7173_v25  ;;  %v7243_v25 = vld [vmem:[#allocation2 + $0xc0] sm:$0xff]  ;;  %v2465_v35 = vld [vmem:[#allocation2 + $0x150] sm:$0xff] }
 0x3b8   : > { %v7179_v46 = vpop.permute.xlu0 %2777 }
 0x3b9   : > { %3019 = vrot.lane.b32.xlu1 %v7165_v16, %s5053_s20  ;;  %8736 = vst [vmem:[#allocation73_spill] sm:$0xff] %v7179_v46  ;;  %v7249_v46 = vld [vmem:[#allocation2 + $0xe0] sm:$0xff] }
 0x3ba   : > { %v7185_v61 = vpop.permute.xlu1 %2783 }
 0x3bb   : > { %3017 = vrot.lane.b32.xlu0 %v7171_v55, %s5053_s20  ;;  %8737 = vst [vmem:[#allocation19_spill] sm:$0xff] %v7185_v61  ;;  %v7231_v61 = vld [vmem:[#allocation2 + $0xa8] sm:$0xff] }
 0x3bc   : > { %v7191_v31 = vpop.permute.xlu0 %2781  ;;  %8745 = vst [vmem:[#allocation77_spill] sm:$0xff] %v7231_v61 }
 0x3bd   : > { %3023 = vrot.lane.b32.xlu1 %v7177_v4, %s5053_s20  ;;  %8738 = vst [vmem:[#allocation17_spill] sm:$0xff] %v7191_v31  ;;  %v7237_v31 = vld [vmem:[#allocation2 + $0xc8] sm:$0xff] }
 0x3be   : > { %v7197_v32 = vpop.permute.xlu1 %2787 }
 0x3bf   : > { %3021 = vrot.lane.b32.xlu0 %v7183_v28, %s5053_s20  ;;  %8739 = vst [vmem:[#allocation75_spill] sm:$0xff] %v7197_v32 }
 0x3c0   : > { %v7203_v33 = vpop.permute.xlu0 %2785 }
 0x3c1   : > { %3027 = vrot.lane.b32.xlu1 %v7189_v15, %s5053_s20  ;;  %8740 = vst [vmem:[#allocation22_spill] sm:$0xff] %v7203_v33  ;;  %v7225_v33 = vld [vmem:[#allocation2 + $0xb0] sm:$0xff] }
 0x3c2   : > { %v7209_v40 = vpop.permute.xlu1 %2791 }
 0x3c3   : > { %3025 = vrot.lane.b32.xlu0 %v7195_v14, %s5053_s20  ;;  %8741 = vst [vmem:[#allocation20_spill] sm:$0xff] %v7209_v40 }
 0x3c4   : > { %v7215_v45 = vpop.permute.xlu0 %2789 }
 0x3c5   : > { %3031 = vrot.lane.b32.xlu1 %v7201_v48, %s5053_s20  ;;  %8742 = vst [vmem:[#allocation26_spill] sm:$0xff] %v7215_v45 }
 0x3c6   : > { %v7221_v32 = vpop.permute.xlu1 %2795 }
 0x3c7   : > { %3029 = vrot.lane.b32.xlu0 %v7207_v11, %s5053_s20  ;;  %8743 = vst [vmem:[#allocation55_spill] sm:$0xff] %v7221_v32 }
 0x3c8   : > { %v7227_v40 = vpop.permute.xlu0 %2793 }
 0x3c9   : > { %3035 = vrot.lane.b32.xlu1 %v7213_v30, %s5053_s20  ;;  %8744 = vst [vmem:[#allocation24_spill] sm:$0xff] %v7227_v40 }
 0x3ca   : > { %v7233_v45 = vpop.permute.xlu1 %2799 }
 0x3cb   : > { %3033 = vrot.lane.b32.xlu0 %v7219_v7, %s5053_s20  ;;  %8746 = vst [vmem:[#allocation53_spill] sm:$0xff] %v7233_v45 }
 0x3cc   : > { %v7239_v32 = vpop.permute.xlu0 %2797 }
 0x3cd   : > { %3039 = vrot.lane.b32.xlu1 %v7225_v33, %s5053_s20  ;;  %8747 = vst [vmem:[#allocation133_spill] sm:$0xff] %v7239_v32 }
 0x3ce   : > { %v7245_v40 = vpop.permute.xlu1 %2803 }
 0x3cf   : > { %3037 = vrot.lane.b32.xlu0 %v7231_v61, %s5053_s20  ;;  %8748 = vst [vmem:[#allocation76_spill] sm:$0xff] %v7245_v40 }
 0x3d0   : > { %v7251_v45 = vpop.permute.xlu0 %2801 }
 0x3d1   : > { %3043 = vrot.lane.b32.xlu1 %v7237_v31, %s5053_s20  ;;  %8749 = vst [vmem:[#allocation98_spill] sm:$0xff] %v7251_v45 }
 0x3d3   : > { %3041 = vrot.lane.b32.xlu0 %v7243_v25, %s5053_s20 }
 0x3d4   : > { %v7257_v32 = vpop.permute.xlu1 %2807 }
 0x3d5   : > { %3047 = vrot.lane.b32.xlu1 %v7249_v46, %s5053_s20  ;;  %8750 = vst [vmem:[#allocation132_spill] sm:$0xff] %v7257_v32 }
 0x3d6   : > { %v7263_v40 = vpop.permute.xlu0 %2805 }
 0x3d7   : > { %3045 = vrot.lane.b32.xlu0 %v7255_v9, %s5053_s20  ;;  %8752 = vst [vmem:[#allocation97_spill] sm:$0xff] %v7263_v40 }
 0x3d9   : > { %3051 = vrot.lane.b32.xlu1 %v7261_v52, %s5053_s20  ;;  %v7269_v45 = vpop.permute.xlu1 %2811 }
 0x3da   : > { %8754 = vst [vmem:[#allocation155_spill] sm:$0xff] %v7269_v45 }
 0x3db   : > { %3049 = vrot.lane.b32.xlu0 %v7267_v53, %s5053_s20  ;;  %v7275_v32 = vpop.permute.xlu0 %2809 }
 0x3dc   : > { %8756 = vst [vmem:[#allocation8_spill] sm:$0xff] %v7275_v32 }
 0x3dd   : > { %3055 = vrot.lane.b32.xlu1 %v7273_v58, %s5053_s20  ;;  %v2464_v58 = vld [vmem:[#allocation2 + $0x140] sm:$0xff] }
 0x3df   : > { %v7281_v40 = vpop.permute.xlu1 %2815  ;;  %3053 = vrot.lane.b32.xlu0 %v7279_v57, %s5053_s20  ;;  %v2463_v57 = vld [vmem:[#allocation2 + $0x138] sm:$0xff] }
 0x3e0   : > { %8758 = vst [vmem:[#allocation28_spill] sm:$0xff] %v7281_v40 }
 0x3e1   : > { %v7287_v45 = vpop.permute.xlu0 %2813  ;;  %3059 = vrot.lane.b32.xlu1 %v7285_v27, %s5053_s20 }
 0x3e2   : > { %8760 = vst [vmem:[#allocation57_spill] sm:$0xff] %v7287_v45  ;;  %v2466_v45 = vld [vmem:[#allocation2 + $0x158] sm:$0xff] }
 0x3e3   : > { %v7293_v32 = vpop.permute.xlu1 %2819  ;;  %3057 = vrot.lane.b32.xlu0 %v7291_v50, %s5053_s20  ;;  %v2468_v50 = vld [vmem:[#allocation2 + $0x170] sm:$0xff] }
 0x3e4   : > { %8762 = vst [vmem:[#allocation78_spill] sm:$0xff] %v7293_v32 }
 0x3e5   : > { %3063 = vrot.lane.b32.xlu1 %v2464_v58, %s5053_s20  ;;  %v7298_v40 = vpop.permute.xlu0 %2817 }
 0x3e6   : > { %8763 = vst [vmem:[#allocation100_spill] sm:$0xff] %v7298_v40  ;;  %v2467_v40 = vld [vmem:[#allocation2 + $0x168] sm:$0xff] }
 0x3e7   : > { %v7300_v38 = vpop.permute.xlu1 %2887  ;;  %3061 = vrot.lane.b32.xlu0 %v2463_v57, %s5053_s20  ;;  %v2564_v57 = vld [vmem:[#allocation2 + $0x188] sm:$0xff] }
 0x3e9   : > { %3067 = vrot.lane.b32.xlu1 %v2466_v45, %s5053_s20  ;;  %v7304_v27 = vpop.permute.xlu0 %2885  ;;  %v2563_v45 = vld [vmem:[#allocation2 + $0x180] sm:$0xff] }
 0x3eb   : > { %v7306_v32 = vpop.permute.xlu1 %2891  ;;  %3065 = vrot.lane.b32.xlu0 %v2465_v35, %s5053_s20 }
 0x3ed   : > { %3071 = vrot.lane.b32.xlu1 %v2468_v50, %s5053_s20  ;;  %v7310_v58 = vpop.permute.xlu0 %2889 }
 0x3ef   : > { %v7312_v20 = vpop.permute.xlu1 %2895  ;;  %3069 = vrot.lane.b32.xlu0 %v2467_v40, %s5053_s20 }
 0x3f1   : > { %v7315_v53 = vpop.permute.xlu0 %2893  ;;  %3075 = vrot.lane.b32.xlu1 %v2564_v57, %s5053_s20 }
 0x3f3   : > { %v7318_v52 = vpop.permute.xlu1 %2899  ;;  %3073 = vrot.lane.b32.xlu0 %v2563_v45, %s5053_s20 }
 0x3f5   : > { %v7321_v35 = vpop.permute.xlu0 %2897  ;;  %3143 = vrot.lane.b32.xlu1 %v6896_v49, %s5054_s21 }
 0x3f7   : > { %v7325_v50 = vpop.permute.xlu1 %2903  ;;  %3141 = vrot.lane.b32.xlu0 %v6903_v23, %s5054_s21 }
 0x3f8   : > { %8764 = vst [vmem:[#allocation134_spill] sm:$0xff] %v7325_v50 }
 0x3f9   : > { %v7329_v40 = vpop.permute.xlu0 %2901  ;;  %3147 = vrot.lane.b32.xlu1 %v6910_v0, %s5054_s21 }
 0x3fb   : > { %v7333_v57 = vpop.permute.xlu1 %2907  ;;  %3145 = vrot.lane.b32.xlu0 %v6917_v26, %s5054_s21 }
 0x3fc   : > { %8765 = vst [vmem:[#allocation158_spill] sm:$0xff] %v7333_v57 }
 0x3fd   : > { %v7337_v45 = vpop.permute.xlu0 %2905  ;;  %3151 = vrot.lane.b32.xlu1 %v6924_v62, %s5054_s21 }
 0x3fe   : > { %8766 = vst [vmem:[#allocation99_spill] sm:$0xff] %v7337_v45 }
 0x3ff   : > { %v7341_v49 = vpop.permute.xlu1 %2911  ;;  %3149 = vrot.lane.b32.xlu0 %v6931_v56, %s5054_s21 }
 0x400   : > { %8767 = vst [vmem:[#allocation15_spill] sm:$0xff] %v7341_v49 }
 0x401   : > { %v7345_v23 = vpop.permute.xlu0 %2909  ;;  %3155 = vrot.lane.b32.xlu1 %v6938_v13, %s5054_s21 }
 0x403   : > { %v7349_v50 = vpop.permute.xlu1 %2915  ;;  %3153 = vrot.lane.b32.xlu0 %v6945_v44, %s5054_s21 }
 0x404   : > { %8768 = vst [vmem:[#allocation157_spill] sm:$0xff] %v7349_v50  ;;  %v2676_v50 = vld [vmem:[#allocation2 + $0xe1] sm:$0xff] }
 0x405   : > { %v7353_v57 = vpop.permute.xlu0 %2913  ;;  %3159 = vrot.lane.b32.xlu1 %v6952_v47, %s5054_s21 }
 0x406   : > { %8769 = vst [vmem:[#allocation34_spill] sm:$0xff] %v7353_v57  ;;  %v2613_v57 = vld [vmem:[#allocation2 + $0xda] sm:$0xff] }
 0x407   : > { %v7357_v45 = vpop.permute.xlu1 %2919  ;;  %3157 = vrot.lane.b32.xlu0 %v6959_v19, %s5054_s21 }
 0x408   : > { %8770 = vst [vmem:[#allocation12_spill] sm:$0xff] %v7357_v45 }
 0x409   : > { %v7361_v49 = vpop.permute.xlu0 %2917  ;;  %3163 = vrot.lane.b32.xlu1 %v6966_v43, %s5054_s21 }
 0x40a   : > { %8771 = vst [vmem:[#allocation63_spill] sm:$0xff] %v7361_v49  ;;  %v2673_v49 = vld [vmem:[#allocation2 + $0xc1] sm:$0xff] }
 0x40b   : > { %v7365_v13 = vpop.permute.xlu1 %2923  ;;  %3161 = vrot.lane.b32.xlu0 %v6973_v24, %s5054_s21  ;;  %v4009_v24 = vld [vmem:[%s8278_s4 + $0x20] sm:$0xf] }
 0x40c   : > { %8772 = vst [vmem:[#allocation32_spill] sm:$0xff] %v7365_v13  ;;  %4835 = vmatprep.subr.msk.mxu1 %vm2066_vm3, %v4009_v24 }
 0x40d   : > { %v7369_v44 = vpop.permute.xlu0 %2921  ;;  %3167 = vrot.lane.b32.xlu1 %v6980_v59, %s5054_s21  ;;  %4836 = vmatpush3.msk.msra.mxu1 %vm2066_vm3, %v4009_v24  ;;  %v4006_v24 = vld [vmem:[%s8278_s4 + $0x8] sm:$0xff] }
 0x40e   : > { %8773 = vst [vmem:[#allocation81_spill] sm:$0xff] %v7369_v44 }
 0x40f   : > { %v7373_v47 = vpop.permute.xlu1 %2927  ;;  %3165 = vrot.lane.b32.xlu0 %v6987_v34, %s5054_s21  ;;  %v4008_v34 = vld [vmem:[%s8278_s4 + $0x18] sm:$0xff] }
 0x410   : > { %8774 = vst [vmem:[#allocation61_spill] sm:$0xff] %v7373_v47  ;;  %4837 = vmatprep.subr.mxu1 %v4008_v34 }
 0x411   : > { %v7377_v19 = vpop.permute.xlu0 %2925  ;;  %3171 = vrot.lane.b32.xlu1 %v6994_v42, %s5054_s21  ;;  %4838 = vmatpush3.msra.mxu1 %v4008_v34 }
 0x412   : > { %8775 = vst [vmem:[#allocation137_spill] sm:$0xff] %v7377_v19 }
 0x413   : > { %v7381_v43 = vpop.permute.xlu1 %2931  ;;  %3169 = vrot.lane.b32.xlu0 %v7001_v63, %s5054_s21  ;;  %v4007_v63 = vld [vmem:[%s8278_s4 + $0x10] sm:$0xff] }
 0x414   : > { %8776 = vst [vmem:[#allocation80_spill] sm:$0xff] %v7381_v43  ;;  %4839 = vmatprep.subr.mxu1 %v4007_v63  ;;  %v2665_v43 = vld [vmem:[#allocation2 + $0x61] sm:$0xff] }
 0x415   : > { %v7388_v59 = vpop.permute.xlu0 %2929  ;;  %3175 = vrot.lane.b32.xlu1 %v7008_v17, %s5054_s21  ;;  %4840 = vmatpush3.msra.mxu1 %v4007_v63 }
 0x416   : > { %8777 = vst [vmem:[#allocation102_spill] sm:$0xff] %v7388_v59  ;;  %4841 = vmatprep.subr.mxu1 %v4006_v24 }
 0x417   : > { %v7397_v42 = vpop.permute.xlu1 %2935  ;;  %3173 = vrot.lane.b32.xlu0 %v7015_v41, %s5054_s21  ;;  %4842 = vmatpush3.msra.mxu1 %v4006_v24  ;;  %v4005_v41 = vld [vmem:[%s8278_s4] sm:$0xff] }
 0x418   : > { %8778 = vst [vmem:[#allocation136_spill] sm:$0xff] %v7397_v42  ;;  %4843 = vmatprep.subr.mxu1 %v4005_v41 }
 0x419   : > { %v7404_v17 = vpop.permute.xlu0 %2933  ;;  %3271 = vrot.lane.b32.xlu1 %v7061_v60, %s5055_s22  ;;  %4844 = vmatpush3.msra.mxu1 %v4005_v41 }
 0x41a   : > { %8779 = vst [vmem:[#allocation160_spill] sm:$0xff] %v7404_v17 }
 0x41b   : > { %v7411_v42 = vpop.permute.xlu1 %2939  ;;  %3269 = vrot.lane.b32.xlu0 %v7065_v8, %s5055_s22 }
 0x41c   : > { %8780 = vst [vmem:[#allocation101_spill] sm:$0xff] %v7411_v42 }
 0x41d   : > { %v7418_v34 = vpop.permute.xlu0 %2937  ;;  %3399 = vrot.lane.b32.xlu1 %v7165_v16, %s5056_s23 }
 0x41e   : > { %8781 = vst [vmem:[#allocation21_spill] sm:$0xff] %v7418_v34 }
 0x41f   : > { %v7422_v60 = vpop.permute.xlu1 %2943  ;;  %3397 = vrot.lane.b32.xlu0 %v7171_v55, %s5056_s23 }
 0x420   : > { %8782 = vst [vmem:[#allocation159_spill] sm:$0xff] %v7422_v60 }
 0x421   : > { %v7426_v63 = vpop.permute.xlu0 %2941  ;;  %3527 = vrot.lane.b32.xlu1 %v6910_v0, %s5057_s29 }
 0x422   : > { %8783 = vst [vmem:[#allocation38_spill] sm:$0xff] %v7426_v63 }
 0x423   : > { %v7430_v8 = vpop.permute.xlu1 %2947  ;;  %3525 = vrot.lane.b32.xlu0 %v6917_v26, %s5057_s29 }
 0x424   : > { %8784 = vst [vmem:[#allocation18_spill] sm:$0xff] %v7430_v8 }
 0x425   : > { %v7434_v24 = vpop.permute.xlu0 %2945  ;;  %3273 = vrot.lane.b32.xlu1 %v7073_v18, %s5055_s22 }
 0x426   : > { %8785 = vst [vmem:[#allocation67_spill] sm:$0xff] %v7434_v24 }
 0x427   : > { %v7438_v41 = vpop.permute.xlu1 %3015  ;;  %3653 = vrot.lane.b32.xlu0 %v7073_v18, %s5058_s15 }
 0x429   : > { %v7442_v60 = vpop.permute.xlu0 %3013  ;;  %3275 = vrot.lane.b32.xlu1 %v7069_v36, %s5055_s22 }
 0x42b   : > { %v7446_v0 = vpop.permute.xlu1 %3019  ;;  %3655 = vrot.lane.b32.xlu0 %v7069_v36, %s5058_s15 }
 0x42d   : > { %v7450_v26 = vpop.permute.xlu0 %3017  ;;  %3403 = vrot.lane.b32.xlu1 %v7177_v4, %s5056_s23 }
 0x42f   : > { %v7454_v24 = vpop.permute.xlu1 %3023  ;;  %3401 = vrot.lane.b32.xlu0 %v7183_v28, %s5056_s23 }
 0x431   : > { %v7458_v18 = vpop.permute.xlu0 %3021  ;;  %3531 = vrot.lane.b32.xlu1 %v6924_v62, %s5057_s29 }
 0x433   : > { %v7462_v8 = vpop.permute.xlu1 %3027  ;;  %3529 = vrot.lane.b32.xlu0 %v6931_v56, %s5057_s29 }
 0x435   : > { %v7466_v36 = vpop.permute.xlu0 %3025  ;;  %3277 = vrot.lane.b32.xlu1 %v7081_v39, %s5055_s22 }
 0x437   : > { %v7470_v63 = vpop.permute.xlu1 %3031  ;;  %3657 = vrot.lane.b32.xlu0 %v7081_v39, %s5058_s15  ;;  %v2666_v39 = vld [vmem:[#allocation2 + $0x69] sm:$0xff] }
 0x439   : > { %v7474_v42 = vpop.permute.xlu0 %3029  ;;  %3279 = vrot.lane.b32.xlu1 %v7077_v1, %s5055_s22 }
 0x43b   : > { %v7478_v62 = vpop.permute.xlu1 %3035  ;;  %3659 = vrot.lane.b32.xlu0 %v7077_v1, %s5058_s15 }
 0x43d   : > { %v7482_v56 = vpop.permute.xlu0 %3033  ;;  %3407 = vrot.lane.b32.xlu1 %v7189_v15, %s5056_s23 }
 0x43f   : > { %v7486_v34 = vpop.permute.xlu1 %3039  ;;  %3405 = vrot.lane.b32.xlu0 %v7195_v14, %s5056_s23 }
 0x441   : > { %v7490_v17 = vpop.permute.xlu0 %3037  ;;  %3535 = vrot.lane.b32.xlu1 %v2666_v39, %s5057_s29 }
 0x443   : > { %v7493_v59 = vpop.permute.xlu1 %3043  ;;  %3533 = vrot.lane.b32.xlu0 %v2665_v43, %s5057_s29 }
 0x444   : > { %8786 = vst [vmem:[#allocation36_spill] sm:$0xff] %v7493_v59 }
 0x445   : > { %v7496_v1 = vpop.permute.xlu0 %3041  ;;  %3281 = vrot.lane.b32.xlu1 %v7089_v2, %s5055_s22 }
 0x446   : > { %8787 = vst [vmem:[#allocation83_spill] sm:$0xff] %v7496_v1 }
 0x447   : > { %v7500_v47 = vpop.permute.xlu1 %3047  ;;  %3661 = vrot.lane.b32.xlu0 %v7089_v2, %s5058_s15  ;;  %v2668_v2 = vld [vmem:[#allocation2 + $0x81] sm:$0xff] }
 0x448   : > { %8788 = vst [vmem:[#allocation65_spill] sm:$0xff] %v7500_v47  ;;  %v2667_v47 = vld [vmem:[#allocation2 + $0x79] sm:$0xff] }
 0x449   : > { %v7504_v19 = vpop.permute.xlu0 %3045  ;;  %3283 = vrot.lane.b32.xlu1 %v7085_v3, %s5055_s22 }
 0x44a   : > { %8789 = vst [vmem:[#allocation139_spill] sm:$0xff] %v7504_v19 }
 0x44b   : > { %v7508_v39 = vpop.permute.xlu1 %3051  ;;  %3663 = vrot.lane.b32.xlu0 %v7085_v3, %s5058_s15 }
 0x44c   : > { %8790 = vst [vmem:[#allocation82_spill] sm:$0xff] %v7508_v39 }
 0x44d   : > { %v7512_v43 = vpop.permute.xlu0 %3049  ;;  %3411 = vrot.lane.b32.xlu1 %v7201_v48, %s5056_s23 }
 0x44e   : > { %8791 = vst [vmem:[#allocation104_spill] sm:$0xff] %v7512_v43 }
 0x44f   : > { %v7516_v13 = vpop.permute.xlu1 %3055  ;;  %3409 = vrot.lane.b32.xlu0 %v7207_v11, %s5056_s23 }
 0x450   : > { %8792 = vst [vmem:[#allocation138_spill] sm:$0xff] %v7516_v13 }
 0x451   : > { %v7520_v44 = vpop.permute.xlu0 %3053  ;;  %3539 = vrot.lane.b32.xlu1 %v2668_v2, %s5057_s29 }
 0x452   : > { %8793 = vst [vmem:[#allocation162_spill] sm:$0xff] %v7520_v44 }
 0x453   : > { %v7523_v39 = vpop.permute.xlu1 %3059  ;;  %3537 = vrot.lane.b32.xlu0 %v2667_v47, %s5057_s29 }
 0x454   : > { %8794 = vst [vmem:[#allocation103_spill] sm:$0xff] %v7523_v39 }
 0x455   : > { %v7526_v3 = vpop.permute.xlu0 %3057  ;;  %3285 = vrot.lane.b32.xlu1 %v7097_v5, %s5055_s22 }
 0x456   : > { %8795 = vst [vmem:[#allocation25_spill] sm:$0xff] %v7526_v3 }
 0x457   : > { %v7530_v43 = vpop.permute.xlu1 %3063  ;;  %3665 = vrot.lane.b32.xlu0 %v7097_v5, %s5058_s15  ;;  %v2670_v5 = vld [vmem:[#allocation2 + $0x99] sm:$0xff] }
 0x458   : > { %8796 = vst [vmem:[#allocation161_spill] sm:$0xff] %v7530_v43 }
 0x459   : > { %v7534_v13 = vpop.permute.xlu0 %3061  ;;  %3287 = vrot.lane.b32.xlu1 %v7093_v51, %s5055_s22 }
 0x45a   : > { %8797 = vst [vmem:[#allocation42_spill] sm:$0xff] %v7534_v13  ;;  %v2669_v13 = vld [vmem:[#allocation2 + $0x91] sm:$0xff] }
 0x45b   : > { %v7538_v2 = vpop.permute.xlu1 %3067  ;;  %3667 = vrot.lane.b32.xlu0 %v7093_v51, %s5058_s15 }
 0x45c   : > { %8798 = vst [vmem:[#allocation23_spill] sm:$0xff] %v7538_v2 }
 0x45d   : > { %v7542_v47 = vpop.permute.xlu0 %3065  ;;  %3415 = vrot.lane.b32.xlu1 %v7213_v30, %s5056_s23 }
 0x45e   : > { %8799 = vst [vmem:[#allocation118_spill] sm:$0xff] %v7542_v47 }
 0x45f   : > { %v7546_v39 = vpop.permute.xlu1 %3071  ;;  %3413 = vrot.lane.b32.xlu0 %v7219_v7, %s5056_s23 }
 0x460   : > { %8800 = vst [vmem:[#allocation40_spill] sm:$0xff] %v7546_v39 }
 0x461   : > { %v7550_v43 = vpop.permute.xlu0 %3069  ;;  %3543 = vrot.lane.b32.xlu1 %v2670_v5, %s5057_s29 }
 0x462   : > { %8801 = vst [vmem:[#allocation85_spill] sm:$0xff] %v7550_v43  ;;  %v2671_v43 = vld [vmem:[#allocation2 + $0xa9] sm:$0xff] }
 0x463   : > { %v7553_v2 = vpop.permute.xlu1 %3075  ;;  %3541 = vrot.lane.b32.xlu0 %v2669_v13, %s5057_s29 }
 0x464   : > { %8802 = vst [vmem:[#allocation70_spill] sm:$0xff] %v7553_v2 }
 0x465   : > { %3289 = vrot.lane.b32.xlu1 %v7105_v21, %s5055_s22  ;;  %v7558_v51 = vpop.permute.xlu0 %3073 }
 0x466   : > { %8803 = vst [vmem:[#allocation141_spill] sm:$0xff] %v7558_v51 }
 0x467   : > { %v7560_v47 = vpop.permute.xlu1 %3143  ;;  %3669 = vrot.lane.b32.xlu0 %v7105_v21, %s5058_s15  ;;  %v2672_v21 = vld [vmem:[#allocation2 + $0xb1] sm:$0xff] }
 0x469   : > { %3291 = vrot.lane.b32.xlu1 %v7101_v22, %s5055_s22  ;;  %v3142_v39 = vpop.permute.xlu0 %3141 }
 0x46b   : > { %v7566_v5 = vpop.permute.xlu1 %3147  ;;  %3671 = vrot.lane.b32.xlu0 %v7101_v22, %s5058_s15 }
 0x46d   : > { %3419 = vrot.lane.b32.xlu1 %v7225_v33, %s5056_s23  ;;  %v7572_v13 = vpop.permute.xlu0 %3145 }
 0x46f   : > { %v7574_v51 = vpop.permute.xlu1 %3151  ;;  %3417 = vrot.lane.b32.xlu0 %v7231_v61, %s5056_s23 }
 0x471   : > { %3547 = vrot.lane.b32.xlu1 %v2672_v21, %s5057_s29  ;;  %v7579_v2 = vpop.permute.xlu0 %3149 }
 0x473   : > { %v7581_v3 = vpop.permute.xlu1 %3155  ;;  %3545 = vrot.lane.b32.xlu0 %v2671_v43, %s5057_s29 }
 0x475   : > { %3293 = vrot.lane.b32.xlu1 %v7113_v29, %s5055_s22  ;;  %v7586_v22 = vpop.permute.xlu0 %3153 }
 0x477   : > { %v7588_v33 = vpop.permute.xlu1 %3159  ;;  %3673 = vrot.lane.b32.xlu0 %v7113_v29, %s5058_s15  ;;  %v2674_v29 = vld [vmem:[#allocation2 + $0xc9] sm:$0xff] }
 0x479   : > { %3295 = vrot.lane.b32.xlu1 %v7109_v54, %s5055_s22  ;;  %v7594_v21 = vpop.permute.xlu0 %3157 }
 0x47b   : > { %v7596_v44 = vpop.permute.xlu1 %3163  ;;  %3675 = vrot.lane.b32.xlu0 %v7109_v54, %s5058_s15 }
 0x47d   : > { %3423 = vrot.lane.b32.xlu1 %v7237_v31, %s5056_s23  ;;  %v7602_v43 = vpop.permute.xlu0 %3161 }
 0x47f   : > { %v7604_v45 = vpop.permute.xlu1 %3167  ;;  %3421 = vrot.lane.b32.xlu0 %v7243_v25, %s5056_s23 }
 0x480   : > { %8804 = vst [vmem:[#allocation84_spill] sm:$0xff] %v7604_v45 }
 0x481   : > { %3551 = vrot.lane.b32.xlu1 %v2674_v29, %s5057_s29  ;;  %v7609_v19 = vpop.permute.xlu0 %3165 }
 0x483   : > { %v7611_v59 = vpop.permute.xlu1 %3171  ;;  %3549 = vrot.lane.b32.xlu0 %v2673_v49, %s5057_s29 }
 0x484   : > { %8805 = vst [vmem:[#allocation106_spill] sm:$0xff] %v7611_v59 }
 0x485   : > { %3297 = vrot.lane.b32.xlu1 %v7121_v12, %s5055_s22  ;;  %v7616_v54 = vpop.permute.xlu0 %3169 }
 0x486   : > { %8806 = vst [vmem:[#allocation140_spill] sm:$0xff] %v7616_v54  ;;  %v2675_v54 = vld [vmem:[#allocation2 + $0xd9] sm:$0xff] }
 0x487   : > { %v7618_v31 = vpop.permute.xlu1 %3175  ;;  %3677 = vrot.lane.b32.xlu0 %v7121_v12, %s5058_s15 }
 0x488   : > { %8807 = vst [vmem:[#allocation164_spill] sm:$0xff] %v7618_v31  ;;  %v2437_v31 = vld [vmem:[#allocation2] sm:$0xff] }
 0x489   : > { %3299 = vrot.lane.b32.xlu1 %v7117_v6, %s5055_s22  ;;  %v7624_v25 = vpop.permute.xlu0 %3173 }
 0x48a   : > { %8808 = vst [vmem:[#allocation105_spill] sm:$0xff] %v7624_v25  ;;  %v3749_v25 = vsel %vm277_vm0, %v2437_v31, %v7135_v37 }
 0x48b   : > { %v3272_v29 = vpop.permute.xlu1 %3271  ;;  %3679 = vrot.lane.b32.xlu0 %v7117_v6, %s5058_s15  ;;  %v2438_v6 = vld [vmem:[#allocation2 + $0x8] sm:$0xff] }
 0x48c   : > { %v3750_v45 = vsel %vm277_vm0, %v2438_v6, %v7132_v10 }
 0x48d   : > { %3427 = vrot.lane.b32.xlu1 %v7249_v46, %s5056_s23  ;;  %v3270_v49 = vpop.permute.xlu0 %3269  ;;  %v3781_v46 = vsel %vm1733_vm4, %v3749_v25, %v7304_v27  ;;  %v3782_v27 = vsel %vm1733_vm4, %v3750_v45, %v7300_v38  ;;  %v2614_v25 = vld [vmem:[#allocation2 + $0xe2] sm:$0xff] }
 0x48f   : > { %v3400_v59 = vpop.permute.xlu1 %3399  ;;  %3425 = vrot.lane.b32.xlu0 %v7255_v9, %s5056_s23  ;;  %v3813_v9 = vsel %vm1766_vm5, %v3781_v46, %v7442_v60  ;;  %v3814_v60 = vsel %vm1766_vm5, %v3782_v27, %v7438_v41 }
 0x490   : > { %v3846_v10 = vsel %vm1799_vm6, %v3814_v60, %v7560_v47 }
 0x491   : > { %3555 = vrot.lane.b32.xlu1 %v2676_v50, %s5057_s29  ;;  %v3398_v12 = vpop.permute.xlu0 %3397  ;;  %v3845_v50 = vsel %vm1799_vm6, %v3813_v9, %v3142_v39  ;;  %v8810_v9 = vld [vmem:[#allocation10_spill] sm:$0xff] }
 0x492   : > { %v3877_v37 = vsel %vm1832_vm7, %v3845_v50, %v3270_v49 }
 0x493   : > { %v3528_v1 = vpop.permute.xlu1 %3527  ;;  %3553 = vrot.lane.b32.xlu0 %v2675_v54, %s5057_s29  ;;  %v3909_v54 = vsel %vm1865_vm8, %v3877_v37, %v3398_v12  ;;  %v8811_v37 = vld [vmem:[#allocation9_spill] sm:$0xff] }
 0x495   : > { %3301 = vrot.lane.b32.xlu1 %v2613_v57, %s5055_s22  ;;  %v3526_v61 = vpop.permute.xlu0 %3525 }
 0x496   : > { %v3941_v46 = vsel %vm1898_vm9, %v3909_v54, %v3526_v61  ;;  %v8809_v61 = vld [vmem:[#allocation156_spill] sm:$0xff] }
 0x497   : > { %v3274_v31 = vpop.permute.xlu1 %3273  ;;  %3681 = vrot.lane.b32.xlu0 %v2613_v57, %s5058_s15  ;;  %v3878_v57 = vsel %vm1832_vm7, %v3846_v10, %v3272_v29  ;;  %v2583_v29 = vld [vmem:[#allocation2 + $0xf1] sm:$0xff]  ;;  %v2678_v10 = vld [vmem:[#allocation2 + $0xf9] sm:$0xff] }
 0x498   : > { %v3910_v38 = vsel %vm1865_vm8, %v3878_v57, %v3400_v59  ;;  %v8812_v59 = vld [vmem:[#allocation71_spill] sm:$0xff] }
 0x499   : > { %3303 = vrot.lane.b32.xlu1 %v2614_v25, %s5055_s22  ;;  %v3654_v39 = vpop.permute.xlu0 %3653  ;;  %v3942_v45 = vsel %vm1898_vm9, %v3910_v38, %v3528_v1  ;;  %v3751_v1 = vsel %vm277_vm0, %v8812_v59, %v8811_v37  ;;  %v8814_v57 = vld [vmem:[#allocation11_spill] sm:$0xff] }
 0x49a   : > { %v3973_v49 = vsel %vm1931_vm10, %v3941_v46, %v3654_v39  ;;  %v3783_v54 = vsel %vm1733_vm4, %v3751_v1, %v7310_v58 }
 0x49b   : > { %v3276_v6 = vpop.permute.xlu1 %3275  ;;  %3683 = vrot.lane.b32.xlu0 %v2614_v25, %s5058_s15  ;;  %4845 = vmatprep.mubr.msk.f32.mxu1 %vm1969_vm11, %v3973_v49  ;;  %v2709_v25 = vld [vmem:[#allocation2 + $0xf2] sm:$0xff]  ;;  %v3815_v60 = vsel %vm1766_vm5, %v3783_v54, %v7450_v26  ;;  %v8813_v49 = vld [vmem:[#allocation7_spill] sm:$0xff] }
 0x49c   : > { %v3847_v39 = vsel %vm1799_vm6, %v3815_v60, %v7572_v13  ;;  %v3752_v38 = vsel %vm277_vm0, %v8814_v57, %v8813_v49 }
 0x49d   : > { %3431 = vrot.lane.b32.xlu1 %v8809_v61, %s5056_s23  ;;  %v3656_v41 = vpop.permute.xlu0 %3655  ;;  %v3784_v58 = vsel %vm1733_vm4, %v3752_v38, %v7306_v32  ;;  %v8818_v38 = vld [vmem:[#allocation69_spill] sm:$0xff] }
 0x49e   : > { %v3974_v12 = vsel %vm1931_vm10, %v3942_v45, %v3656_v41  ;;  %v3879_v45 = vsel %vm1832_vm7, %v3847_v39, %v3274_v31  ;;  %v3816_v41 = vsel %vm1766_vm5, %v3784_v58, %v7446_v0  ;;  %v2616_v0 = vld [vmem:[#allocation2 + $0xfa] sm:$0xff]  ;;  %v2585_v39 = vld [vmem:[#allocation2 + $0x109] sm:$0xff] }
 0x49f   : > { %v3404_v47 = vpop.permute.xlu1 %3403  ;;  %3429 = vrot.lane.b32.xlu0 %v8810_v9, %s5056_s23  ;;  %4846 = vmatmul.mubr.msk.f32.vlgmr.msra.gmra.mxu1 %vm1969_vm11, %v3974_v12  ;;  %v3848_v9 = vsel %vm1799_vm6, %v3816_v41, %v7566_v5 }
 0x4a1   : > { %3177 = vrot.lane.b32.xlu1 %v2583_v29, %s5054_s21  ;;  %v3402_v50 = vpop.permute.xlu0 %3401 }
 0x4a2   : > { %v3911_v26 = vsel %vm1865_vm8, %v3879_v45, %v3402_v50 }
 0x4a3   : > { %v3532_v27 = vpop.permute.xlu1 %3531  ;;  %3557 = vrot.lane.b32.xlu0 %v2583_v29, %s5057_s29  ;;  %v3880_v29 = vsel %vm1832_vm7, %v3848_v9, %v3276_v6  ;;  %v8815_v6 = vld [vmem:[#allocation30_spill] sm:$0xff] }
 0x4a4   : > { %v3912_v32 = vsel %vm1865_vm8, %v3880_v29, %v3404_v47 }
 0x4a5   : > { %3685 = vrot.lane.b32.xlu1 %v2709_v25, %s5058_s15  ;;  %v3530_v46 = vpop.permute.xlu0 %3529  ;;  %v3944_v50 = vsel %vm1898_vm9, %v3912_v32, %v3532_v27  ;;  %v8817_v27 = vld [vmem:[#allocation59_spill] sm:$0xff] }
 0x4a6   : > { %v3943_v13 = vsel %vm1898_vm9, %v3911_v26, %v3530_v46  ;;  %v2711_v26 = vld [vmem:[#allocation2 + $0x10a] sm:$0xff] }
 0x4a7   : > { %v3278_v61 = vpop.permute.xlu1 %3277  ;;  %3559 = vrot.lane.b32.xlu0 %v2678_v10, %s5057_s29 }
 0x4a9   : > { %3305 = vrot.lane.b32.xlu1 %v2709_v25, %s5055_s22  ;;  %v3658_v12 = vpop.permute.xlu0 %3657  ;;  %v8816_v25 = vld [vmem:[#allocation68_spill] sm:$0xff] }
 0x4aa   : > { %v3975_v31 = vsel %vm1931_vm10, %v3943_v13, %v3658_v12  ;;  %v3753_v47 = vsel %vm277_vm0, %v7171_v55, %v8816_v25  ;;  %v3754_v55 = vsel %vm277_vm0, %v7165_v16, %v8818_v38  ;;  %v2680_v12 = vld [vmem:[#allocation2 + $0x111] sm:$0xff] }
 0x4ab   : > { %v3280_v37 = vpop.permute.xlu1 %3279  ;;  %3179 = vrot.lane.b32.xlu0 %v2678_v10, %s5054_s21  ;;  %4848 = vmatprep.mubr.msk.f32.mxu1 %vm1969_vm11, %v3975_v31  ;;  %v3785_v46 = vsel %vm1733_vm4, %v3753_v47, %v7315_v53  ;;  %v3786_v53 = vsel %vm1733_vm4, %v3754_v55, %v7312_v20 }
 0x4ac   : > { %v3817_v10 = vsel %vm1766_vm5, %v3785_v46, %v7458_v18  ;;  %v3818_v41 = vsel %vm1766_vm5, %v3786_v53, %v7454_v24 }
 0x4ad   : > { %3307 = vrot.lane.b32.xlu1 %v2616_v0, %s5055_s22  ;;  %v3660_v59 = vpop.permute.xlu0 %3659  ;;  %v3849_v57 = vsel %vm1799_vm6, %v3817_v10, %v7579_v2  ;;  %v3850_v16 = vsel %vm1799_vm6, %v3818_v41, %v7574_v51  ;;  %v2587_v10 = vld [vmem:[#allocation2 + $0x121] sm:$0xff] }
 0x4ae   : > { %v3976_v1 = vsel %vm1931_vm10, %v3944_v50, %v3660_v59  ;;  %v3881_v45 = vsel %vm1832_vm7, %v3849_v57, %v3278_v61  ;;  %v3882_v9 = vsel %vm1832_vm7, %v3850_v16, %v3280_v37  ;;  %v2618_v37 = vld [vmem:[#allocation2 + $0x112] sm:$0xff] }
 0x4af   : > { %v3408_v5 = vpop.permute.xlu1 %3407  ;;  %3687 = vrot.lane.b32.xlu0 %v2616_v0, %s5058_s15  ;;  %4849 = vmatmul.mubr.msk.f32.gmra.mxu1 %vm1969_vm11, %v3976_v1  ;;  %v8819_v50 = vld [vmem:[#allocation72_spill] sm:$0xff] }
 0x4b0   : > { %v3914_v24 = vsel %vm1865_vm8, %v3882_v9, %v3408_v5  ;;  %v3755_v59 = vsel %vm277_vm0, %v7183_v28, %v8819_v50 }
 0x4b1   : > { %3435 = vrot.lane.b32.xlu1 %v8815_v6, %s5056_s23  ;;  %v3406_v54 = vpop.permute.xlu0 %3405  ;;  %v3787_v5 = vsel %vm1733_vm4, %v3755_v59, %v7321_v35 }
 0x4b2   : > { %v3913_v18 = vsel %vm1865_vm8, %v3881_v45, %v3406_v54  ;;  %v3819_v6 = vsel %vm1766_vm5, %v3787_v5, %v7466_v36  ;;  %v8820_v54 = vld [vmem:[#allocation79_spill] sm:$0xff] }
 0x4b3   : > { %v3536_v60 = vpop.permute.xlu1 %3535  ;;  %3433 = vrot.lane.b32.xlu0 %v8817_v27, %s5056_s23  ;;  %v3851_v47 = vsel %vm1799_vm6, %v3819_v6, %v7586_v22 }
 0x4b4   : > { %v3946_v31 = vsel %vm1898_vm9, %v3914_v24, %v3536_v60  ;;  %v8821_v60 = vld [vmem:[#allocation13_spill] sm:$0xff] }
 0x4b5   : > { %3181 = vrot.lane.b32.xlu1 %v2585_v39, %s5054_s21  ;;  %v3534_v49 = vpop.permute.xlu0 %3533  ;;  %v3756_v28 = vsel %vm277_vm0, %v7177_v4, %v8821_v60 }
 0x4b6   : > { %v3945_v2 = vsel %vm1898_vm9, %v3913_v18, %v3534_v49  ;;  %v3788_v35 = vsel %vm1733_vm4, %v3756_v28, %v7318_v52  ;;  %v2715_v28 = vld [vmem:[#allocation2 + $0x13a] sm:$0xff] }
 0x4b7   : > { %v3282_v58 = vpop.permute.xlu1 %3281  ;;  %3561 = vrot.lane.b32.xlu0 %v2585_v39, %s5057_s29  ;;  %v8822_v39 = vld [vmem:[#allocation135_spill] sm:$0xff]  ;;  %v3820_v49 = vsel %vm1766_vm5, %v3788_v35, %v7462_v8 }
 0x4b8   : > { %v3883_v27 = vsel %vm1832_vm7, %v3851_v47, %v3282_v58  ;;  %v3852_v57 = vsel %vm1799_vm6, %v3820_v49, %v7581_v3  ;;  %v2713_v8 = vld [vmem:[#allocation2 + $0x122] sm:$0xff] }
 0x4b9   : > { %3689 = vrot.lane.b32.xlu1 %v2711_v26, %s5058_s15  ;;  %v3662_v13 = vpop.permute.xlu0 %3661  ;;  %v2682_v3 = vld [vmem:[#allocation2 + $0x129] sm:$0xff] }
 0x4ba   : > { %v3977_v61 = vsel %vm1931_vm10, %v3945_v2, %v3662_v13  ;;  %v8823_v2 = vld [vmem:[#allocation14_spill] sm:$0xff] }
 0x4bb   : > { %v3284_v20 = vpop.permute.xlu1 %3283  ;;  %3563 = vrot.lane.b32.xlu0 %v2680_v12, %s5057_s29  ;;  %4851 = vmatprep.mubr.msk.f32.mxu1 %vm1969_vm11, %v3977_v61  ;;  %v3757_v13 = vsel %vm277_vm0, %v7195_v14, %v8823_v2 }
 0x4bc   : > { %v3884_v55 = vsel %vm1832_vm7, %v3852_v57, %v3284_v20  ;;  %v3789_v61 = vsel %vm1733_vm4, %v3757_v13, %v7329_v40  ;;  %v8825_v40 = vld [vmem:[#allocation134_spill] sm:$0xff] }
 0x4bd   : > { %3309 = vrot.lane.b32.xlu1 %v2711_v26, %s5055_s22  ;;  %v3664_v29 = vpop.permute.xlu0 %3663  ;;  %v3821_v9 = vsel %vm1766_vm5, %v3789_v61, %v7474_v42 }
 0x4be   : > { %v3978_v32 = vsel %vm1931_vm10, %v3946_v31, %v3664_v29  ;;  %v3853_v24 = vsel %vm1799_vm6, %v3821_v9, %v7594_v21  ;;  %v8824_v31 = vld [vmem:[#allocation16_spill] sm:$0xff] }
 0x4bf   : > { %v3412_v51 = vpop.permute.xlu1 %3411  ;;  %3183 = vrot.lane.b32.xlu0 %v2680_v12, %s5054_s21  ;;  %4852 = vmatmul.mubr.msk.f32.gmra.mxu1 %vm1969_vm11, %v3978_v32  ;;  %v2620_v12 = vld [vmem:[#allocation2 + $0x12a] sm:$0xff]  ;;  %v3758_v14 = vsel %vm277_vm0, %v7189_v15, %v8824_v31 }
 0x4c0   : > { %v3916_v52 = vsel %vm1865_vm8, %v3884_v55, %v3412_v51  ;;  %v3790_v51 = vsel %vm1733_vm4, %v3758_v14, %v8825_v40  ;;  %v2591_v9 = vld [vmem:[#allocation2 + $0x151] sm:$0xff] }
 0x4c1   : > { %3311 = vrot.lane.b32.xlu1 %v2618_v37, %s5055_s22  ;;  %v3410_v0 = vpop.permute.xlu0 %3409 }
 0x4c2   : > { %v3915_v36 = vsel %vm1865_vm8, %v3883_v27, %v3410_v0  ;;  %v3822_v0 = vsel %vm1766_vm5, %v3790_v51, %v7470_v63 }
 0x4c3   : > { %v3540_v1 = vpop.permute.xlu1 %3539  ;;  %3691 = vrot.lane.b32.xlu0 %v2618_v37, %s5058_s15  ;;  %v2652_v37 = vld [vmem:[#allocation2 + $0x140] sm:$0xff]  ;;  %v3854_v15 = vsel %vm1799_vm6, %v3822_v0, %v7588_v33  ;;  %v8831_v0 = vld [vmem:[#allocation19_spill] sm:$0xff] }
 0x4c4   : > { %v3948_v58 = vsel %vm1898_vm9, %v3916_v52, %v3540_v1  ;;  %v2651_v1 = vld [vmem:[#allocation2 + $0x138] sm:$0xff]  ;;  %v8829_v52 = vld [vmem:[#allocation158_spill] sm:$0xff] }
 0x4c5   : > { %3439 = vrot.lane.b32.xlu1 %v8820_v54, %s5056_s23  ;;  %v3538_v25 = vpop.permute.xlu0 %3537  ;;  %v2589_v54 = vld [vmem:[#allocation2 + $0x139] sm:$0xff] }
 0x4c6   : > { %v3947_v22 = vsel %vm1898_vm9, %v3915_v36, %v3538_v25 }
 0x4c7   : > { %v3286_v46 = vpop.permute.xlu1 %3285  ;;  %3437 = vrot.lane.b32.xlu0 %v8822_v39, %s5056_s23  ;;  %v8826_v39 = vld [vmem:[#allocation73_spill] sm:$0xff] }
 0x4c8   : > { %v3885_v29 = vsel %vm1832_vm7, %v3853_v24, %v3286_v46  ;;  %v2684_v46 = vld [vmem:[#allocation2 + $0x141] sm:$0xff]  ;;  %v3759_v35 = vsel %vm277_vm0, %v7207_v11, %v8826_v39  ;;  %v8830_v24 = vld [vmem:[#allocation17_spill] sm:$0xff] }
 0x4c9   : > { %3185 = vrot.lane.b32.xlu1 %v2587_v10, %s5054_s21  ;;  %v3666_v4 = vpop.permute.xlu0 %3665  ;;  %v3761_v31 = vsel %vm277_vm0, %v7219_v7, %v8830_v24  ;;  %v3762_v7 = vsel %vm277_vm0, %v7213_v30, %v8831_v0  ;;  %v2655_v39 = vld [vmem:[#allocation2 + $0x168] sm:$0xff] }
 0x4ca   : > { %v3979_v38 = vsel %vm1931_vm10, %v3947_v22, %v3666_v4  ;;  %v8844_v0 = vld [vmem:[#allocation63_spill] sm:$0xff] }
 0x4cb   : > { %v3288_v45 = vpop.permute.xlu1 %3287  ;;  %3565 = vrot.lane.b32.xlu0 %v2587_v10, %s5057_s29  ;;  %4854 = vmatprep.mubr.msk.f32.mxu1 %vm1969_vm11, %v3979_v38  ;;  %v8827_v10 = vld [vmem:[#allocation99_spill] sm:$0xff]  ;;  %v8828_v38 = vld [vmem:[#allocation74_spill] sm:$0xff] }
 0x4cc   : > { %v3886_v5 = vsel %vm1832_vm7, %v3854_v15, %v3288_v45  ;;  %v3791_v49 = vsel %vm1733_vm4, %v3759_v35, %v8827_v10  ;;  %v3760_v55 = vsel %vm277_vm0, %v7201_v48, %v8828_v38  ;;  %v8834_v35 = vld [vmem:[#allocation22_spill] sm:$0xff]  ;;  %v8837_v38 = vld [vmem:[#allocation83_spill] sm:$0xff] }
 0x4cd   : > { %3693 = vrot.lane.b32.xlu1 %v2713_v8, %s5058_s15  ;;  %v3668_v53 = vpop.permute.xlu0 %3667  ;;  %v3823_v22 = vsel %vm1766_vm5, %v3791_v49, %v7482_v56 }
 0x4ce   : > { %v3980_v18 = vsel %vm1931_vm10, %v3948_v58, %v3668_v53  ;;  %v3855_v57 = vsel %vm1799_vm6, %v3823_v22, %v7602_v43  ;;  %v2622_v58 = vld [vmem:[#allocation2 + $0x142] sm:$0xff] }
 0x4cf   : > { %v3416_v26 = vpop.permute.xlu1 %3415  ;;  %3567 = vrot.lane.b32.xlu0 %v2682_v3, %s5057_s29  ;;  %4855 = vmatmul.mubr.msk.f32.gmra.mxu1 %vm1969_vm11, %v3980_v18  ;;  %v8836_v22 = vld [vmem:[#allocation34_spill] sm:$0xff] }
 0x4d0   : > { %v3918_v63 = vsel %vm1865_vm8, %v3886_v5, %v3416_v26  ;;  %v8833_v5 = vld [vmem:[#allocation84_spill] sm:$0xff] }
 0x4d1   : > { %3313 = vrot.lane.b32.xlu1 %v2713_v8, %s5055_s22  ;;  %v3414_v41 = vpop.permute.xlu0 %3413  ;;  %v3792_v8 = vsel %vm1733_vm4, %v3760_v55, %v8829_v52 }
 0x4d2   : > { %v3917_v42 = vsel %vm1865_vm8, %v3885_v29, %v3414_v41  ;;  %v3824_v53 = vsel %vm1766_vm5, %v3792_v8, %v7478_v62  ;;  %v2654_v62 = vld [vmem:[#allocation2 + $0x158] sm:$0xff]  ;;  %v3793_v29 = vsel %vm1733_vm4, %v3761_v31, %v7345_v23  ;;  %v8832_v23 = vld [vmem:[#allocation15_spill] sm:$0xff]  ;;  %v4971_v8 = vld [vmem:[#allocation2 + $0xb0] sm:$0xff] }
 0x4d3   : > { %v3544_v16 = vpop.permute.xlu1 %3543  ;;  %3187 = vrot.lane.b32.xlu0 %v2682_v3, %s5054_s21  ;;  %v3856_v48 = vsel %vm1799_vm6, %v3824_v53, %v7596_v44  ;;  %v2653_v44 = vld [vmem:[#allocation2 + $0x150] sm:$0xff]  ;;  %v3825_v40 = vsel %vm1766_vm5, %v3793_v29, %v7490_v17  ;;  %v3794_v15 = vsel %vm1733_vm4, %v3762_v7, %v8832_v23 }
 0x4d4   : > { %v3950_v25 = vsel %vm1898_vm9, %v3918_v63, %v3544_v16 }
 0x4d5   : > { %3315 = vrot.lane.b32.xlu1 %v2620_v12, %s5055_s22  ;;  %v3542_v20 = vpop.permute.xlu0 %3541 }
 0x4d6   : > { %v3949_v21 = vsel %vm1898_vm9, %v3917_v42, %v3542_v20  ;;  %v3857_v42 = vsel %vm1799_vm6, %v3825_v40, %v7609_v19  ;;  %v4972_v40 = vld [vmem:[#allocation2 + $0xc0] sm:$0xff] }
 0x4d7   : > { %v3290_v32 = vpop.permute.xlu1 %3289  ;;  %3695 = vrot.lane.b32.xlu0 %v2620_v12, %s5058_s15 }
 0x4d8   : > { %v3887_v11 = vsel %vm1832_vm7, %v3855_v57, %v3290_v32  ;;  %v2717_v32 = vld [vmem:[#allocation2 + $0x152] sm:$0xff]  ;;  %v2593_v57 = vld [vmem:[#allocation2 + $0x169] sm:$0xff] }
 0x4d9   : > { %3443 = vrot.lane.b32.xlu1 %v2652_v37, %s5056_s23  ;;  %v3670_v50 = vpop.permute.xlu0 %3669  ;;  %v2686_v37 = vld [vmem:[#allocation2 + $0x159] sm:$0xff] }
 0x4da   : > { %v3981_v59 = vsel %vm1931_vm10, %v3949_v21, %v3670_v50 }
 0x4db   : > { %v3292_v6 = vpop.permute.xlu1 %3291  ;;  %3441 = vrot.lane.b32.xlu0 %v2651_v1, %s5056_s23  ;;  %4857 = vmatprep.mubr.msk.f32.mxu1 %vm1969_vm11, %v3981_v59  ;;  %v3826_v59 = vsel %vm1766_vm5, %v3794_v15, %v7486_v34  ;;  %v2624_v34 = vld [vmem:[#allocation2 + $0x15a] sm:$0xff] }
 0x4dc   : > { %v3888_v26 = vsel %vm1832_vm7, %v3856_v48, %v3292_v6  ;;  %v3858_v30 = vsel %vm1799_vm6, %v3826_v59, %v8833_v5  ;;  %v8846_v15 = vld [vmem:[#allocation105_spill] sm:$0xff] }
 0x4dd   : > { %3189 = vrot.lane.b32.xlu1 %v2589_v54, %s5054_s21  ;;  %v3672_v47 = vpop.permute.xlu0 %3671 }
 0x4de   : > { %v3982_v33 = vsel %vm1931_vm10, %v3950_v25, %v3672_v47 }
 0x4df   : > { %v3420_v60 = vpop.permute.xlu1 %3419  ;;  %3569 = vrot.lane.b32.xlu0 %v2589_v54, %s5057_s29  ;;  %4858 = vmatmul.mubr.msk.f32.gmra.mxu1 %vm1969_vm11, %v3982_v33 }
 0x4e0   : > { %v3920_v2 = vsel %vm1865_vm8, %v3888_v26, %v3420_v60  ;;  %v2719_v26 = vld [vmem:[#allocation2 + $0x16a] sm:$0xff] }
 0x4e1   : > { %3697 = vrot.lane.b32.xlu1 %v2715_v28, %s5058_s15  ;;  %v3418_v27 = vpop.permute.xlu0 %3417 }
 0x4e2   : > { %v3919_v56 = vsel %vm1865_vm8, %v3887_v11, %v3418_v27  ;;  %v2656_v27 = vld [vmem:[#allocation2 + $0x170] sm:$0xff] }
 0x4e3   : > { %v3548_v36 = vpop.permute.xlu1 %3547  ;;  %3571 = vrot.lane.b32.xlu0 %v2684_v46, %s5057_s29 }
 0x4e4   : > { %v3952_v13 = vsel %vm1898_vm9, %v3920_v2, %v3548_v36  ;;  %v8835_v36 = vld [vmem:[#allocation77_spill] sm:$0xff] }
 0x4e5   : > { %3317 = vrot.lane.b32.xlu1 %v2715_v28, %s5055_s22  ;;  %v3546_v4 = vpop.permute.xlu0 %3545  ;;  %v3763_v10 = vsel %vm277_vm0, %v8835_v36, %v8834_v35  ;;  %v2721_v35 = vld [vmem:[#allocation2 + $0x182] sm:$0xff]  ;;  %v8849_v36 = vld [vmem:[#allocation65_spill] sm:$0xff] }
 0x4e6   : > { %v3951_v43 = vsel %vm1898_vm9, %v3919_v56, %v3546_v4  ;;  %v3795_v4 = vsel %vm1733_vm4, %v3763_v10, %v8836_v22  ;;  %v8839_v56 = vld [vmem:[#allocation75_spill] sm:$0xff]  ;;  %v8850_v22 = vld [vmem:[#allocation164_spill] sm:$0xff] }
 0x4e7   : > { %v3294_v45 = vpop.permute.xlu1 %3293  ;;  %3191 = vrot.lane.b32.xlu0 %v2684_v46, %s5054_s21  ;;  %v3827_v55 = vsel %vm1766_vm5, %v3795_v4, %v8837_v38 }
 0x4e8   : > { %v3889_v21 = vsel %vm1832_vm7, %v3857_v42, %v3294_v45  ;;  %v8838_v45 = vld [vmem:[#allocation140_spill] sm:$0xff] }
 0x4e9   : > { %3319 = vrot.lane.b32.xlu1 %v2622_v58, %s5055_s22  ;;  %v3674_v18 = vpop.permute.xlu0 %3673  ;;  %v3859_v52 = vsel %vm1799_vm6, %v3827_v55, %v8838_v45 }
 0x4ea   : > { %v3983_v3 = vsel %vm1931_vm10, %v3951_v43, %v3674_v18  ;;  %v8840_v18 = vld [vmem:[#allocation157_spill] sm:$0xff] }
 0x4eb   : > { %v3296_v41 = vpop.permute.xlu1 %3295  ;;  %3699 = vrot.lane.b32.xlu0 %v2622_v58, %s5058_s15  ;;  %4860 = vmatprep.mubr.msk.f32.mxu1 %vm1969_vm11, %v3983_v3  ;;  %v3764_v58 = vsel %vm277_vm0, %v4971_v8, %v8839_v56 }
 0x4ec   : > { %v3890_v63 = vsel %vm1832_vm7, %v3858_v30, %v3296_v41  ;;  %v3796_v48 = vsel %vm1733_vm4, %v3764_v58, %v8840_v18  ;;  %v8841_v41 = vld [vmem:[#allocation36_spill] sm:$0xff]  ;;  %v4974_v58 = vld [vmem:[#allocation2 + $0xd8] sm:$0xff] }
 0x4ed   : > { %3447 = vrot.lane.b32.xlu1 %v2654_v62, %s5056_s23  ;;  %v3676_v16 = vpop.permute.xlu0 %3675  ;;  %v3828_v2 = vsel %vm1766_vm5, %v3796_v48, %v8841_v41  ;;  %v2628_v18 = vld [vmem:[#allocation2 + $0x18a] sm:$0xff]  ;;  %v8852_v48 = vld [vmem:[#allocation81_spill] sm:$0xff] }
 0x4ee   : > { %v3984_v61 = vsel %vm1931_vm10, %v3952_v13, %v3676_v16  ;;  %v8842_v16 = vld [vmem:[#allocation106_spill] sm:$0xff]  ;;  %v8853_v41 = vld [vmem:[#allocation104_spill] sm:$0xff] }
 0x4ef   : > { %v3424_v12 = vpop.permute.xlu1 %3423  ;;  %3445 = vrot.lane.b32.xlu0 %v2653_v44, %s5056_s23  ;;  %4861 = vmatmul.mubr.msk.f32.gmra.mxu1 %vm1969_vm11, %v3984_v61  ;;  %v3860_v61 = vsel %vm1799_vm6, %v3828_v2, %v8842_v16 }
 0x4f0   : > { %v3922_v25 = vsel %vm1865_vm8, %v3890_v63, %v3424_v12  ;;  %v2688_v12 = vld [vmem:[#allocation2 + $0x171] sm:$0xff]  ;;  %v2657_v63 = vld [vmem:[#allocation2 + $0x180] sm:$0xff] }
 0x4f1   : > { %3193 = vrot.lane.b32.xlu1 %v2591_v9, %s5054_s21  ;;  %v3422_v20 = vpop.permute.xlu0 %3421 }
 0x4f2   : > { %v3921_v17 = vsel %vm1865_vm8, %v3889_v21, %v3422_v20 }
 0x4f3   : > { %v3552_v14 = vpop.permute.xlu1 %3551  ;;  %3573 = vrot.lane.b32.xlu0 %v2591_v9, %s5057_s29 }
 0x4f4   : > { %v3954_v47 = vsel %vm1898_vm9, %v3922_v25, %v3552_v14 }
 0x4f5   : > { %3701 = vrot.lane.b32.xlu1 %v2717_v32, %s5058_s15  ;;  %v3550_v51 = vpop.permute.xlu0 %3549 }
 0x4f6   : > { %v3953_v19 = vsel %vm1898_vm9, %v3921_v17, %v3550_v51  ;;  %v8843_v51 = vld [vmem:[#allocation26_spill] sm:$0xff] }
 0x4f7   : > { %v3298_v50 = vpop.permute.xlu1 %3297  ;;  %3575 = vrot.lane.b32.xlu0 %v2686_v37, %s5057_s29  ;;  %v3765_v42 = vsel %vm277_vm0, %v4972_v40, %v8843_v51  ;;  %v8854_v40 = vld [vmem:[#allocation55_spill] sm:$0xff] }
 0x4f8   : > { %v3891_v53 = vsel %vm1832_vm7, %v3859_v52, %v3298_v50  ;;  %v3797_v7 = vsel %vm1733_vm4, %v3765_v42, %v8844_v0  ;;  %v8845_v50 = vld [vmem:[#allocation139_spill] sm:$0xff] }
 0x4f9   : > { %3321 = vrot.lane.b32.xlu1 %v2717_v32, %s5055_s22  ;;  %v3678_v1 = vpop.permute.xlu0 %3677  ;;  %v3829_v23 = vsel %vm1766_vm5, %v3797_v7, %v8845_v50  ;;  %v2724_v7 = vld [vmem:[#allocation2 + $0x1a2] sm:$0xff] }
 0x4fa   : > { %v3985_v6 = vsel %vm1931_vm10, %v3953_v19, %v3678_v1  ;;  %v3861_v17 = vsel %vm1799_vm6, %v3829_v23, %v8846_v15  ;;  %v2658_v1 = vld [vmem:[#allocation2 + $0x188] sm:$0xff] }
 0x4fb   : > { %v3300_v54 = vpop.permute.xlu1 %3299  ;;  %3195 = vrot.lane.b32.xlu0 %v2686_v37, %s5054_s21  ;;  %4863 = vmatprep.mubr.msk.f32.mxu1 %vm1969_vm11, %v3985_v6  ;;  %v2626_v37 = vld [vmem:[#allocation2 + $0x172] sm:$0xff] }
 0x4fc   : > { %v3892_v9 = vsel %vm1832_vm7, %v3860_v61, %v3300_v54 }
 0x4fd   : > { %3323 = vrot.lane.b32.xlu1 %v2624_v34, %s5055_s22  ;;  %v3680_v33 = vpop.permute.xlu0 %3679 }
 0x4fe   : > { %v3986_v60 = vsel %vm1931_vm10, %v3954_v47, %v3680_v33  ;;  %v4973_v33 = vld [vmem:[#allocation2 + $0xc8] sm:$0xff] }
 0x4ff   : > { %v3428_v28 = vpop.permute.xlu1 %3427  ;;  %3703 = vrot.lane.b32.xlu0 %v2624_v34, %s5058_s15  ;;  %4864 = vmatmul.mubr.msk.f32.gmra.mxu1 %vm1969_vm11, %v3986_v60  ;;  %v2595_v34 = vld [vmem:[#allocation2 + $0x181] sm:$0xff]  ;;  %v8847_v60 = vld [vmem:[#allocation20_spill] sm:$0xff] }
 0x500   : > { %v3924_v24 = vsel %vm1865_vm8, %v3892_v9, %v3428_v28  ;;  %v3766_v28 = vsel %vm277_vm0, %v4973_v33, %v8847_v60  ;;  %v8858_v33 = vld [vmem:[#allocation137_spill] sm:$0xff] }
 0x501   : > { %3451 = vrot.lane.b32.xlu1 %v2656_v27, %s5056_s23  ;;  %v3426_v46 = vpop.permute.xlu0 %3425 }
 0x502   : > { %v3923_v3 = vsel %vm1865_vm8, %v3891_v53, %v3426_v46  ;;  %v8848_v46 = vld [vmem:[#allocation12_spill] sm:$0xff] }
 0x503   : > { %v3556_v49 = vpop.permute.xlu1 %3555  ;;  %3449 = vrot.lane.b32.xlu0 %v2655_v39, %s5056_s23  ;;  %v3798_v39 = vsel %vm1733_vm4, %v3766_v28, %v8848_v46  ;;  %v8851_v53 = vld [vmem:[#allocation24_spill] sm:$0xff] }
 0x504   : > { %v3956_v31 = vsel %vm1898_vm9, %v3924_v24, %v3556_v49  ;;  %v3830_v10 = vsel %vm1766_vm5, %v3798_v39, %v8849_v36  ;;  %v2692_v24 = vld [vmem:[#allocation2 + $0x1a1] sm:$0xff] }
 0x505   : > { %3197 = vrot.lane.b32.xlu1 %v2593_v57, %s5054_s21  ;;  %v3554_v11 = vpop.permute.xlu0 %3553  ;;  %v3862_v4 = vsel %vm1799_vm6, %v3830_v10, %v8850_v22 }
 0x506   : > { %v3955_v62 = vsel %vm1898_vm9, %v3923_v3, %v3554_v11 }
 0x507   : > { %v3302_v43 = vpop.permute.xlu1 %3301  ;;  %3577 = vrot.lane.b32.xlu0 %v2593_v57, %s5057_s29  ;;  %v2690_v57 = vld [vmem:[#allocation2 + $0x189] sm:$0xff] }
 0x508   : > { %v3893_v19 = vsel %vm1832_vm7, %v3861_v17, %v3302_v43  ;;  %v3767_v43 = vsel %vm277_vm0, %v4974_v58, %v8851_v53  ;;  %v2723_v17 = vld [vmem:[#allocation2 + $0x19a] sm:$0xff] }
 0x509   : > { %3705 = vrot.lane.b32.xlu1 %v2719_v26, %s5058_s15  ;;  %v3682_v13 = vpop.permute.xlu0 %3681  ;;  %v3799_v3 = vsel %vm1733_vm4, %v3767_v43, %v8852_v48 }
 0x50a   : > { %v3987_v44 = vsel %vm1931_vm10, %v3955_v62, %v3682_v13  ;;  %v3831_v2 = vsel %vm1766_vm5, %v3799_v3, %v8853_v41  ;;  %v2660_v62 = vld [vmem:[#allocation2 + $0x1a0] sm:$0xff] }
 0x50b   : > { %v3304_v20 = vpop.permute.xlu1 %3303  ;;  %3579 = vrot.lane.b32.xlu0 %v2688_v12, %s5057_s29  ;;  %4866 = vmatprep.mubr.msk.f32.mxu1 %vm1969_vm11, %v3987_v44  ;;  %v2659_v44 = vld [vmem:[#allocation2 + $0x198] sm:$0xff] }
 0x50c   : > { %v3894_v38 = vsel %vm1832_vm7, %v3862_v4, %v3304_v20 }
 0x50d   : > { %3325 = vrot.lane.b32.xlu1 %v2719_v26, %s5055_s22  ;;  %v3684_v14 = vpop.permute.xlu0 %3683 }
 0x50e   : > { %v3988_v29 = vsel %vm1931_vm10, %v3956_v31, %v3684_v14 }
 0x50f   : > { %v3432_v32 = vpop.permute.xlu1 %3431  ;;  %3199 = vrot.lane.b32.xlu0 %v2688_v12, %s5054_s21  ;;  %4867 = vmatmul.mubr.msk.f32.gmra.mxu1 %vm1969_vm11, %v3988_v29  ;;  %v2691_v29 = vld [vmem:[#allocation2 + $0x199] sm:$0xff] }
 0x510   : > { %v3926_v11 = vsel %vm1865_vm8, %v3894_v38, %v3432_v32  ;;  %v4975_v32 = vld [vmem:[#allocation2 + $0xe0] sm:$0xff]  ;;  %v4977_v38 = vld [vmem:[#allocation2 + $0xf8] sm:$0xff] }
 0x511   : > { %3327 = vrot.lane.b32.xlu1 %v2626_v37, %s5055_s22  ;;  %v3430_v21 = vpop.permute.xlu0 %3429  ;;  %v3768_v51 = vsel %vm277_vm0, %v4975_v32, %v8854_v40 }
 0x512   : > { %v3925_v5 = vsel %vm1865_vm8, %v3893_v19, %v3430_v21  ;;  %v8856_v21 = vld [vmem:[#allocation82_spill] sm:$0xff] }
 0x513   : > { %v3178_v59 = vpop.permute.xlu1 %3177  ;;  %3707 = vrot.lane.b32.xlu0 %v2626_v37, %s5058_s15  ;;  %v8855_v37 = vld [vmem:[#allocation32_spill] sm:$0xff] }
 0x514   : > { %v3863_v13 = vsel %vm1799_vm6, %v3831_v2, %v3178_v59  ;;  %v3800_v0 = vsel %vm1733_vm4, %v3768_v51, %v8855_v37 }
 0x515   : > { %3455 = vrot.lane.b32.xlu1 %v2658_v1, %s5056_s23  ;;  %v3558_v30 = vpop.permute.xlu0 %3557  ;;  %v3832_v50 = vsel %vm1766_vm5, %v3800_v0, %v8856_v21  ;;  %v8866_v21 = vld [vmem:[#allocation76_spill] sm:$0xff] }
 0x516   : > { %v3957_v6 = vsel %vm1898_vm9, %v3925_v5, %v3558_v30 }
 0x517   : > { %v3686_v54 = vpop.permute.xlu1 %3685  ;;  %3453 = vrot.lane.b32.xlu0 %v2657_v63, %s5056_s23 }
 0x518   : > { %v3989_v25 = vsel %vm1931_vm10, %v3957_v6, %v3686_v54 }
 0x519   : > { %3201 = vrot.lane.b32.xlu1 %v2595_v34, %s5054_s21  ;;  %4869 = vmatprep.mubr.msk.f32.mxu1 %vm1969_vm11, %v3989_v25  ;;  %v3560_v47 = vpop.permute.xlu0 %3559  ;;  %v4976_v25 = vld [vmem:[#allocation2 + $0xf0] sm:$0xff] }
 0x51a   : > { %v3958_v45 = vsel %vm1898_vm9, %v3926_v11, %v3560_v47 }
 0x51b   : > { %v3306_v27 = vpop.permute.xlu1 %3305  ;;  %3581 = vrot.lane.b32.xlu0 %v2595_v34, %s5057_s29  ;;  %v8857_v34 = vld [vmem:[#allocation133_spill] sm:$0xff] }
 0x51c   : > { %v3895_v61 = vsel %vm1832_vm7, %v3863_v13, %v3306_v27  ;;  %v3769_v47 = vsel %vm277_vm0, %v4976_v25, %v8857_v34  ;;  %v8859_v27 = vld [vmem:[#allocation162_spill] sm:$0xff] }
 0x51d   : > { %3709 = vrot.lane.b32.xlu1 %v2721_v35, %s5058_s15  ;;  %v3180_v49 = vpop.permute.xlu0 %3179  ;;  %v3801_v60 = vsel %vm1733_vm4, %v3769_v47, %v8858_v33 }
 0x51e   : > { %v3864_v15 = vsel %vm1799_vm6, %v3832_v50, %v3180_v49  ;;  %v3833_v46 = vsel %vm1766_vm5, %v3801_v60, %v8859_v27  ;;  %v4980_v27 = vld [vmem:[#allocation2 + $0x120] sm:$0xff] }
 0x51f   : > { %v3308_v55 = vpop.permute.xlu1 %3307  ;;  %3583 = vrot.lane.b32.xlu0 %v2690_v57, %s5057_s29 }
 0x520   : > { %v3896_v19 = vsel %vm1832_vm7, %v3864_v15, %v3308_v55  ;;  %v8860_v55 = vld [vmem:[#allocation53_spill] sm:$0xff]  ;;  %v8867_v15 = vld [vmem:[#allocation80_spill] sm:$0xff] }
 0x521   : > { %3329 = vrot.lane.b32.xlu1 %v2721_v35, %s5055_s22  ;;  %v3688_v52 = vpop.permute.xlu0 %3687  ;;  %v3770_v11 = vsel %vm277_vm0, %v4977_v38, %v8860_v55 }
 0x522   : > { %v3990_v8 = vsel %vm1931_vm10, %v3958_v45, %v3688_v52  ;;  %v8861_v52 = vld [vmem:[#allocation61_spill] sm:$0xff] }
 0x523   : > { %v3436_v56 = vpop.permute.xlu1 %3435  ;;  %3203 = vrot.lane.b32.xlu0 %v2690_v57, %s5054_s21  ;;  %4870 = vmatmul.mubr.msk.f32.gmra.mxu1 %vm1969_vm11, %v3990_v8  ;;  %v3802_v8 = vsel %vm1733_vm4, %v3770_v11, %v8861_v52  ;;  %v8055_v11 = vld [vmem:[%s8280_s6] ss:$0 sm:$0xff]  ;;  %s5059_s21 = smov [#allocation3]  }
 0x524   : > { %v3928_v5 = vsel %vm1865_vm8, %v3896_v19, %v3436_v56  ;;  %v8862_v56 = vld [vmem:[#allocation138_spill] sm:$0xff] }
 0x525   : > { %3331 = vrot.lane.b32.xlu1 %v2628_v18, %s5055_s22  ;;  %v3434_v26 = vpop.permute.xlu0 %3433  ;;  %v3834_v58 = vsel %vm1766_vm5, %v3802_v8, %v8862_v56  ;;  %v4412_v52 = vld [vmem:[%s5195_s17] sm:$0xff]  ;;  %s4992_s22 = sshll.u32 %s5059_s21, 4  ;;  %s4993_s22 = int_to_ptr.vmem [resolvable:$false] %s4992_s22 }
 0x526   : > { %v3927_v12 = vsel %vm1865_vm8, %v3895_v61, %v3434_v26  ;;  %v8863_v61 = vld [vmem:[#allocation98_spill] sm:$0xff]  ;;  %s4994_s28 = scalar_lea.vmem %s4993_s22, 256 }
 0x527   : > { %v3182_v16 = vpop.permute.xlu1 %3181  ;;  %3711 = vrot.lane.b32.xlu0 %v2628_v18, %s5058_s15 }
 0x528   : > { %v3865_v39 = vsel %vm1799_vm6, %v3833_v46, %v3182_v16  ;;  %v4978_v16 = vld [vmem:[#allocation2 + $0x108] sm:$0xff]  ;;  %v8869_v46 = vld [vmem:[#allocation97_spill] sm:$0xff] }
 0x529   : > { %3459 = vrot.lane.b32.xlu1 %v2660_v62, %s5056_s23  ;;  %v3562_v9 = vpop.permute.xlu0 %3561 }
 0x52a   : > { %v3959_v20 = vsel %vm1898_vm9, %v3927_v12, %v3562_v9  ;;  %v8864_v12 = vld [vmem:[#allocation102_spill] sm:$0xff] }
 0x52b   : > { %v3690_v31 = vpop.permute.xlu1 %3689  ;;  %3457 = vrot.lane.b32.xlu0 %v2659_v44, %s5056_s23  ;;  %v3771_v44 = vsel %vm277_vm0, %v4978_v16, %v8863_v61  ;;  %v8873_v61 = vld [vmem:[#allocation136_spill] sm:$0xff] }
 0x52c   : > { %v3991_v14 = vsel %vm1931_vm10, %v3959_v20, %v3690_v31  ;;  %v3803_v9 = vsel %vm1733_vm4, %v3771_v44, %v8864_v12 }
 0x52d   : > { %3587 = vrot.lane.b32.xlu1 %v2692_v24, %s5057_s29  ;;  %4872 = vmatprep.mubr.msk.f32.mxu1 %vm1969_vm11, %v3991_v14  ;;  %v3564_v42 = vpop.permute.xlu0 %3563  ;;  %v8865_v24 = vld [vmem:[#allocation25_spill] sm:$0xff] }
 0x52e   : > { %v3960_v30 = vsel %vm1898_vm9, %v3928_v5, %v3564_v42  ;;  %v3835_v31 = vsel %vm1766_vm5, %v3803_v9, %v8865_v24  ;;  %v8874_v9 = vld [vmem:[#allocation161_spill] sm:$0xff] }
 0x52f   : > { %v3310_v23 = vpop.permute.xlu1 %3309  ;;  %3585 = vrot.lane.b32.xlu0 %v2691_v29, %s5057_s29 }
 0x530   : > { %v3897_v36 = vsel %vm1832_vm7, %v3865_v39, %v3310_v23  ;;  %v3773_v39 = vsel %vm277_vm0, %v4980_v27, %v8869_v46 }
 0x531   : > { %3715 = vrot.lane.b32.xlu1 %v2724_v7, %s5058_s15  ;;  %v3184_v59 = vpop.permute.xlu0 %3183  ;;  %v4979_v7 = vld [vmem:[#allocation2 + $0x110] sm:$0xff] }
 0x532   : > { %v3866_v43 = vsel %vm1799_vm6, %v3834_v58, %v3184_v59  ;;  %v3772_v50 = vsel %vm277_vm0, %v4979_v7, %v8866_v21  ;;  %v8868_v59 = vld [vmem:[#allocation103_spill] sm:$0xff] }
 0x533   : > { %v3312_v1 = vpop.permute.xlu1 %3311  ;;  %3713 = vrot.lane.b32.xlu0 %v2723_v17, %s5058_s15  ;;  %v3804_v17 = vsel %vm1733_vm4, %v3772_v50, %v8867_v15  ;;  %v4414_v15 = vld [vmem:[%s5195_s17 + $0x10] sm:$0xff]  ;;  %s269_s15 = sand.u32 1, %s5040_s25  }
 0x534   : > { %v3898_v48 = vsel %vm1832_vm7, %v3866_v43, %v3312_v1  ;;  %v3836_v19 = vsel %vm1766_vm5, %v3804_v17, %v8868_v59  ;;  %v4982_v17 = vld [vmem:[#allocation2 + $0x138] sm:$0xff]  ;;  %v8875_v59 = vld [vmem:[#allocation8_spill] sm:$0xff]  ;;  %s4623_s20 = sshll.u32 %s269_s15, 3  ;;  %s4546_s19 = scalar_lea.sflag [#allocation4], %s269_s15 }
 0x535   : > { %v3692_v6 = vpop.permute.xlu0 %3691  ;;  %s271_s16 = scalar_lea.vmem [#allocation3], %s4623_s20 }
 0x536   : > { %v3992_v63 = vsel %vm1931_vm10, %v3960_v30, %v3692_v6  ;;  %s4560_s8 = sshll.u32 %s271_s16, 4  ;;  %s4561_s8 = int_to_ptr.vmem [resolvable:$true] %s4560_s8 }
 0x537   : > { %v3440_v54 = vpop.permute.xlu1 %3439  ;;  %4873 = vmatmul.mubr.msk.f32.gmra.mxu1 %vm1969_vm11, %v3992_v63  ;;  %p4995_p0 = scmp.lt.s32.totalorder %s4561_s8, %s4993_s22 }
 0x538   : > { %v3930_v26 = vsel %vm1865_vm8, %v3898_v48, %v3440_v54 }
 0x539   : > { %v3438_v28 = vpop.permute.xlu0 %3437 }
 0x53a   : > { %v3929_v10 = vsel %vm1865_vm8, %v3897_v36, %v3438_v28  ;;  %v8040_v28 = vld [vmem:[%s8279_s5] ss:$0 sm:$0xff] }
 0x53b   : > { %v3186_v35 = vpop.permute.xlu1 %3185 }
 0x53c   : > { %v3867_v14 = vsel %vm1799_vm6, %v3835_v31, %v3186_v35  ;;  %v8870_v35 = vld [vmem:[#allocation160_spill] sm:$0xff] }
 0x53d   : > { %v3566_v49 = vpop.permute.xlu0 %3565  ;;  %v3805_v36 = vsel %vm1733_vm4, %v3773_v39, %v8870_v35 }
 0x53e   : > { %v3961_v22 = vsel %vm1898_vm9, %v3929_v10, %v3566_v49 }
 0x53f   : > { %v3694_v4 = vpop.permute.xlu1 %3693 }
 0x540   : > { %v3993_v57 = vsel %vm1931_vm10, %v3961_v22, %v3694_v4  ;;  %v8871_v22 = vld [vmem:[#allocation42_spill] sm:$0xff] }
 0x541   : > { %4875 = vmatprep.mubr.msk.f32.mxu1 %vm1969_vm11, %v3993_v57  ;;  %v3568_v45 = vpop.permute.xlu0 %3567  ;;  %v3837_v4 = vsel %vm1766_vm5, %v3805_v36, %v8871_v22  ;;  %v4983_v22 = vld [vmem:[#allocation2 + $0x140] sm:$0xff] }
 0x542   : > { %v3962_v41 = vsel %vm1898_vm9, %v3930_v26, %v3568_v45  ;;  %v4413_v26 = vld [vmem:[%s5195_s17 + $0x8] sm:$0xff] }
 0x543   : > { %v3314_v53 = vpop.permute.xlu1 %3313 }
 0x544   : > { %v3899_v32 = vsel %vm1832_vm7, %v3867_v14, %v3314_v53 }
 0x545   : > { %v3188_v18 = vpop.permute.xlu0 %3187 }
 0x546   : > { %v3868_v5 = vsel %vm1799_vm6, %v3836_v19, %v3188_v18  ;;  %v3775_v19 = vsel %vm277_vm0, %v4982_v17, %v8875_v59 }
 0x547   : > { %v3316_v3 = vpop.permute.xlu1 %3315 }
 0x548   : > { %v3900_v6 = vsel %vm1832_vm7, %v3868_v5, %v3316_v3  ;;  %v8876_v5 = vld [vmem:[#allocation21_spill] sm:$0xff] }
 0x549   : > { %v3696_v2 = vpop.permute.xlu0 %3695 }
 0x54a   : > { %v3994_v62 = vsel %vm1931_vm10, %v3962_v41, %v3696_v2  ;;  %v4981_v2 = vld [vmem:[#allocation2 + $0x128] sm:$0xff] }
 0x54b   : > { %v3444_v13 = vpop.permute.xlu1 %3443  ;;  %4876 = vmatmul.mubr.msk.f32.gmra.mxu1 %vm1969_vm11, %v3994_v62  ;;  %v8872_v62 = vld [vmem:[#allocation132_spill] sm:$0xff] }
 0x54c   : > { %v3932_v54 = vsel %vm1865_vm8, %v3900_v6, %v3444_v13  ;;  %v3774_v13 = vsel %vm277_vm0, %v4981_v2, %v8872_v62  ;;  %v4416_v2 = vld [vmem:[%s5195_s17 + $0x20] sm:$0xff] }
 0x54d   : > { %v3442_v20 = vpop.permute.xlu0 %3441  ;;  %v3806_v44 = vsel %vm1733_vm4, %v3774_v13, %v8873_v61 }
 0x54e   : > { %v3931_v40 = vsel %vm1865_vm8, %v3899_v32, %v3442_v20  ;;  %v3838_v20 = vsel %vm1766_vm5, %v3806_v44, %v8874_v9 }
 0x54f   : > { %v3190_v29 = vpop.permute.xlu1 %3189 }
 0x550   : > { %v3869_v55 = vsel %vm1799_vm6, %v3837_v4, %v3190_v29  ;;  %v8878_v4 = vld [vmem:[#allocation155_spill] sm:$0xff] }
 0x551   : > { %v3570_v51 = vpop.permute.xlu0 %3569 }
 0x552   : > { %v3963_v42 = vsel %vm1898_vm9, %v3931_v40, %v3570_v51 }
 0x553   : > { %v3698_v37 = vpop.permute.xlu1 %3697 }
 0x554   : > { %v3995_v0 = vsel %vm1931_vm10, %v3963_v42, %v3698_v37 }
 0x555   : > { %4878 = vmatprep.mubr.msk.f32.mxu1 %vm1969_vm11, %v3995_v0  ;;  %v3572_v23 = vpop.permute.xlu0 %3571 }
 0x556   : > { %v3964_v25 = vsel %vm1898_vm9, %v3932_v54, %v3572_v23 }
 0x557   : > { %v3318_v1 = vpop.permute.xlu1 %3317 }
 0x558   : > { %v3901_v8 = vsel %vm1832_vm7, %v3869_v55, %v3318_v1  ;;  %v8879_v55 = vld [vmem:[#allocation101_spill] sm:$0xff] }
 0x559   : > { %v3192_v30 = vpop.permute.xlu0 %3191 }
 0x55a   : > { %v3870_v31 = vsel %vm1799_vm6, %v3838_v20, %v3192_v30  ;;  %v3807_v30 = vsel %vm1733_vm4, %v3775_v19, %v8876_v5  ;;  %v4985_v5 = vld [vmem:[#allocation2 + $0x158] sm:$0xff] }
 0x55b   : > { %v3320_v63 = vpop.permute.xlu1 %3319 }
 0x55c   : > { %v3902_v29 = vsel %vm1832_vm7, %v3870_v31, %v3320_v63  ;;  %v8877_v63 = vld [vmem:[#allocation118_spill] sm:$0xff]  ;;  %v4984_v31 = vld [vmem:[#allocation2 + $0x150] sm:$0xff] }
 0x55d   : > { %v3700_v34 = vpop.permute.xlu0 %3699  ;;  %v3839_v54 = vsel %vm1766_vm5, %v3807_v30, %v8877_v63  ;;  %v8884_v30 = vld [vmem:[#allocation28_spill] sm:$0xff] }
 0x55e   : > { %v3996_v47 = vsel %vm1931_vm10, %v3964_v25, %v3700_v34 }
 0x55f   : > { %v3448_v33 = vpop.permute.xlu1 %3447  ;;  %v4847_v60 = vpop.f32.mrf.mxu1  ;;  %4879 = vmatmul.mubr.msk.f32.gmra.mxu1 %vm1969_vm11, %v3996_v47 }
 0x560   : > { %v4342_v57 = vmul.f32 %v4847_v60, %v8040_v28  ;;  %v3934_v51 = vsel %vm1865_vm8, %v3902_v29, %v3448_v33  ;;  %v4415_v60 = vld [vmem:[%s5195_s17 + $0x18] sm:$0xff] }
 0x561   : > { %v4175_v10 = vpop.f32.mrf.mxu1  ;;  %v3446_v49 = vpop.permute.xlu0 %3445 }
 0x562   : > { %v4341_v38 = vmul.f32 %v8040_v28, %v4175_v10  ;;  %v3933_v58 = vsel %vm1865_vm8, %v3901_v8, %v3446_v49  ;;  %v4381_v43 = vadd.f32 %v8055_v11, %v4342_v57  ;;  %v3776_v57 = vsel %vm277_vm0, %v4983_v22, %v8878_v4 }
 0x563   : > { %v3194_v45 = vpop.permute.xlu1 %3193 }
 0x564   : > { %v4380_v56 = vadd.f32 %v8055_v11, %v4341_v38  ;;  %v4445_v12 = vadd.f32 %v4413_v26, %v4381_v43  ;;  %v3871_v47 = vsel %vm1799_vm6, %v3839_v54, %v3194_v45  ;;  %v3808_v45 = vsel %vm1733_vm4, %v3776_v57, %v8879_v55 }
 0x565   : > { %v3574_v53 = vpop.permute.xlu0 %3573 }
 0x566   : > { %v3965_v18 = vsel %vm1898_vm9, %v3933_v58, %v3574_v53  ;;  %v4444_v48 = vadd.f32 %v4412_v52, %v4380_v56  ;;  %v8880_v52 = vld [vmem:[#allocation23_spill] sm:$0xff] }
 0x567   : > { %v3702_v3 = vpop.permute.xlu1 %3701  ;;  %v3840_v8 = vsel %vm1766_vm5, %v3808_v45, %v8880_v52 }
 0x568   : > { %v3997_v41 = vsel %vm1931_vm10, %v3965_v18, %v3702_v3  ;;  %4476 = vxpose.xlu0.b32.start [1/16] (narrow) %v4444_v48, 8 }
 0x569   : > { %4881 = vmatprep.mubr.msk.f32.mxu1 %vm1969_vm11, %v3997_v41  ;;  %v3576_v16 = vpop.permute.xlu0 %3575 }
 0x56a   : > { %v3966_v42 = vsel %vm1898_vm9, %v3934_v51, %v3576_v16 }
 0x56b   : > { %v3322_v24 = vpop.permute.xlu1 %3321 }
 0x56c   : > { %4477 = vxpose.xlu0.b32.cont [2/16] (narrow) %v4445_v12, 8  ;;  %v3903_v27 = vsel %vm1832_vm7, %v3871_v47, %v3322_v24  ;;  %v4417_v24 = vld [vmem:[%s5195_s17 + $0x28] sm:$0xff] }
 0x56d   : > { %v3196_v14 = vpop.permute.xlu0 %3195 }
 0x56e   : > { %v3872_v53 = vsel %vm1799_vm6, %v3840_v8, %v3196_v14  ;;  %v8881_v14 = vld [vmem:[#allocation57_spill] sm:$0xff] }
 0x56f   : > { %v3324_v32 = vpop.permute.xlu1 %3323  ;;  %v4850_v40 = vpop.f32.mrf.mxu1  ;;  %v3777_v29 = vsel %vm277_vm0, %v4984_v31, %v8881_v14 }
 0x570   : > { %v4344_v7 = vmul.f32 %v4850_v40, %v8040_v28  ;;  %v3904_v26 = vsel %vm1832_vm7, %v3872_v53, %v3324_v32  ;;  %v8882_v32 = vld [vmem:[#allocation38_spill] sm:$0xff] }
 0x571   : > { %v4185_v37 = vpop.f32.mrf.mxu1  ;;  %v3704_v0 = vpop.permute.xlu0 %3703  ;;  %v3809_v40 = vsel %vm1733_vm4, %v3777_v29, %v8882_v32 }
 0x572   : > { %v4343_v21 = vmul.f32 %v8040_v28, %v4185_v37  ;;  %v3998_v50 = vsel %vm1931_vm10, %v3966_v42, %v3704_v0  ;;  %v4383_v25 = vadd.f32 %v8055_v11, %v4344_v7  ;;  %v8883_v42 = vld [vmem:[#allocation85_spill] sm:$0xff] }
 0x573   : > { %v3452_v23 = vpop.permute.xlu1 %3451  ;;  %4882 = vmatmul.mubr.msk.f32.gmra.mxu1 %vm1969_vm11, %v3998_v50  ;;  %v3841_v37 = vsel %vm1766_vm5, %v3809_v40, %v8883_v42 }
 0x574   : > { %v4382_v1 = vadd.f32 %v8055_v11, %v4343_v21  ;;  %v4447_v36 = vadd.f32 %v4415_v60, %v4383_v25  ;;  %v3936_v62 = vsel %vm1865_vm8, %v3904_v26, %v3452_v23  ;;  %v8885_v25 = vld [vmem:[#allocation159_spill] sm:$0xff]  ;;  %v8886_v60 = vld [vmem:[#allocation40_spill] sm:$0xff] }
 0x575   : > { %v3450_v6 = vpop.permute.xlu0 %3449  ;;  %v8888_v26 = vld [vmem:[#allocation100_spill] sm:$0xff] }
 0x576   : > { %v4446_v34 = vadd.f32 %v4414_v15, %v4382_v1  ;;  %v3935_v46 = vsel %vm1865_vm8, %v3903_v27, %v3450_v6  ;;  %v3778_v6 = vsel %vm277_vm0, %v4985_v5, %v8884_v30 }
 0x577   : > { %v3198_v33 = vpop.permute.xlu1 %3197 }
 0x578   : > { %4478 = vxpose.xlu0.b32.cont [3/16] (narrow) %v4446_v34, 8  ;;  %v3873_v7 = vsel %vm1799_vm6, %v3841_v37, %v3198_v33  ;;  %v3810_v34 = vsel %vm1733_vm4, %v3778_v6, %v8885_v25  ;;  %v4420_v37 = vld [vmem:[%s5195_s17 + $0x40] sm:$0xff]  ;;  %v4421_v6 = vld [vmem:[%s5195_s17 + $0x48] sm:$0xff] }
 0x579   : > { %v3578_v39 = vpop.permute.xlu0 %3577  ;;  %v3842_v27 = vsel %vm1766_vm5, %v3810_v34, %v8886_v60 }
 0x57a   : > { %v3967_v35 = vsel %vm1898_vm9, %v3935_v46, %v3578_v39  ;;  %v4418_v39 = vld [vmem:[%s5195_s17 + $0x30] sm:$0xff] }
 0x57b   : > { %v3706_v10 = vpop.permute.xlu1 %3705 }
 0x57c   : > { %v3999_v49 = vsel %vm1931_vm10, %v3967_v35, %v3706_v10  ;;  %4479 = vxpose.xlu0.b32.cont [4/16] (narrow) %v4447_v36, 8 }
 0x57d   : > { %4884 = vmatprep.mubr.msk.f32.mxu1 %vm1969_vm11, %v3999_v49  ;;  %v3580_v38 = vpop.permute.xlu0 %3579 }
 0x57e   : > { %v3968_v16 = vsel %vm1898_vm9, %v3936_v62, %v3580_v38  ;;  %v4419_v38 = vld [vmem:[%s5195_s17 + $0x38] sm:$0xff] }
 0x57f   : > { %v3326_v56 = vpop.permute.xlu1 %3325  ;;  %v4853_v58 = vpop.f32.mrf.mxu1 }
 0x580   : > { %v4346_v48 = vmul.f32 %v4853_v58, %v8040_v28  ;;  %v3905_v50 = vsel %vm1832_vm7, %v3873_v7, %v3326_v56 }
 0x581   : > { %v4195_v43 = vpop.f32.mrf.mxu1  ;;  %v3200_v18 = vpop.permute.xlu0 %3199 }
 0x582   : > { %v4345_v3 = vmul.f32 %v8040_v28, %v4195_v43  ;;  %v4385_v44 = vadd.f32 %v8055_v11, %v4346_v48  ;;  %v3874_v35 = vsel %vm1799_vm6, %v3842_v27, %v3200_v18  ;;  %v4986_v43 = vld [vmem:[#allocation2 + $0x170] sm:$0xff]  ;;  %v8887_v18 = vld [vmem:[#allocation78_spill] sm:$0xff] }
 0x583   : > { %v3328_v41 = vpop.permute.xlu1 %3327  ;;  %v3780_v48 = vsel %vm277_vm0, %v4986_v43, %v8887_v18  ;;  %v4426_v43 = vld [vmem:[%s5195_s17 + $0x70] sm:$0xff] }
 0x584   : > { %v4384_v13 = vadd.f32 %v8055_v11, %v4345_v3  ;;  %v4449_v0 = vadd.f32 %v4417_v24, %v4385_v44  ;;  %v3906_v4 = vsel %vm1832_vm7, %v3874_v35, %v3328_v41  ;;  %v4987_v3 = vld [vmem:[#allocation2 + $0x168] sm:$0xff] }
 0x585   : > { %v3708_v61 = vpop.permute.xlu0 %3707  ;;  %v3779_v41 = vsel %vm277_vm0, %v4987_v3, %v8888_v26  ;;  %v4427_v26 = vld [vmem:[%s5195_s17 + $0x78] sm:$0xff] }
 0x586   : > { %v4000_v12 = vsel %vm1931_vm10, %v3968_v16, %v3708_v61  ;;  %v4448_v9 = vadd.f32 %v4416_v2, %v4384_v13  ;;  %v8889_v2 = vld [vmem:[#allocation18_spill] sm:$0xff]  ;;  %v8890_v61 = vld [vmem:[#allocation67_spill] sm:$0xff] }
 0x587   : > { %v3456_v20 = vpop.permute.xlu1 %3455  ;;  %4885 = vmatmul.mubr.msk.f32.gmra.mxu1 %vm1969_vm11, %v4000_v12  ;;  %v3812_v62 = vsel %vm1733_vm4, %v3780_v48, %v8889_v2  ;;  %v3811_v44 = vsel %vm1733_vm4, %v3779_v41, %v8890_v61  ;;  %v8891_v12 = vld [vmem:[#allocation70_spill] sm:$0xff] }
 0x588   : > { %4480 = vxpose.xlu0.b32.cont [5/16] (narrow) %v4448_v9, 8  ;;  %v3938_v55 = vsel %vm1865_vm8, %v3906_v4, %v3456_v20  ;;  %v3844_v9 = vsel %vm1766_vm5, %v3812_v62, %v8891_v12  ;;  %v8892_v20 = vld [vmem:[#allocation141_spill] sm:$0xff]  ;;  %v4424_v4 = vld [vmem:[%s5195_s17 + $0x60] sm:$0xff] }
 0x589   : > { %v3454_v51 = vpop.permute.xlu0 %3453  ;;  %v3843_v24 = vsel %vm1766_vm5, %v3811_v44, %v8892_v20  ;;  %v4428_v61 = vld [vmem:[%s5195_s17 + $0x80] sm:$0xff]  ;;  %v4429_v20 = vld [vmem:[%s5195_s17 + $0x88] sm:$0xff] }
 0x58a   : > { %v3937_v23 = vsel %vm1865_vm8, %v3905_v50, %v3454_v51 }
 0x58b   : > { %v3202_v21 = vpop.permute.xlu1 %3201 }
 0x58c   : > { %4481 = vxpose.xlu0.b32.cont [6/16] (narrow) %v4449_v0, 8  ;;  %v3875_v32 = vsel %vm1799_vm6, %v3843_v24, %v3202_v21 }
 0x58d   : > { %v3582_v15 = vpop.permute.xlu0 %3581 }
 0x58e   : > { %v3969_v17 = vsel %vm1898_vm9, %v3937_v23, %v3582_v15 }
 0x58f   : > { %v3710_v59 = vpop.permute.xlu1 %3709  ;;  %v4856_v19 = vpop.f32.mrf.mxu1 }
 0x590   : > { %v4001_v1 = vsel %vm1931_vm10, %v3969_v17, %v3710_v59  ;;  %v4348_v47 = vmul.f32 %v4856_v19, %v8040_v28 }
 0x591   : > { %v4205_v63 = vpop.f32.mrf.mxu1  ;;  %4887 = vmatprep.mubr.msk.f32.mxu1 %vm1969_vm11, %v4001_v1  ;;  %v3584_v54 = vpop.permute.xlu0 %3583 }
 0x592   : > { %v4347_v33 = vmul.f32 %v8040_v28, %v4205_v63  ;;  %v4387_v49 = vadd.f32 %v8055_v11, %v4348_v47  ;;  %v3970_v45 = vsel %vm1898_vm9, %v3938_v55, %v3584_v54 }
 0x593   : > { %v3330_v46 = vpop.permute.xlu1 %3329 }
 0x594   : > { %v4386_v36 = vadd.f32 %v8055_v11, %v4347_v33  ;;  %v4451_v56 = vadd.f32 %v4419_v38, %v4387_v49  ;;  %v3907_v42 = vsel %vm1832_vm7, %v3875_v32, %v3330_v46  ;;  %v4422_v33 = vld [vmem:[%s5195_s17 + $0x50] sm:$0xff] }
 0x595   : > { %v3204_v10 = vpop.permute.xlu0 %3203 }
 0x596   : > { %v4450_v22 = vadd.f32 %v4418_v39, %v4386_v36  ;;  %v3876_v31 = vsel %vm1799_vm6, %v3844_v9, %v3204_v10  ;;  %v4423_v39 = vld [vmem:[%s5195_s17 + $0x58] sm:$0xff] }
 0x597   : > { %v3332_v57 = vpop.permute.xlu1 %3331 }
 0x598   : > { %4482 = vxpose.xlu0.b32.cont [7/16] (narrow) %v4450_v22, 8  ;;  %v3908_v0 = vsel %vm1832_vm7, %v3876_v31, %v3332_v57 }
 0x599   : > { %v3712_v52 = vpop.permute.xlu0 %3711 }
 0x59a   : > { %v4002_v8 = vsel %vm1931_vm10, %v3970_v45, %v3712_v52  ;;  %v4425_v45 = vld [vmem:[%s5195_s17 + $0x68] sm:$0xff] }
 0x59b   : > { %v3460_v58 = vpop.permute.xlu1 %3459  ;;  %4888 = vmatmul.mubr.msk.f32.gmra.mxu1 %vm1969_vm11, %v4002_v8 }
 0x59c   : > { %4483 = vxpose.xlu0.b32.cont [8/16] (narrow) %v4451_v56, 8  ;;  %v3940_v15 = vsel %vm1865_vm8, %v3908_v0, %v3460_v58  ;;  %v4431_v0 = vld [vmem:[%s5195_s17 + $0x98] sm:$0xff] }
 0x59d   : > { %v3458_v53 = vpop.permute.xlu0 %3457 }
 0x59e   : > { %v3939_v7 = vsel %vm1865_vm8, %v3907_v42, %v3458_v53 }
 0x59f   : > { %v3588_v13 = vpop.permute.xlu1 %3587  ;;  %v4859_v16 = vpop.f32.mrf.mxu1 }
 0x5a0   : > { %v4350_v40 = vmul.f32 %v4859_v16, %v8040_v28  ;;  %v3972_v59 = vsel %vm1898_vm9, %v3940_v15, %v3588_v13 }
 0x5a1   : > { %v4215_v14 = vpop.f32.mrf.mxu1  ;;  %v3586_v29 = vpop.permute.xlu0 %3585 }
 0x5a2   : > { %v4349_v51 = vmul.f32 %v8040_v28, %v4215_v14  ;;  %v3971_v17 = vsel %vm1898_vm9, %v3939_v7, %v3586_v29  ;;  %v4389_v19 = vadd.f32 %v8055_v11, %v4350_v40  ;;  %v4430_v40 = vld [vmem:[%s5195_s17 + $0x90] sm:$0xff] }
 0x5a3   : > { %v3716_v23 = vpop.permute.xlu1 %3715 }
 0x5a4   : > { %v4388_v50 = vadd.f32 %v8055_v11, %v4349_v51  ;;  %v4004_v30 = vsel %vm1931_vm10, %v3972_v59, %v3716_v23  ;;  %v4453_v63 = vadd.f32 %v4421_v6, %v4389_v19 }
 0x5a5   : > { %v3714_v21 = vpop.permute.xlu0 %3713 }
 0x5a6   : > { %v4003_v1 = vsel %vm1931_vm10, %v3971_v17, %v3714_v21  ;;  %v4452_v5 = vadd.f32 %v4420_v37, %v4388_v50  ;;  %v4432_v21 = vld [vmem:[%s5195_s17 + $0xa0] sm:$0xff] }
 0x5a7   : > { %4890 = vmatprep.mubr.msk.f32.mxu1 %vm1969_vm11, %v4003_v1 }
 0x5a8   : > { %4484 = vxpose.xlu0.b32.cont [9/16] (narrow) %v4452_v5, 8  ;;  %4891 = vmatmul.mubr.msk.f32.gmra.mxu1 %vm1969_vm11, %v4004_v30  ;;  %v4433_v5 = vld [vmem:[%s5195_s17 + $0xa8] sm:$0xff] }
 0x5ac   : > { %4485 = vxpose.xlu0.b32.cont [10/16] (narrow) %v4453_v63, 8 }
 0x5af   : > { %v4862_v54 = vpop.f32.mrf.mxu1 }
 0x5b0   : > { %v4352_v34 = vmul.f32 %v4862_v54, %v8040_v28 }
 0x5b1   : > { %v4225_v25 = vpop.f32.mrf.mxu1 }
 0x5b2   : > { %v4351_v47 = vmul.f32 %v8040_v28, %v4225_v25  ;;  %v4391_v27 = vadd.f32 %v8055_v11, %v4352_v34  ;;  %v4434_v34 = vld [vmem:[%s5195_s17 + $0xb0] sm:$0xff] }
 0x5b4   : > { %v4390_v60 = vadd.f32 %v8055_v11, %v4351_v47  ;;  %v4455_v35 = vadd.f32 %v4423_v39, %v4391_v27  ;;  %v4435_v27 = vld [vmem:[%s5195_s17 + $0xb8] sm:$0xff] }
 0x5b6   : > { %v4454_v46 = vadd.f32 %v4422_v33, %v4390_v60 }
 0x5b8   : > { %4486 = vxpose.xlu0.b32.cont [11/16] (narrow) %v4454_v46, 8 }
 0x5bc   : > { %4487 = vxpose.xlu0.b32.cont [12/16] (narrow) %v4455_v35, 8 }
 0x5bf   : > { %v4865_v36 = vpop.f32.mrf.mxu1 }
 0x5c0   : > { %v4354_v49 = vmul.f32 %v4865_v36, %v8040_v28 }
 0x5c1   : > { %v4235_v10 = vpop.f32.mrf.mxu1 }
 0x5c2   : > { %v4353_v22 = vmul.f32 %v8040_v28, %v4235_v10  ;;  %v4393_v38 = vadd.f32 %v8055_v11, %v4354_v49  ;;  %v4436_v49 = vld [vmem:[%s5195_s17 + $0xc0] sm:$0xff] }
 0x5c4   : > { %v4392_v57 = vadd.f32 %v8055_v11, %v4353_v22  ;;  %v4457_v52 = vadd.f32 %v4425_v45, %v4393_v38  ;;  %v4437_v38 = vld [vmem:[%s5195_s17 + $0xc8] sm:$0xff] }
 0x5c6   : > { %v4456_v55 = vadd.f32 %v4424_v4, %v4392_v57 }
 0x5c8   : > { %4488 = vxpose.xlu0.b32.cont [13/16] (narrow) %v4456_v55, 8 }
 0x5cc   : > { %4489 = vxpose.xlu0.b32.cont [14/16] (narrow) %v4457_v52, 8 }
 0x5cf   : > { %v4868_v8 = vpop.f32.mrf.mxu1 }
 0x5d0   : > { %v4356_v58 = vmul.f32 %v4868_v8, %v8040_v28 }
 0x5d1   : > { %v4245_v56 = vpop.f32.mrf.mxu1 }
 0x5d2   : > { %v4355_v53 = vmul.f32 %v8040_v28, %v4245_v56  ;;  %v4395_v48 = vadd.f32 %v8055_v11, %v4356_v58  ;;  %v4438_v58 = vld [vmem:[%s5195_s17 + $0xd0] sm:$0xff] }
 0x5d4   : > { %v4394_v18 = vadd.f32 %v8055_v11, %v4355_v53  ;;  %v4459_v41 = vadd.f32 %v4427_v26, %v4395_v48  ;;  %v4439_v48 = vld [vmem:[%s5195_s17 + $0xd8] sm:$0xff] }
 0x5d6   : > { %v4458_v3 = vadd.f32 %v4426_v43, %v4394_v18 }
 0x5d8   : > { %4490 = vxpose.xlu0.b32.cont [15/16] (narrow) %v4458_v3, 8 }
 0x5dc   : > { %4491 = vxpose.xlu0.b32.end [16/16] (narrow) %v4459_v41, 8 }
 0x5e3   : > { %v4871_v2 = vpop.f32.mrf.mxu1 }
 0x5e4   : > { %v4358_v13 = vmul.f32 %v4871_v2, %v8040_v28 }
 0x5e5   : > { %v4255_v62 = vpop.f32.mrf.mxu1 }
 0x5e6   : > { %v4357_v16 = vmul.f32 %v8040_v28, %v4255_v62  ;;  %v4397_v12 = vadd.f32 %v8055_v11, %v4358_v13  ;;  %v4440_v13 = vld [vmem:[%s5195_s17 + $0xe0] sm:$0xff] }
 0x5e8   : > { %v4396_v44 = vadd.f32 %v8055_v11, %v4357_v16  ;;  %v4461_v24 = vadd.f32 %v4429_v20, %v4397_v12  ;;  %v4441_v12 = vld [vmem:[%s5195_s17 + $0xe8] sm:$0xff] }
 0x5ea   : > { %v4460_v9 = vadd.f32 %v4428_v61, %v4396_v44 }
 0x5ec   : > { %4508 = vxpose.xlu1.b32.start [1/16] (narrow) %v4460_v9, 8 }
 0x5f0   : > { %4509 = vxpose.xlu1.b32.cont [2/16] (narrow) %v4461_v24, 8 }
 0x5f7   : > { %v4874_v31 = vpop.f32.mrf.mxu1 }
 0x5f8   : > { %v4360_v29 = vmul.f32 %v4874_v31, %v8040_v28 }
 0x5f9   : > { %v4265_v14 = vpop.f32.mrf.mxu1 }
 0x5fa   : > { %v4359_v32 = vmul.f32 %v8040_v28, %v4265_v14  ;;  %v4399_v42 = vadd.f32 %v8055_v11, %v4360_v29  ;;  %v4442_v29 = vld [vmem:[%s5195_s17 + $0xf0] sm:$0xff] }
 0x5fc   : > { %v4398_v51 = vadd.f32 %v8055_v11, %v4359_v32  ;;  %v4463_v7 = vadd.f32 %v4431_v0, %v4399_v42  ;;  %v4443_v42 = vld [vmem:[%s5195_s17 + $0xf8] sm:$0xff]  ;;  %s4988_s17 = scalar_lea.vmem %s4561_s8, 128 }
 0x5fd   : > { %p4989_p11 = scmp.ne.s32.totalorder %s4561_s8, %s4988_s17  ;;  %p4996_p1 = scmp.lt.s32.totalorder %s4994_s28, %s4988_s17 }
 0x5fe   : > { %v4462_v37 = vadd.f32 %v4430_v40, %v4398_v51 }
 0x5ff   : > { %p4990_p12 = pnand %p4989_p11, %p5138_p5  ;;  %p4997_p2 = por %p4996_p1, %p4995_p0 }
 0x600   : > { %4510 = vxpose.xlu1.b32.cont [3/16] (narrow) %v4462_v37, 8 }
 0x601   : > { %p4991_p13 = pneg %p4990_p12 }
 0x603   : > { %p4998_p3 = pnand %p4997_p2, %p4991_p13 }
 0x604   : > { %4511 = vxpose.xlu1.b32.cont [4/16] (narrow) %v4463_v7, 8 }
 0x60b   : > { %v4877_v50 = vpop.f32.mrf.mxu1 }
 0x60c   : > { %v4362_v15 = vmul.f32 %v4877_v50, %v8040_v28 }
 0x60d   : > { %v4275_v23 = vpop.f32.mrf.mxu1 }
 0x60e   : > { %v4361_v17 = vmul.f32 %v8040_v28, %v4275_v23  ;;  %v4401_v19 = vadd.f32 %v8055_v11, %v4362_v15 }
 0x610   : > { %v4400_v59 = vadd.f32 %v8055_v11, %v4361_v17  ;;  %v4465_v30 = vadd.f32 %v4433_v5, %v4401_v19 }
 0x612   : > { %v4464_v1 = vadd.f32 %v4432_v21, %v4400_v59 }
 0x614   : > { %4512 = vxpose.xlu1.b32.cont [5/16] (narrow) %v4464_v1, 8 }
 0x618   : > { %4513 = vxpose.xlu1.b32.cont [6/16] (narrow) %v4465_v30, 8 }
 0x61c   : > { %v4492_v0 = vpop.trf.xlu0 }
 0x61f   : > { %v4880_v6 = vpop.f32.mrf.mxu1 }
 0x620   : > { %v4364_v54 = vmul.f32 %v4880_v6, %v8040_v28 }
 0x621   : > { %v4285_v63 = vpop.f32.mrf.mxu1 }
 0x622   : > { %v4363_v25 = vmul.f32 %v8040_v28, %v4285_v63  ;;  %v4403_v33 = vadd.f32 %v8055_v11, %v4364_v54 }
 0x624   : > { %v4402_v47 = vadd.f32 %v8055_v11, %v4363_v25  ;;  %v4467_v46 = vadd.f32 %v4435_v27, %v4403_v33 }
 0x626   : > { %v4466_v60 = vadd.f32 %v4434_v34, %v4402_v47 }
 0x628   : > { %4514 = vxpose.xlu1.b32.cont [7/16] (narrow) %v4466_v60, 8 }
 0x62c   : > { %4515 = vxpose.xlu1.b32.cont [8/16] (narrow) %v4467_v46, 8 }
 0x633   : > { %v4883_v39 = vpop.f32.mrf.mxu1 }
 0x634   : > { %v4366_v36 = vmul.f32 %v4883_v39, %v8040_v28 }
 0x635   : > { %v4295_v35 = vpop.f32.mrf.mxu1 }
 0x636   : > { %v4365_v10 = vmul.f32 %v8040_v28, %v4295_v35  ;;  %v4405_v4 = vadd.f32 %v8055_v11, %v4366_v36 }
 0x638   : > { %v4404_v22 = vadd.f32 %v8055_v11, %v4365_v10  ;;  %v4469_v55 = vadd.f32 %v4437_v38, %v4405_v4 }
 0x63a   : > { %v4468_v57 = vadd.f32 %v4436_v49, %v4404_v22 }
 0x63c   : > { %4516 = vxpose.xlu1.b32.cont [9/16] (narrow) %v4468_v57, 8 }
 0x640   : > { %4517 = vxpose.xlu1.b32.cont [10/16] (narrow) %v4469_v55, 8 }
 0x647   : > { %v4886_v45 = vpop.f32.mrf.mxu1 }
 0x648   : > { %v4368_v8 = vmul.f32 %v4886_v45, %v8040_v28 }
 0x649   : > { %v4305_v52 = vpop.f32.mrf.mxu1 }
 0x64a   : > { %v4367_v56 = vmul.f32 %v8040_v28, %v4305_v52  ;;  %v4407_v43 = vadd.f32 %v8055_v11, %v4368_v8 }
 0x64c   : > { %v4406_v53 = vadd.f32 %v8055_v11, %v4367_v56  ;;  %v4471_v3 = vadd.f32 %v4439_v48, %v4407_v43 }
 0x64e   : > { %v4470_v18 = vadd.f32 %v4438_v58, %v4406_v53 }
 0x650   : > { %4518 = vxpose.xlu1.b32.cont [11/16] (narrow) %v4470_v18, 8 }
 0x654   : > { %4519 = vxpose.xlu1.b32.cont [12/16] (narrow) %v4471_v3, 8 }
 0x65b   : > { %v4889_v26 = vpop.f32.mrf.mxu1 }
 0x65c   : > { %v4370_v2 = vmul.f32 %v4889_v26, %v8040_v28 }
 0x65d   : > { %v4315_v41 = vpop.f32.mrf.mxu1 }
 0x65e   : > { %v4369_v62 = vmul.f32 %v8040_v28, %v4315_v41  ;;  %v4409_v61 = vadd.f32 %v8055_v11, %v4370_v2 }
 0x660   : > { %v4408_v16 = vadd.f32 %v8055_v11, %v4369_v62  ;;  %v4473_v9 = vadd.f32 %v4441_v12, %v4409_v61 }
 0x662   : > { %v4472_v44 = vadd.f32 %v4440_v13, %v4408_v16 }
 0x664   : > { %4520 = vxpose.xlu1.b32.cont [13/16] (narrow) %v4472_v44, 8 }
 0x668   : > { %4521 = vxpose.xlu1.b32.cont [14/16] (narrow) %v4473_v9, 8  ;;  %v4892_v20 = vpop.f32.mrf.mxu1 }
 0x669   : > { %v4372_v31 = vmul.f32 %v4892_v20, %v8040_v28 }
 0x66a   : > { %v4325_v24 = vpop.f32.mrf.mxu1 }
 0x66b   : > { %v4371_v14 = vmul.f32 %v8040_v28, %v4325_v24  ;;  %v4411_v40 = vadd.f32 %v8055_v11, %v4372_v31 }
 0x66d   : > { %v4410_v32 = vadd.f32 %v8055_v11, %v4371_v14  ;;  %v4475_v37 = vadd.f32 %v4443_v42, %v4411_v40 }
 0x66f   : > { %v4474_v51 = vadd.f32 %v4442_v29, %v4410_v32 }
 0x671   : > { %4522 = vxpose.xlu1.b32.cont [15/16] (narrow) %v4474_v51, 8 }
 0x675   : > { %4523 = vxpose.xlu1.b32.end [16/16] (narrow) %v4475_v37, 8 }
 0x6b5   : > { %v4524_v7 = vpop.trf.xlu1 }
 0x6b6   : > { %v4542_v50 = vcombine.low %v4492_v0, %v4524_v7 }
 0x6b8   : > { %4544 = vst [vmem:[%s271_s16] sm:$0xff] %v4542_v50 }
 0x6b9   : > { %5001 = shalt.err (!%p4998_p3)
}
 0x6ba   : > { %s5002_s23 = scalar_lea.hbm %s4558_s18, 128  ;;  %s5006_s20 = scalar_lea.hbm %s8281_s7, 256 }
 0x6bb   : > { %p5003_p4 = scmp.ne.s32.totalorder %s4558_s18, %s5002_s23  ;;  %p5007_p9 = scmp.lt.s32.totalorder %s4558_s18, %s8281_s7 }
 0x6bc   : > { %p5008_p10 = scmp.lt.s32.totalorder %s5006_s20, %s5002_s23 }
 0x6bd   : > { %p5004_p7 = pnand %p5003_p4, %p5138_p5 }
 0x6be   : > { %p5009_p11 = por %p5008_p10, %p5007_p9 }
 0x6bf   : > { %p5005_p8 = pneg %p5004_p7 }
 0x6c1   : > { %p5010_p12 = pnand %p5009_p11, %p5005_p8 }
 0x6c3   : > { %5013 = shalt.err (!%p5010_p12)
}
 0x6c4   : > { %4893 = dma.vmem_to_hbm [thread:$0]  (%p5138_p5), %s4561_s8, 128, %s4558_s18, %s4546_s19  }
 0x6c5 PF: > { %p4899_p13 = scmp.ge.s32.totalorder %s5048_s27, 2  ;;  %s4572_s9 = sand.u32 1, %s5036_s24  }
 0x6c6   : > { %s4573_s13 = scalar_lea.sflag [#allocation4], %s4572_s9 }
 0x6c7   : > { %p4896_p0 = pnand %p4899_p13, %p5142_p6 }
 0x6c9   : > { %p4897_p1 = pneg %p4896_p0 }
 0x6cb   : > { %5031 = dma.done.wait (%p4897_p1), %s4573_s13, 128  }
 0x6cc   : > { %5033 = vsyncadd (%p4897_p1), %s4573_s13, 4294967168  ;;  %p17_p2 = scmp.ge.s32.totalorder %s5125_s30, 4   ;;  %s8893_s24 = smov %s5040_s25 }
 0x6cd   : > { %s8894_s25 = smov %s5044_s26  ;;  %s8895_s26 = smov %s5136_s10 }
 0x6ce   : > { %s8896_s27 = smov %s5125_s30  ;;  %19 = sbr.rel (!%p17_p2) target bundleno = 3 (0x3), region = 86 }
 0x6d3   :  { %4578 = vsyncpa [#allocation4], 1 }
 0x6d4   :  { %4580 = vsyncpa [#allocation4 + $0x1], 1 }

</bundles_post_ra>
